<compile_context>
chip_gen: v5e
topology: v5e:2x2
jax: 0.10.0
libtpu: 0.0.40
codegen_flags: <defaults>
</compile_context>

<pallas_src>
import jax
import jax.numpy as jnp
from jax.experimental import pallas as pl
from jax.experimental.pallas import tpu as pltpu


def discriminator_kernel(x_ref, w1_ref, b1_ref, w2_ref, b2_ref, w3_ref, b3_ref,
                         o_ref):
    # In-kernel f32 -> bf16 cast of the x tile (x is streamed as f32 from HBM).
    x = x_ref[...].astype(jnp.bfloat16)

    # Layer 1: Linear(784 -> 512), bf16 MXU inputs, f32 accumulate, LeakyReLU.
    h = jnp.dot(x, w1_ref[...], preferred_element_type=jnp.float32) + b1_ref[...]
    h = jnp.maximum(h, 0.2 * h)

    # Layer 2: Linear(512 -> 256), bf16 MXU inputs, f32 accumulate, LeakyReLU.
    h = jnp.dot(h.astype(jnp.bfloat16), w2_ref[...],
                preferred_element_type=jnp.float32) + b2_ref[...]
    h = jnp.maximum(h, 0.2 * h)

    # Layer 3: Linear(256 -> 1).  N=1 would waste the MXU, so VPU multiply with
    # the (1,256) weight row + XLU lane reduction.  b3 is a scalar in SMEM.
    logit = jnp.sum(h * w3_ref[...], axis=-1, keepdims=True) + b3_ref[0, 0]

    # Sigmoid on the EUP; store lane-dense as (1, tb) instead of (tb, 1).
    o_ref[...] = jax.nn.sigmoid(logit).reshape(o_ref.shape)


def _round_up(n, m):
    return ((n + m - 1) // m) * m


def prepare_params(params):
    """One-time param prep (bf16 weights, row biases, SMEM scalar).  In a
    training loop call this once per weight update, not per forward."""
    w1, b1, w2, b2, w3, b3 = params
    return (w1.astype(jnp.bfloat16),
            b1.reshape(1, 512).astype(jnp.float32),
            w2.astype(jnp.bfloat16),
            b2.reshape(1, 256).astype(jnp.float32),
            w3.reshape(1, 256).astype(jnp.float32),
            b3.reshape(1, 1).astype(jnp.float32))


def discriminator_forward(x, prepared_params, *, tb=512):
    """x: [B, 784] float32.  Returns sigmoid probabilities [B, 1] float32."""
    w1_bf, b1, w2_bf, b2, w3_row, b3_s = prepared_params
    B, D = x.shape
    assert D == 784

    # Tile sizing: multiple of 128, never below 128, capped at 1024 (VMEM),
    # and >= 2 grid steps for B >= 256 so v7x can split across both TCs.
    tb = max(128, min(int(tb), 1024))
    tb = (tb // 128) * 128
    if B >= 256:
        tb = min(tb, _round_up(pl.cdiv(B, 2), 128))
    tb = min(tb, _round_up(B, 128))

    # Only tiny batches (B < tb) get padded; otherwise the ragged last block is
    # handled by Pallas OOB masking (garbage rows are sliced off below).
    if B < tb:
        x = jnp.pad(x, ((0, tb - B), (0, 0)))
    n_tiles = pl.cdiv(x.shape[0], tb)

    full = lambda i: (0, 0)  # weights/biases resident across the whole grid

    out = pl.pallas_call(
        discriminator_kernel,
        out_shape=jax.ShapeDtypeStruct((n_tiles, tb), jnp.float32),
        grid_spec=pltpu.PrefetchScalarGridSpec(
            num_scalar_prefetch=0,
            grid=(n_tiles,),
            in_specs=[
                pl.BlockSpec((tb, 784), lambda i: (i, 0)),   # x tile (f32)
                pl.BlockSpec((784, 512), full),              # w1 (bf16)
                pl.BlockSpec((1, 512), full),                # b1 (f32)
                pl.BlockSpec((512, 256), full),              # w2 (bf16)
                pl.BlockSpec((1, 256), full),                # b2 (f32)
                pl.BlockSpec((1, 256), full),                # w3 row (f32)
                pl.BlockSpec(memory_space=pltpu.MemorySpace.SMEM),  # b3 scalar
            ],
            out_specs=pl.BlockSpec((1, tb), lambda i: (i, 0)),  # lane-dense
        ),
        compiler_params=pltpu.CompilerParams(
            dimension_semantics=("parallel",),
            vmem_limit_bytes=32 << 20,
        ),
    )(x, w1_bf, b1, w2_bf, b2, w3_row, b3_s)

    return out.reshape(-1)[:B].reshape(B, 1)


def init_params(key):
    """Deterministic init mimicking nn.Linear default (U(-1/sqrt(fan_in), +))."""
    def linear(key, fan_in, fan_out):
        kw, kb = jax.random.split(key)
        bound = 1.0 / jnp.sqrt(fan_in)
        w = jax.random.uniform(kw, (fan_in, fan_out), jnp.float32, -bound, bound)
        b = jax.random.uniform(kb, (1, fan_out), jnp.float32, -bound, bound)
        return w, b

    k1, k2, k3 = jax.random.split(key, 3)
    w1, b1 = linear(k1, 784, 512)
    w2, b2 = linear(k2, 512, 256)
    w3, b3 = linear(k3, 256, 1)
    return (w1, b1, w2, b2, w3, b3)


def reference_forward(x, params):
    """Pure-JAX f32 reference matching the PyTorch module semantics."""
    w1, b1, w2, b2, w3, b3 = params
    h = x @ w1 + b1
    h = jnp.where(h > 0, h, 0.2 * h)
    h = h @ w2 + b2
    h = jnp.where(h > 0, h, 0.2 * h)
    logit = h @ w3 + b3
    return jax.nn.sigmoid(logit)


if __name__ == "__main__":
    key = jax.random.PRNGKey(0)
    kp, kx1, kx2 = jax.random.split(key, 3)

    params = init_params(kp)
    prepped = prepare_params(params)   # one-time bf16 cast / reshape

    # Case 1: tiny batch -> padded up to one 128-row tile.
    B1 = 16
    x1 = jax.random.normal(kx1, (B1, 784), jnp.float32)
    out1 = jax.block_until_ready(discriminator_forward(x1, prepped))
    ref1 = reference_forward(x1, params)
    assert out1.shape == (B1, 1)
    assert jnp.allclose(out1, ref1, atol=2e-2, rtol=2e-2), "case1 mismatch"
    assert bool(jnp.all((out1 > 0.0) & (out1 < 1.0))), "case1 sigmoid range"

    # Case 2: ragged 2-step grid (B=200, tb=128) -> no pad, masked last block.
    B2 = 200
    x2 = jax.random.normal(kx2, (B2, 784), jnp.float32)
    out2 = jax.block_until_ready(discriminator_forward(x2, prepped, tb=128))
    ref2 = reference_forward(x2, params)
    assert out2.shape == (B2, 1)
    assert jnp.allclose(out2, ref2, atol=2e-2, rtol=2e-2), "case2 mismatch"
    assert bool(jnp.all((out2 > 0.0) & (out2 < 1.0))), "case2 sigmoid range"

    print("KERNEL_OK")
</pallas_src>

<mosaic_0001>
module attributes {stable_mosaic.version = 11 : i64} {
  func.func @discriminator_kernel(%arg0: i32, %arg1: memref<128x784xf32, #tpu.memory_space<vmem>>, %arg2: memref<784x512xbf16, #tpu.memory_space<vmem>>, %arg3: memref<1x512xf32, #tpu.memory_space<vmem>>, %arg4: memref<512x256xbf16, #tpu.memory_space<vmem>>, %arg5: memref<1x256xf32, #tpu.memory_space<vmem>>, %arg6: memref<1x256xf32, #tpu.memory_space<vmem>>, %arg7: memref<1x1xf32, #tpu.memory_space<smem>>, %arg8: memref<1x128xf32, #tpu.memory_space<vmem>>) attributes {dimension_semantics = [#tpu.dimension_semantics<parallel>], iteration_bounds = array<i64: 1>, scalar_prefetch = 0 : i64, scratch_operands = 0 : i64, tpu.core_type = #tpu.core_type<tc>, window_params = [{transform_indices = @transform_0, window_bounds = array<i64: 128, 784>}, {pipeline_mode = #tpu.pipeline_mode<synchronous>, transform_indices = @transform_1, window_bounds = array<i64: 784, 512>}, {pipeline_mode = #tpu.pipeline_mode<synchronous>, transform_indices = @transform_2, window_bounds = array<i64: 1, 512>}, {pipeline_mode = #tpu.pipeline_mode<synchronous>, transform_indices = @transform_3, window_bounds = array<i64: 512, 256>}, {pipeline_mode = #tpu.pipeline_mode<synchronous>, transform_indices = @transform_4, window_bounds = array<i64: 1, 256>}, {pipeline_mode = #tpu.pipeline_mode<synchronous>, transform_indices = @transform_5, window_bounds = array<i64: 1, 256>}, {transform_indices = @transform_6, window_bounds = array<i64: 1, 1>}, {transform_indices = @transform_7, window_bounds = array<i64: 1, 128>}]} {
    %c0 = arith.constant 0 : index
    %c0_0 = arith.constant 0 : index
    %0 = vector.load %arg1[%c0, %c0_0] : memref<128x784xf32, #tpu.memory_space<vmem>>, vector<128x784xf32>
    %1 = arith.truncf %0 : vector<128x784xf32> to vector<128x784xbf16>
    %c0_1 = arith.constant 0 : index
    %c0_2 = arith.constant 0 : index
    %2 = vector.load %arg2[%c0_1, %c0_2] : memref<784x512xbf16, #tpu.memory_space<vmem>>, vector<784x512xbf16>
    %cst = arith.constant dense<0.000000e+00> : vector<128x512xf32>
    %3 = tpu.matmul %1, %2, %cst {dimension_numbers = #tpu.dot_dimension_numbers<[1], [0], [0], [1], [0, 0, 1, 1], [], []>} : vector<128x784xbf16>, vector<784x512xbf16>, vector<128x512xf32> -> vector<128x512xf32>
    %c0_3 = arith.constant 0 : index
    %c0_4 = arith.constant 0 : index
    %4 = vector.load %arg3[%c0_3, %c0_4] : memref<1x512xf32, #tpu.memory_space<vmem>>, vector<1x512xf32>
    %5 = vector.broadcast %4 : vector<1x512xf32> to vector<128x512xf32>
    %6 = arith.addf %3, %5 : vector<128x512xf32>
    %cst_5 = arith.constant 2.000000e-01 : f32
    %7 = vector.broadcast %cst_5 : f32 to vector<128x512xf32>
    %8 = arith.mulf %7, %6 : vector<128x512xf32>
    %9 = arith.maximumf %6, %8 : vector<128x512xf32>
    %10 = arith.truncf %9 : vector<128x512xf32> to vector<128x512xbf16>
    %c0_6 = arith.constant 0 : index
    %c0_7 = arith.constant 0 : index
    %11 = vector.load %arg4[%c0_6, %c0_7] : memref<512x256xbf16, #tpu.memory_space<vmem>>, vector<512x256xbf16>
    %cst_8 = arith.constant dense<0.000000e+00> : vector<128x256xf32>
    %12 = tpu.matmul %10, %11, %cst_8 {dimension_numbers = #tpu.dot_dimension_numbers<[1], [0], [0], [1], [0, 0, 1, 1], [], []>} : vector<128x512xbf16>, vector<512x256xbf16>, vector<128x256xf32> -> vector<128x256xf32>
    %c0_9 = arith.constant 0 : index
    %c0_10 = arith.constant 0 : index
    %13 = vector.load %arg5[%c0_9, %c0_10] : memref<1x256xf32, #tpu.memory_space<vmem>>, vector<1x256xf32>
    %14 = vector.broadcast %13 : vector<1x256xf32> to vector<128x256xf32>
    %15 = arith.addf %12, %14 : vector<128x256xf32>
    %cst_11 = arith.constant 2.000000e-01 : f32
    %16 = vector.broadcast %cst_11 : f32 to vector<128x256xf32>
    %17 = arith.mulf %16, %15 : vector<128x256xf32>
    %18 = arith.maximumf %15, %17 : vector<128x256xf32>
    %c0_12 = arith.constant 0 : index
    %c0_13 = arith.constant 0 : index
    %19 = vector.load %arg6[%c0_12, %c0_13] : memref<1x256xf32, #tpu.memory_space<vmem>>, vector<1x256xf32>
    %20 = vector.broadcast %19 : vector<1x256xf32> to vector<128x256xf32>
    %21 = arith.mulf %18, %20 : vector<128x256xf32>
    %cst_14 = arith.constant dense<0.000000e+00> : vector<128xf32>
    %22 = vector.multi_reduction <add>, %21, %cst_14 [1] : vector<128x256xf32> to vector<128xf32>
    %23 = vector.shape_cast %22 : vector<128xf32> to vector<128x1xf32>
    %c0_15 = arith.constant 0 : index
    %c0_16 = arith.constant 0 : index
    %24 = memref.load %arg7[%c0_15, %c0_16] : memref<1x1xf32, #tpu.memory_space<smem>>
    %25 = vector.broadcast %24 : f32 to vector<128x1xf32>
    %26 = arith.addf %23, %25 : vector<128x1xf32>
    %27 = arith.negf %26 : vector<128x1xf32>
    %28 = math.exp %27 : vector<128x1xf32>
    %cst_17 = arith.constant 1.000000e+00 : f32
    %29 = vector.broadcast %cst_17 : f32 to vector<128x1xf32>
    %30 = arith.addf %29, %28 : vector<128x1xf32>
    %31 = arith.divf %29, %30 : vector<128x1xf32>
    %32 = vector.shape_cast %31 : vector<128x1xf32> to vector<1x128xf32>
    %c0_18 = arith.constant 0 : index
    %c0_19 = arith.constant 0 : index
    %33 = vector.load %arg8[%c0_18, %c0_19] : memref<1x128xf32, #tpu.memory_space<vmem>>, vector<1x128xf32>
    tpu.vector_store %arg8[%c0_18, %c0_19], %32 {strides = array<i32>} : memref<1x128xf32, #tpu.memory_space<vmem>>, vector<1x128xf32>,
    return
  }
  func.func @transform_0(%arg0: i32) -> (i32, i32) {
    %c0_i32 = arith.constant 0 : i32
    %c0_i32_0 = arith.constant 0 : i32
    return %arg0, %c0_i32 : i32, i32
  }
  func.func @transform_1(%arg0: i32) -> (i32, i32) {
    %c0_i32 = arith.constant 0 : i32
    %c0_i32_0 = arith.constant 0 : i32
    %c0_i32_1 = arith.constant 0 : i32
    return %c0_i32, %c0_i32_0 : i32, i32
  }
  func.func @transform_2(%arg0: i32) -> (i32, i32) {
    %c0_i32 = arith.constant 0 : i32
    %c0_i32_0 = arith.constant 0 : i32
    %c0_i32_1 = arith.constant 0 : i32
    return %c0_i32, %c0_i32_0 : i32, i32
  }
  func.func @transform_3(%arg0: i32) -> (i32, i32) {
    %c0_i32 = arith.constant 0 : i32
    %c0_i32_0 = arith.constant 0 : i32
    %c0_i32_1 = arith.constant 0 : i32
    return %c0_i32, %c0_i32_0 : i32, i32
  }
  func.func @transform_4(%arg0: i32) -> (i32, i32) {
    %c0_i32 = arith.constant 0 : i32
    %c0_i32_0 = arith.constant 0 : i32
    %c0_i32_1 = arith.constant 0 : i32
    return %c0_i32, %c0_i32_0 : i32, i32
  }
  func.func @transform_5(%arg0: i32) -> (i32, i32) {
    %c0_i32 = arith.constant 0 : i32
    %c0_i32_0 = arith.constant 0 : i32
    %c0_i32_1 = arith.constant 0 : i32
    return %c0_i32, %c0_i32_0 : i32, i32
  }
  func.func @transform_6(%arg0: i32) -> (i32, i32) {
    %c0_i32 = arith.constant 0 : i32
    %c0_i32_0 = arith.constant 0 : i32
    %c0_i32_1 = arith.constant 0 : i32
    return %c0_i32, %c0_i32_0 : i32, i32
  }
  func.func @transform_7(%arg0: i32) -> (i32, i32) {
    %c0_i32 = arith.constant 0 : i32
    %c0_i32_0 = arith.constant 0 : i32
    return %arg0, %c0_i32 : i32, i32
  }
}

</mosaic_0001>

<bundles_post_ra>
// kernel: tpu_custom_call.1
= control target key start
LH: loop header
LB: loop body
LE: loop exit
PB: predicated region body
PF: predicated region fallthrough
CT: control target
= control target key end

     0   :  { %13 = vsyncpa [#allocation4], 0  ;;  %s8822_s0 = inlined_call_operand.vmem [shape: f32[128,784], index: 0, kind: input, shape index: {}]   ;;  %s8823_s1 = inlined_call_operand.vmem [shape: bf16[784,512], index: 1, kind: input, shape index: {}]   ;;  %s8824_s2 = inlined_call_operand.vmem [shape: f32[1,512], index: 2, kind: input, shape index: {}]   ;;  %s8825_s3 = inlined_call_operand.hbm [shape: bf16[512,256], index: 3, kind: input, shape index: {}]   ;;  %s8826_s4 = inlined_call_operand.vmem [shape: f32[1,256], index: 4, kind: input, shape index: {}]   ;;  %s8827_s5 = inlined_call_operand.vmem [shape: f32[1,256], index: 5, kind: input, shape index: {}]   ;;  %s8828_s6 = inlined_call_operand.<no memory space> [shape: f32[1,1], index: 6, kind: input, shape index: {}]   ;;  %s8829_s7 = inlined_call_operand.hbm [shape: f32[1,128], index: 7, kind: output, shape index: {}]  }
   0x1   :  { %14 = vsyncpa [#allocation5], 0  ;;  %s25_s26 = sshll.u32 %s8825_s3, 4  ;;  %s5778_s27 = smov [#allocation3]   ;;  %s26_s26 = int_to_ptr.hbm [resolvable:$true] %s25_s26 }
   0x2   :  { %s27_s28 = sshll.u32 %s5778_s27, 4  ;;  %s5779_s29 = smov 128   ;;  %s28_s28 = int_to_ptr.vmem [resolvable:$true] %s27_s28 }
   0x3   :  { %s5780_s30 = smov 8  }
   0x4   :  { %33 = dma.hbm_to_vmem [thread:$0]  %s26_s26, 8192, %s28_s28, [#allocation4], %s5779_s29, %s5779_s29, %s5780_s30  }
   0x5   :  { %5774 = dma.done.wait [#allocation4], 8192  }
   0x6   :  { %5775 = vsyncadd [#allocation4], 4294959104  ;;  %v4422_v0 = vld [vmem:[%s8823_s1 + $0xe0] sm:$0xf]  ;;  %v5426_v1 = vld [vmem:[%s8823_s1 + $0xec] sm:$0xf0] }
   0x7   :  { %v4550_v2 = vld [vmem:[%s8823_s1 + $0x1e0] sm:$0xf]  ;;  %v4423_v3 = vor.u32 %v5426_v1, %v4422_v0  ;;  %v5458_v4 = vld [vmem:[%s8823_s1 + $0x1ec] sm:$0xf0]  ;;  %vm1399_vm0 = vcmask 130048   ;;  %vm4231_vm8 = vcmask 130112  }
   0x8   :  { %v4678_v5 = vld [vmem:[%s8823_s1 + $0x2e0] sm:$0xf]  ;;  %v5490_v6 = vld [vmem:[%s8823_s1 + $0x2ec] sm:$0xf0]  ;;  %v4551_v7 = vor.u32 %v5458_v4, %v4550_v2  ;;  %vm4235_vm12 = vcmask 195712   ;;  %s4298_s25 = sshll.u32 %s8829_s7, 4  ;;  %s4299_s25 = int_to_ptr.hbm [resolvable:$true] %s4298_s25 }
   0x9   :  { %v4679_v8 = vor.u32 %v5490_v6, %v4678_v5  ;;  %v4806_v9 = vld [vmem:[%s8823_s1 + $0x3e0] sm:$0xf]  ;;  %v5522_v10 = vld [vmem:[%s8823_s1 + $0x3ec] sm:$0xf0]  ;;  %1424 = vmatpush.bf16.msra.mxu0 %v4423_v3 }
   0xa   :  { %v4406_v11 = vld [vmem:[%s8823_s1 + $0xc0] sm:$0xf]  ;;  %v4807_v12 = vor.u32 %v5522_v10, %v4806_v9  ;;  %v5422_v13 = vld [vmem:[%s8823_s1 + $0xcc] sm:$0xf0]  ;;  %1473 = vmatpush.bf16.msra.mxu1 %v4551_v7 }
   0xb   :  { %v4534_v14 = vld [vmem:[%s8823_s1 + $0x1c0] sm:$0xf]  ;;  %v5454_v15 = vld [vmem:[%s8823_s1 + $0x1cc] sm:$0xf0]  ;;  %1522 = vmatpush.bf16.msra.mxu2 %v4679_v8  ;;  %v4407_v16 = vor.u32 %v5422_v13, %v4406_v11 }
   0xc   :  { %v4535_v17 = vor.u32 %v5454_v15, %v4534_v14  ;;  %v4662_v18 = vld [vmem:[%s8823_s1 + $0x2c0] sm:$0xf]  ;;  %v5486_v19 = vld [vmem:[%s8823_s1 + $0x2cc] sm:$0xf0]  ;;  %1571 = vmatpush.bf16.msra.mxu3 %v4807_v12 }
   0xd   :  { %v4790_v20 = vld [vmem:[%s8823_s1 + $0x3c0] sm:$0xf]  ;;  %v4663_v21 = vor.u32 %v5486_v19, %v4662_v18  ;;  %v5518_v22 = vld [vmem:[%s8823_s1 + $0x3cc] sm:$0xf0]  ;;  %1425 = vmatpush.bf16.msra.mxu0 %v4407_v16 }
   0xe   :  { %v4390_v23 = vld [vmem:[%s8823_s1 + $0xa0] sm:$0xf]  ;;  %v5418_v24 = vld [vmem:[%s8823_s1 + $0xac] sm:$0xf0]  ;;  %v4791_v25 = vor.u32 %v5518_v22, %v4790_v20  ;;  %1474 = vmatpush.bf16.msra.mxu1 %v4535_v17 }
   0xf   :  { %v4518_v26 = vld [vmem:[%s8823_s1 + $0x1a0] sm:$0xf]  ;;  %v5450_v27 = vld [vmem:[%s8823_s1 + $0x1ac] sm:$0xf0]  ;;  %v4391_v29 = vor.u32 %v5418_v24, %v4390_v23  ;;  %1523 = vmatpush.bf16.msra.mxu2 %v4663_v21 }
  0x10   :  { %v4646_v28 = vld [vmem:[%s8823_s1 + $0x2a0] sm:$0xf]  ;;  %v5482_v30 = vld [vmem:[%s8823_s1 + $0x2ac] sm:$0xf0]  ;;  %v4519_v33 = vor.u32 %v5450_v27, %v4518_v26  ;;  %1572 = vmatpush.bf16.msra.mxu3 %v4791_v25 }
  0x11   :  { %v4774_v31 = vld [vmem:[%s8823_s1 + $0x3a0] sm:$0xf]  ;;  %v5514_v32 = vld [vmem:[%s8823_s1 + $0x3ac] sm:$0xf0]  ;;  %v4647_v34 = vor.u32 %v5482_v30, %v4646_v28  ;;  %1426 = vmatpush.bf16.msra.mxu0 %v4391_v29  ;;  %v52_v29 = vld [vmem:[%s8822_s0 + $0x38] sm:$0xff] }
  0x12   :  { %v4374_v35 = vld [vmem:[%s8823_s1 + $0x80] sm:$0xf]  ;;  %v5414_v36 = vld [vmem:[%s8823_s1 + $0x8c] sm:$0xf0]  ;;  %v4775_v38 = vor.u32 %v5514_v32, %v4774_v31  ;;  %1475 = vmatpush.bf16.msra.mxu1 %v4519_v33  ;;  %v46_v30 = vld [vmem:[%s8822_s0 + $0x8] sm:$0xff] }
  0x13   :  { %v4502_v37 = vld [vmem:[%s8823_s1 + $0x180] sm:$0xf]  ;;  %v5446_v39 = vld [vmem:[%s8823_s1 + $0x18c] sm:$0xf0]  ;;  %v4375_v44 = vor.u32 %v5414_v36, %v4374_v35  ;;  %1524 = vmatpush.bf16.msra.mxu2 %v4647_v34  ;;  %v5424_v35 = vld [vmem:[%s8823_s1 + $0xe4] sm:$0xf] }
  0x14   :  { %v4630_v40 = vld [vmem:[%s8823_s1 + $0x280] sm:$0xf]  ;;  %v5478_v41 = vld [vmem:[%s8823_s1 + $0x28c] sm:$0xf0]  ;;  %v4503_v45 = vor.u32 %v5446_v39, %v4502_v37  ;;  %1573 = vmatpush.bf16.msra.mxu3 %v4775_v38  ;;  %v4424_v36 = vld [vmem:[%s8823_s1 + $0xf0] sm:$0xf0] }
  0x15   :  { %v4758_v42 = vld [vmem:[%s8823_s1 + $0x380] sm:$0xf]  ;;  %v5510_v43 = vld [vmem:[%s8823_s1 + $0x38c] sm:$0xf0]  ;;  %v4631_v46 = vor.u32 %v5478_v41, %v4630_v40  ;;  %1427 = vmatpush.bf16.msra.mxu0 %v4375_v44  ;;  %v54_v40 = vld [vmem:[%s8822_s0 + $0x48] sm:$0xff] }
  0x16   :  { %v4358_v47 = vld [vmem:[%s8823_s1 + $0x60] sm:$0xf]  ;;  %v5410_v48 = vld [vmem:[%s8823_s1 + $0x6c] sm:$0xf0]  ;;  %v4759_v50 = vor.u32 %v5510_v43, %v4758_v42  ;;  %1476 = vmatpush.bf16.msra.mxu1 %v4503_v45  ;;  %v48_v41 = vld [vmem:[%s8822_s0 + $0x18] sm:$0xff] }
  0x17   :  { %v4486_v49 = vld [vmem:[%s8823_s1 + $0x160] sm:$0xf]  ;;  %v5442_v51 = vld [vmem:[%s8823_s1 + $0x16c] sm:$0xf0]  ;;  %v4359_v56 = vor.u32 %v5410_v48, %v4358_v47  ;;  %1525 = vmatpush.bf16.msra.mxu2 %v4631_v46  ;;  %v4427_v48 = vor.u32 %v5424_v35, %v4424_v36  ;;  %v82_v36 = vld [vmem:[%s8822_s0 + $0x128] sm:$0xff] }
  0x18   :  { %v4614_v52 = vld [vmem:[%s8823_s1 + $0x260] sm:$0xf]  ;;  %v5474_v53 = vld [vmem:[%s8823_s1 + $0x26c] sm:$0xf0]  ;;  %v4487_v57 = vor.u32 %v5442_v51, %v4486_v49  ;;  %1574 = vmatpush.bf16.msra.mxu3 %v4759_v50 }
  0x19   :  { %v4742_v54 = vld [vmem:[%s8823_s1 + $0x360] sm:$0xf]  ;;  %v5506_v55 = vld [vmem:[%s8823_s1 + $0x36c] sm:$0xf0]  ;;  %v4615_v58 = vor.u32 %v5474_v53, %v4614_v52  ;;  %1428 = vmatpush.bf16.msra.mxu0 %v4359_v56  ;;  %v5420_v53 = vld [vmem:[%s8823_s1 + $0xc4] sm:$0xf] }
  0x1a   :  { %v4342_v59 = vld [vmem:[%s8823_s1 + $0x40] sm:$0xf]  ;;  %v5406_v60 = vld [vmem:[%s8823_s1 + $0x4c] sm:$0xf0]  ;;  %v4743_v62 = vor.u32 %v5506_v55, %v4742_v54  ;;  %1477 = vmatpush.bf16.msra.mxu1 %v4487_v57  ;;  %v4408_v54 = vld [vmem:[%s8823_s1 + $0xd0] sm:$0xf0] }
  0x1b   :  { %v4470_v61 = vld [vmem:[%s8823_s1 + $0x140] sm:$0xf]  ;;  %v5438_v63 = vld [vmem:[%s8823_s1 + $0x14c] sm:$0xf0]  ;;  %v4343_v4 = vor.u32 %v5406_v60, %v4342_v59  ;;  %1526 = vmatpush.bf16.msra.mxu2 %v4615_v58  ;;  %v4411_v60 = vor.u32 %v5420_v53, %v4408_v54 }
  0x1c   :  { %v4598_v0 = vld [vmem:[%s8823_s1 + $0x240] sm:$0xf]  ;;  %v5470_v1 = vld [vmem:[%s8823_s1 + $0x24c] sm:$0xf0]  ;;  %v4471_v5 = vor.u32 %v5438_v63, %v4470_v61  ;;  %1575 = vmatpush.bf16.msra.mxu3 %v4743_v62 }
  0x1d   :  { %v4726_v2 = vld [vmem:[%s8823_s1 + $0x340] sm:$0xf]  ;;  %v5502_v3 = vld [vmem:[%s8823_s1 + $0x34c] sm:$0xf0]  ;;  %v4599_v6 = vor.u32 %v5470_v1, %v4598_v0  ;;  %1429 = vmatpush.bf16.msra.mxu0 %v4343_v4  ;;  %v5416_v0 = vld [vmem:[%s8823_s1 + $0xa4] sm:$0xf] }
  0x1e   :  { %v4326_v7 = vld [vmem:[%s8823_s1 + $0x20] sm:$0xf]  ;;  %v5402_v8 = vld [vmem:[%s8823_s1 + $0x2c] sm:$0xf0]  ;;  %v4727_v10 = vor.u32 %v5502_v3, %v4726_v2  ;;  %1478 = vmatpush.bf16.msra.mxu1 %v4471_v5  ;;  %v4392_v4 = vld [vmem:[%s8823_s1 + $0xb0] sm:$0xf0] }
  0x1f   :  { %v4454_v9 = vld [vmem:[%s8823_s1 + $0x120] sm:$0xf]  ;;  %v5434_v11 = vld [vmem:[%s8823_s1 + $0x12c] sm:$0xf0]  ;;  %v4327_v17 = vor.u32 %v5402_v8, %v4326_v7  ;;  %1527 = vmatpush.bf16.msra.mxu2 %v4599_v6  ;;  %v4395_v5 = vor.u32 %v5416_v0, %v4392_v4 }
  0x20   :  { %v4582_v12 = vld [vmem:[%s8823_s1 + $0x220] sm:$0xf]  ;;  %v5466_v13 = vld [vmem:[%s8823_s1 + $0x22c] sm:$0xf0]  ;;  %v4455_v21 = vor.u32 %v5434_v11, %v4454_v9  ;;  %1576 = vmatpush.bf16.msra.mxu3 %v4727_v10  ;;  %v66_v11 = vld [vmem:[%s8822_s0 + $0xa8] sm:$0xff] }
  0x21   :  { %v4710_v14 = vld [vmem:[%s8823_s1 + $0x320] sm:$0xf]  ;;  %v5498_v15 = vld [vmem:[%s8823_s1 + $0x32c] sm:$0xf0]  ;;  %v4583_v22 = vor.u32 %v5466_v13, %v4582_v12  ;;  %1430 = vmatpush.bf16.msra.mxu0 %v4327_v17  ;;  %v60_v12 = vld [vmem:[%s8822_s0 + $0x78] sm:$0xff] }
  0x22   :  { %v4310_v16 = vld [vmem:[%s8823_s1] sm:$0xf]  ;;  %v5398_v18 = vld [vmem:[%s8823_s1 + $0xc] sm:$0xf0]  ;;  %v4711_v26 = vor.u32 %v5498_v15, %v4710_v14  ;;  %1479 = vmatpush.bf16.msra.mxu1 %v4455_v21  ;;  %v68_v15 = vld [vmem:[%s8822_s0 + $0xb8] sm:$0xff] }
  0x23   :  { %v4438_v19 = vld [vmem:[%s8823_s1 + $0x100] sm:$0xf]  ;;  %v5430_v20 = vld [vmem:[%s8823_s1 + $0x10c] sm:$0xf0]  ;;  %v4311_v33 = vor.u32 %v5398_v18, %v4310_v16  ;;  %1528 = vmatpush.bf16.msra.mxu2 %v4583_v22  ;;  %v62_v16 = vld [vmem:[%s8822_s0 + $0x88] sm:$0xff] }
  0x24   :  { %v4566_v23 = vld [vmem:[%s8823_s1 + $0x200] sm:$0xf]  ;;  %v5462_v24 = vld [vmem:[%s8823_s1 + $0x20c] sm:$0xf0]  ;;  %v4439_v37 = vor.u32 %v5430_v20, %v4438_v19  ;;  %1577 = vmatpush.bf16.msra.mxu3 %v4711_v26  ;;  %v4376_v26 = vld [vmem:[%s8823_s1 + $0x90] sm:$0xf0] }
  0x25   :  { %v4694_v25 = vld [vmem:[%s8823_s1 + $0x300] sm:$0xf]  ;;  %v5494_v27 = vld [vmem:[%s8823_s1 + $0x30c] sm:$0xf0]  ;;  %v4567_v38 = vor.u32 %v5462_v24, %v4566_v23  ;;  %1431 = vmatpush.bf16.msra.mxu0 %v4311_v33  ;;  %v5412_v24 = vld [vmem:[%s8823_s1 + $0x84] sm:$0xf] }
  0x26   :  { %v45_v28 = vld [vmem:[%s8822_s0] sm:$0xff]  ;;  %v5590_v32 = vld [vmem:[%s8823_s1 + $0x60c] sm:$0xf0]  ;;  %v4695_v42 = vor.u32 %v5494_v27, %v4694_v25  ;;  %1480 = vmatpush.bf16.msra.mxu1 %v4439_v37  ;;  %v74_v33 = vld [vmem:[%s8822_s0 + $0xe8] sm:$0xff] }
  0x27   :  { %v5078_v31 = vld [vmem:[%s8823_s1 + $0x600] sm:$0xf]  ;;  %v47_v39 = vld [vmem:[%s8822_s0 + $0x10] sm:$0xff]  ;;  %v6059_v47 = vpack.c.bf16 %v52_v29, %v45_v28  ;;  %1529 = vmatpush.bf16.msra.mxu2 %v4567_v38  ;;  %v4379_v29 = vor.u32 %v5412_v24, %v4376_v26  ;;  %v76_v37 = vld [vmem:[%s8822_s0 + $0xf8] sm:$0xff] }
  0x28   :  { %v53_v34 = vld [vmem:[%s8822_s0 + $0x40] sm:$0xff]  ;;  %v55_v43 = vld [vmem:[%s8822_s0 + $0x50] sm:$0xff]  ;;  %v5079_v44 = vor.u32 %v5590_v32, %v5078_v31  ;;  %v6069_v52 = vpack.c.bf16 %v54_v40, %v47_v39  ;;  %1578 = vmatpush.bf16.msra.mxu3 %v4695_v42  ;;  %v80_v32 = vld [vmem:[%s8822_s0 + $0x118] sm:$0xff] }
  0x29   :  { %v4934_v45 = vld [vmem:[%s8823_s1 + $0x4e0] sm:$0xf]  ;;  %v5554_v46 = vld [vmem:[%s8823_s1 + $0x4ec] sm:$0xf0]  ;;  %8920 = vst [vmem:[#allocation9_spill] sm:$0xff] %v6059_v47  ;;  %v6067_v51 = vpack.c.bf16 %v53_v34, %v46_v30  ;;  %v6077_v55 = vpack.c.bf16 %v55_v43, %v48_v41  ;;  %1432 = vmatmul.bf16.vlgmr.msra.gmra.mxu0 %v6059_v47 }
  0x2a   :  { %v5062_v49 = vld [vmem:[%s8823_s1 + $0x5e0] sm:$0xf]  ;;  %v5586_v50 = vld [vmem:[%s8823_s1 + $0x5ec] sm:$0xf0]  ;;  %v4935_v56 = vor.u32 %v5554_v46, %v4934_v45  ;;  %1530 = vmatmul.bf16.vlgmr.msra.gmra.mxu2 %v6069_v52  ;;  %v5408_v45 = vld [vmem:[%s8823_s1 + $0x64] sm:$0xf] }
  0x2b   :  { %8921 = vst [vmem:[#allocation10_spill] sm:$0xff] %v6067_v51  ;;  %1725 = vmatpush.bf16.msrb.mxu2 %v5079_v44  ;;  %v5063_v57 = vor.u32 %v5586_v50, %v5062_v49  ;;  %v4918_v58 = vld [vmem:[%s8823_s1 + $0x4c0] sm:$0xf]  ;;  %v5550_v59 = vld [vmem:[%s8823_s1 + $0x4cc] sm:$0xf0]  ;;  %1481 = vmatmul.bf16.vlgmr.msra.gmra.mxu1 %v6067_v51 }
  0x2c   :  { %8922 = vst [vmem:[#allocation11_spill] sm:$0xff] %v6077_v55  ;;  %1767 = vmatpush.bf16.msrb.mxu3 %v4427_v48  ;;  %v5046_v61 = vld [vmem:[%s8823_s1 + $0x5c0] sm:$0xf]  ;;  %v5582_v62 = vld [vmem:[%s8823_s1 + $0x5cc] sm:$0xf0]  ;;  %1620 = vmatpush.bf16.msrb.mxu0 %v4935_v56  ;;  %v4919_v63 = vor.u32 %v5550_v59, %v4918_v58  ;;  %v88_v58 = vld [vmem:[%s8822_s0 + $0x158] sm:$0xff] }
  0x2d   :  { %1579 = vmatmul.bf16.vlgmr.msra.gmra.mxu3 %v6077_v55  ;;  %1669 = vmatpush.bf16.msrb.mxu1 %v5063_v57  ;;  %v5047_v1 = vor.u32 %v5582_v62, %v5046_v61  ;;  %v4902_v2 = vld [vmem:[%s8823_s1 + $0x4a0] sm:$0xf]  ;;  %v5546_v3 = vld [vmem:[%s8823_s1 + $0x4ac] sm:$0xf0]  ;;  %v4360_v48 = vld [vmem:[%s8823_s1 + $0x70] sm:$0xf0] }
  0x2e   :  { %v5030_v6 = vld [vmem:[%s8823_s1 + $0x5a0] sm:$0xf]  ;;  %v5578_v7 = vld [vmem:[%s8823_s1 + $0x5ac] sm:$0xf0]  ;;  %v4903_v8 = vor.u32 %v5546_v3, %v4902_v2  ;;  %v4363_v53 = vor.u32 %v5408_v45, %v4360_v48  ;;  %v94_v57 = vld [vmem:[%s8822_s0 + $0x188] sm:$0xff] }
  0x2f   :  { %v5031_v9 = vor.u32 %v5578_v7, %v5030_v6  ;;  %v59_v10 = vld [vmem:[%s8822_s0 + $0x70] sm:$0xff]  ;;  %v61_v14 = vld [vmem:[%s8822_s0 + $0x80] sm:$0xff]  ;;  %v96_v61 = vld [vmem:[%s8822_s0 + $0x198] sm:$0xff] }
  0x30   :  { %1768 = vmatpush.bf16.msrb.mxu3 %v4411_v60  ;;  %1621 = vmatpush.bf16.msrb.mxu0 %v4919_v63  ;;  %v67_v13 = vld [vmem:[%s8822_s0 + $0xb0] sm:$0xff]  ;;  %v69_v17 = vld [vmem:[%s8822_s0 + $0xc0] sm:$0xff]  ;;  %v6137_v18 = vpack.c.bf16 %v66_v11, %v59_v10  ;;  %v6141_v20 = vpack.c.bf16 %v68_v15, %v61_v14  ;;  %v90_v62 = vld [vmem:[%s8822_s0 + $0x168] sm:$0xff] }
  0x31   :  { %1670 = vmatpush.bf16.msrb.mxu1 %v5047_v1  ;;  %v6139_v19 = vpack.c.bf16 %v67_v13, %v60_v12  ;;  %v6143_v21 = vpack.c.bf16 %v69_v17, %v62_v16  ;;  %v4886_v22 = vld [vmem:[%s8823_s1 + $0x480] sm:$0xf]  ;;  %v5542_v23 = vld [vmem:[%s8823_s1 + $0x48c] sm:$0xf0]  ;;  %v5404_v6 = vld [vmem:[%s8823_s1 + $0x44] sm:$0xf] }
  0x32   :  { %8923 = vst [vmem:[#allocation12_spill] sm:$0xff] %v6137_v18  ;;  %v4887_v25 = vor.u32 %v5542_v23, %v4886_v22  ;;  %v5014_v27 = vld [vmem:[%s8823_s1 + $0x580] sm:$0xf]  ;;  %v5574_v28 = vld [vmem:[%s8823_s1 + $0x58c] sm:$0xf0]  ;;  %v108_v14 = vld [vmem:[%s8822_s0 + $0x1f8] sm:$0xff] }
  0x33   :  { %8924 = vst [vmem:[#allocation13_spill] sm:$0xff] %v6139_v19  ;;  %v5015_v30 = vor.u32 %v5574_v28, %v5014_v27  ;;  %v73_v31 = vld [vmem:[%s8822_s0 + $0xe0] sm:$0xff]  ;;  %v75_v35 = vld [vmem:[%s8822_s0 + $0xf0] sm:$0xff]  ;;  %v102_v15 = vld [vmem:[%s8822_s0 + $0x1c8] sm:$0xff] }
  0x34   :  { %1769 = vmatpush.bf16.msrb.mxu3 %v4395_v5  ;;  %1622 = vmatpush.bf16.msrb.mxu0 %v4903_v8  ;;  %v81_v34 = vld [vmem:[%s8822_s0 + $0x120] sm:$0xff]  ;;  %v83_v38 = vld [vmem:[%s8822_s0 + $0x130] sm:$0xff]  ;;  %v6191_v39 = vpack.c.bf16 %v80_v32, %v73_v31  ;;  %v6195_v41 = vpack.c.bf16 %v82_v36, %v75_v35  ;;  %v110_v22 = vld [vmem:[%s8822_s0 + $0x208] sm:$0xff] }
  0x35   :  { %1671 = vmatpush.bf16.msrb.mxu1 %v5031_v9  ;;  %v6193_v40 = vpack.c.bf16 %v81_v34, %v74_v33  ;;  %v6197_v42 = vpack.c.bf16 %v83_v38, %v76_v37  ;;  %v4870_v43 = vld [vmem:[%s8823_s1 + $0x460] sm:$0xf]  ;;  %v5538_v44 = vld [vmem:[%s8823_s1 + $0x46c] sm:$0xf0]  ;;  %v4344_v8 = vld [vmem:[%s8823_s1 + $0x50] sm:$0xf0] }
  0x36   :  { %8925 = vst [vmem:[#allocation14_spill] sm:$0xff] %v6191_v39  ;;  %v4871_v46 = vor.u32 %v5538_v44, %v4870_v43  ;;  %v4998_v49 = vld [vmem:[%s8823_s1 + $0x560] sm:$0xf]  ;;  %v5570_v50 = vld [vmem:[%s8823_s1 + $0x56c] sm:$0xf0]  ;;  %v4347_v11 = vor.u32 %v5404_v6, %v4344_v8  ;;  %v104_v23 = vld [vmem:[%s8822_s0 + $0x1d8] sm:$0xff] }
  0x37   :  { %8926 = vst [vmem:[#allocation15_spill] sm:$0xff] %v6193_v40  ;;  %v4999_v54 = vor.u32 %v5570_v50, %v4998_v49  ;;  %v87_v56 = vld [vmem:[%s8822_s0 + $0x150] sm:$0xff]  ;;  %v89_v60 = vld [vmem:[%s8822_s0 + $0x160] sm:$0xff]  ;;  %v122_v43 = vld [vmem:[%s8822_s0 + $0x268] sm:$0xff] }
  0x38   :  { %1623 = vmatpush.bf16.msrb.mxu0 %v4887_v25  ;;  %1770 = vmatpush.bf16.msrb.mxu3 %v4379_v29  ;;  %v95_v59 = vld [vmem:[%s8822_s0 + $0x190] sm:$0xff]  ;;  %v97_v63 = vld [vmem:[%s8822_s0 + $0x1a0] sm:$0xff]  ;;  %v6245_v0 = vpack.c.bf16 %v94_v57, %v87_v56  ;;  %v6249_v2 = vpack.c.bf16 %v96_v61, %v89_v60  ;;  %v116_v44 = vld [vmem:[%s8822_s0 + $0x238] sm:$0xff] }
  0x39   :  { %1437 = vmatmul.bf16.gmra.mxu0 %v6137_v18  ;;  %1672 = vmatpush.bf16.msrb.mxu1 %v5015_v30  ;;  %v6247_v1 = vpack.c.bf16 %v95_v59, %v88_v58  ;;  %v6251_v3 = vpack.c.bf16 %v97_v63, %v90_v62  ;;  %v4854_v4 = vld [vmem:[%s8823_s1 + $0x440] sm:$0xf]  ;;  %v5534_v5 = vld [vmem:[%s8823_s1 + $0x44c] sm:$0xf0]  ;;  %v5400_v31 = vld [vmem:[%s8823_s1 + $0x24] sm:$0xf] }
  0x3a   :  { %1535 = vmatmul.bf16.gmra.mxu2 %v6141_v20  ;;  %8927 = vst [vmem:[#allocation16_spill] sm:$0xff] %v6245_v0  ;;  %v4855_v7 = vor.u32 %v5534_v5, %v4854_v4  ;;  %v4982_v9 = vld [vmem:[%s8823_s1 + $0x540] sm:$0xf]  ;;  %v5566_v10 = vld [vmem:[%s8823_s1 + $0x54c] sm:$0xf0]  ;;  %v124_v48 = vld [vmem:[%s8822_s0 + $0x278] sm:$0xff] }
  0x3b   :  { %1486 = vmatmul.bf16.gmra.mxu1 %v6139_v19  ;;  %8928 = vst [vmem:[#allocation17_spill] sm:$0xff] %v6247_v1  ;;  %v4983_v12 = vor.u32 %v5566_v10, %v4982_v9  ;;  %v101_v13 = vld [vmem:[%s8822_s0 + $0x1c0] sm:$0xff]  ;;  %v103_v17 = vld [vmem:[%s8822_s0 + $0x1d0] sm:$0xff]  ;;  %v118_v49 = vld [vmem:[%s8822_s0 + $0x248] sm:$0xff] }
  0x3c   :  { %1624 = vmatpush.bf16.msrb.mxu0 %v4871_v46  ;;  %1771 = vmatpush.bf16.msrb.mxu3 %v4363_v53  ;;  %v109_v16 = vld [vmem:[%s8822_s0 + $0x200] sm:$0xff]  ;;  %v111_v24 = vld [vmem:[%s8822_s0 + $0x210] sm:$0xff]  ;;  %v6299_v25 = vpack.c.bf16 %v108_v14, %v101_v13  ;;  %v6303_v27 = vpack.c.bf16 %v110_v22, %v103_v17  ;;  %v136_v8 = vld [vmem:[%s8822_s0 + $0x2d8] sm:$0xff] }
  0x3d   :  { %1584 = vmatmul.bf16.gmra.mxu3 %v6143_v21  ;;  %1673 = vmatpush.bf16.msrb.mxu1 %v4999_v54  ;;  %v6301_v26 = vpack.c.bf16 %v109_v16, %v102_v15  ;;  %v6305_v28 = vpack.c.bf16 %v111_v24, %v104_v23  ;;  %v4838_v29 = vld [vmem:[%s8823_s1 + $0x420] sm:$0xf]  ;;  %v5530_v30 = vld [vmem:[%s8823_s1 + $0x42c] sm:$0xf0]  ;;  %v4328_v33 = vld [vmem:[%s8823_s1 + $0x30] sm:$0xf0] }
  0x3e   :  { %8929 = vst [vmem:[#allocation18_spill] sm:$0xff] %v6299_v25  ;;  %v4839_v32 = vor.u32 %v5530_v30, %v4838_v29  ;;  %v4966_v34 = vld [vmem:[%s8823_s1 + $0x520] sm:$0xf]  ;;  %v5562_v35 = vld [vmem:[%s8823_s1 + $0x52c] sm:$0xf0]  ;;  %v4331_v36 = vor.u32 %v5400_v31, %v4328_v33  ;;  %v130_v9 = vld [vmem:[%s8822_s0 + $0x2a8] sm:$0xff] }
  0x3f   :  { %8930 = vst [vmem:[#allocation19_spill] sm:$0xff] %v6301_v26  ;;  %v4967_v37 = vor.u32 %v5562_v35, %v4966_v34  ;;  %v115_v38 = vld [vmem:[%s8822_s0 + $0x230] sm:$0xff]  ;;  %v117_v46 = vld [vmem:[%s8822_s0 + $0x240] sm:$0xff]  ;;  %v132_v13 = vld [vmem:[%s8822_s0 + $0x2b8] sm:$0xff] }
  0x40   :  { %1625 = vmatpush.bf16.msrb.mxu0 %v4855_v7  ;;  %1772 = vmatpush.bf16.msrb.mxu3 %v4347_v11  ;;  %v123_v45 = vld [vmem:[%s8822_s0 + $0x270] sm:$0xff]  ;;  %v125_v50 = vld [vmem:[%s8822_s0 + $0x280] sm:$0xff]  ;;  %v6353_v53 = vpack.c.bf16 %v122_v43, %v115_v38  ;;  %v6357_v56 = vpack.c.bf16 %v124_v48, %v117_v46 }
  0x41   :  { %1674 = vmatpush.bf16.msrb.mxu1 %v4983_v12  ;;  %v6355_v54 = vpack.c.bf16 %v123_v45, %v116_v44  ;;  %v6359_v57 = vpack.c.bf16 %v125_v50, %v118_v49  ;;  %v4822_v58 = vld [vmem:[%s8823_s1 + $0x400] sm:$0xf]  ;;  %v5526_v59 = vld [vmem:[%s8823_s1 + $0x40c] sm:$0xf0]  ;;  %v5396_v60 = vld [vmem:[%s8823_s1 + $0x4] sm:$0xf] }
  0x42   :  { %8931 = vst [vmem:[#allocation20_spill] sm:$0xff] %v6353_v53  ;;  %v4823_v61 = vor.u32 %v5526_v59, %v4822_v58  ;;  %v4312_v62 = vld [vmem:[%s8823_s1 + $0x10] sm:$0xf0]  ;;  %v4950_v63 = vld [vmem:[%s8823_s1 + $0x500] sm:$0xf]  ;;  %v138_v12 = vld [vmem:[%s8822_s0 + $0x2e8] sm:$0xff] }
  0x43   :  { %8932 = vst [vmem:[#allocation21_spill] sm:$0xff] %v6355_v54  ;;  %v5558_v4 = vld [vmem:[%s8823_s1 + $0x50c] sm:$0xf0]  ;;  %v4315_v5 = vor.u32 %v5396_v60, %v4312_v62  ;;  %v129_v7 = vld [vmem:[%s8822_s0 + $0x2a0] sm:$0xff]  ;;  %v4808_v24 = vld [vmem:[%s8823_s1 + $0x3f0] sm:$0xf0] }
  0x44   :  { %1626 = vmatpush.bf16.msrb.mxu0 %v4839_v32  ;;  %1773 = vmatpush.bf16.msrb.mxu3 %v4331_v36  ;;  %v4951_v6 = vor.u32 %v5558_v4, %v4950_v63  ;;  %v137_v10 = vld [vmem:[%s8822_s0 + $0x2e0] sm:$0xff]  ;;  %v131_v11 = vld [vmem:[%s8822_s0 + $0x2b0] sm:$0xff]  ;;  %v6407_v15 = vpack.c.bf16 %v136_v8, %v129_v7  ;;  %v150_v44 = vld [vmem:[%s8822_s0 + $0x348] sm:$0xff] }
  0x45   :  { %1675 = vmatpush.bf16.msrb.mxu1 %v4967_v37  ;;  %v139_v14 = vld [vmem:[%s8822_s0 + $0x2f0] sm:$0xff]  ;;  %v6409_v16 = vpack.c.bf16 %v137_v10, %v130_v9  ;;  %v6411_v17 = vpack.c.bf16 %v138_v12, %v131_v11  ;;  %v5520_v23 = vld [vmem:[%s8823_s1 + $0x3e4] sm:$0xf]  ;;  %v144_v45 = vld [vmem:[%s8822_s0 + $0x318] sm:$0xff] }
  0x46   :  { %8933 = vst [vmem:[#allocation22_spill] sm:$0xff] %v6407_v15  ;;  %v6413_v22 = vpack.c.bf16 %v139_v14, %v132_v13  ;;  %v5456_v29 = vld [vmem:[%s8823_s1 + $0x1e4] sm:$0xf]  ;;  %v4811_v30 = vor.u32 %v5520_v23, %v4808_v24  ;;  %v4552_v31 = vld [vmem:[%s8823_s1 + $0x1f0] sm:$0xf0]  ;;  %v152_v49 = vld [vmem:[%s8822_s0 + $0x358] sm:$0xff] }
  0x47   :  { %8934 = vst [vmem:[#allocation23_spill] sm:$0xff] %v6409_v16  ;;  %v5552_v32 = vld [vmem:[%s8823_s1 + $0x4e4] sm:$0xf]  ;;  %v4936_v33 = vld [vmem:[%s8823_s1 + $0x4f0] sm:$0xf0]  ;;  %v4555_v34 = vor.u32 %v5456_v29, %v4552_v31  ;;  %v146_v50 = vld [vmem:[%s8822_s0 + $0x328] sm:$0xff] }
  0x48   :  { %1627 = vmatpush.bf16.msrb.mxu0 %v4823_v61  ;;  %1774 = vmatpush.bf16.msrb.mxu3 %v4315_v5  ;;  %v4939_v35 = vor.u32 %v5552_v32, %v4936_v33  ;;  %v5488_v36 = vld [vmem:[%s8823_s1 + $0x2e4] sm:$0xf]  ;;  %v4680_v37 = vld [vmem:[%s8823_s1 + $0x2f0] sm:$0xf0]  ;;  %v409_v12 = vld [vmem:[%s8824_s2] sm:$0xf] }
  0x49   :  { %1442 = vmatmul.bf16.gmra.mxu0 %v6191_v39  ;;  %1676 = vmatpush.bf16.msrb.mxu1 %v4951_v6  ;;  %v4683_v38 = vor.u32 %v5488_v36, %v4680_v37  ;;  %v143_v43 = vld [vmem:[%s8822_s0 + $0x310] sm:$0xff]  ;;  %v145_v48 = vld [vmem:[%s8822_s0 + $0x320] sm:$0xff]  ;;  %v56_v29 = vld [vmem:[%s8822_s0 + $0x58] sm:$0xff]  ;;  %v6515_v31 = vperm.slane %v409_v12, 0 }
  0x4a   :  { %1540 = vmatmul.bf16.gmra.mxu2 %v6195_v41  ;;  %v151_v46 = vld [vmem:[%s8822_s0 + $0x350] sm:$0xff]  ;;  %v153_v58 = vld [vmem:[%s8822_s0 + $0x360] sm:$0xff]  ;;  %v6467_v59 = vpack.c.bf16 %v150_v44, %v143_v43  ;;  %v6471_v61 = vpack.c.bf16 %v152_v49, %v145_v48 }
  0x4b   :  { %1491 = vmatmul.bf16.gmra.mxu1 %v6193_v40  ;;  %1914 = vmatpush.bf16.msra.mxu2 %v4811_v30  ;;  %v6469_v60 = vpack.c.bf16 %v151_v46, %v144_v45  ;;  %v6473_v62 = vpack.c.bf16 %v153_v58, %v146_v50  ;;  %v5516_v63 = vld [vmem:[%s8823_s1 + $0x3c4] sm:$0xf]  ;;  %v4792_v4 = vld [vmem:[%s8823_s1 + $0x3d0] sm:$0xf0]  ;;  %v50_v30 = vld [vmem:[%s8822_s0 + $0x28] sm:$0xff] }
  0x4c   :  { %1816 = vmatpush.bf16.msra.mxu0 %v4555_v34  ;;  %1963 = vmatpush.bf16.msra.mxu3 %v4939_v35  ;;  %8935 = vst [vmem:[#allocation24_spill] sm:$0xff] %v6467_v59  ;;  %v5452_v5 = vld [vmem:[%s8823_s1 + $0x1c4] sm:$0xf]  ;;  %v4795_v6 = vor.u32 %v5516_v63, %v4792_v4  ;;  %v4536_v7 = vld [vmem:[%s8823_s1 + $0x1d0] sm:$0xf0]  ;;  %v58_v34 = vld [vmem:[%s8822_s0 + $0x68] sm:$0xff] }
  0x4d   :  { %1589 = vmatmul.bf16.gmra.mxu3 %v6197_v42  ;;  %1865 = vmatpush.bf16.msra.mxu1 %v4683_v38  ;;  %8936 = vst [vmem:[#allocation25_spill] sm:$0xff] %v6469_v60  ;;  %v5548_v8 = vld [vmem:[%s8823_s1 + $0x4c4] sm:$0xf]  ;;  %v4920_v9 = vld [vmem:[%s8823_s1 + $0x4d0] sm:$0xf0]  ;;  %v4539_v10 = vor.u32 %v5452_v5, %v4536_v7 }
  0x4e   :  { %8937 = vst [vmem:[#allocation26_spill] sm:$0xff] %v6471_v61  ;;  %v4923_v11 = vor.u32 %v5548_v8, %v4920_v9  ;;  %v5484_v13 = vld [vmem:[%s8823_s1 + $0x2c4] sm:$0xf]  ;;  %v4664_v14 = vld [vmem:[%s8823_s1 + $0x2d0] sm:$0xf0] }
  0x4f   :  { %8938 = vst [vmem:[#allocation27_spill] sm:$0xff] %v6473_v62  ;;  %1915 = vmatpush.bf16.msra.mxu2 %v4795_v6  ;;  %v4667_v23 = vor.u32 %v5484_v13, %v4664_v14  ;;  %v49_v24 = vld [vmem:[%s8822_s0 + $0x20] sm:$0xff]  ;;  %v51_v33 = vld [vmem:[%s8822_s0 + $0x30] sm:$0xff] }
  0x50   :  { %1817 = vmatpush.bf16.msra.mxu0 %v4539_v10  ;;  %1964 = vmatpush.bf16.msra.mxu3 %v4923_v11  ;;  %v57_v32 = vld [vmem:[%s8822_s0 + $0x60] sm:$0xff]  ;;  %v6526_v35 = vpack.c.bf16 %v56_v29, %v49_v24  ;;  %v6530_v38 = vpack.c.bf16 %v58_v34, %v51_v33  ;;  %v4776_v48 = vld [vmem:[%s8823_s1 + $0x3b0] sm:$0xf0]  ;;  %v64_v33 = vld [vmem:[%s8822_s0 + $0x98] sm:$0xff] }
  0x51   :  { %1866 = vmatpush.bf16.msra.mxu1 %v4667_v23  ;;  %v6528_v37 = vpack.c.bf16 %v57_v32, %v50_v30  ;;  %v5512_v46 = vld [vmem:[%s8823_s1 + $0x3a4] sm:$0xf]  ;;  %v4520_v58 = vld [vmem:[%s8823_s1 + $0x1b0] sm:$0xf0]  ;;  %v70_v32 = vld [vmem:[%s8822_s0 + $0xc8] sm:$0xff] }
  0x52   :  { %8939 = vst [vmem:[#allocation28_spill] sm:$0xff] %v6526_v35  ;;  %v5448_v49 = vld [vmem:[%s8823_s1 + $0x1a4] sm:$0xf]  ;;  %v4779_v50 = vor.u32 %v5512_v46, %v4776_v48  ;;  %v4904_v4 = vld [vmem:[%s8823_s1 + $0x4b0] sm:$0xf0] }
  0x53   :  { %8940 = vst [vmem:[#allocation29_spill] sm:$0xff] %v6528_v37  ;;  %v5544_v63 = vld [vmem:[%s8823_s1 + $0x4a4] sm:$0xf]  ;;  %v4523_v6 = vor.u32 %v5448_v49, %v4520_v58  ;;  %v4648_v23 = vld [vmem:[%s8823_s1 + $0x2b0] sm:$0xf0] }
  0x54   :  { %8941 = vst [vmem:[#allocation30_spill] sm:$0xff] %v6530_v38  ;;  %v4907_v7 = vor.u32 %v5544_v63, %v4904_v4  ;;  %1916 = vmatpush.bf16.msra.mxu2 %v4779_v50  ;;  %v5480_v14 = vld [vmem:[%s8823_s1 + $0x2a4] sm:$0xf]  ;;  %v63_v30 = vld [vmem:[%s8822_s0 + $0x90] sm:$0xff] }
  0x55   :  { %1818 = vmatpush.bf16.msra.mxu0 %v4523_v6  ;;  %v4651_v29 = vor.u32 %v5480_v14, %v4648_v23  ;;  %v71_v34 = vld [vmem:[%s8822_s0 + $0xd0] sm:$0xff] }
  0x56   :  { %1965 = vmatpush.bf16.msra.mxu3 %v4907_v7  ;;  %v6585_v50 = vpack.c.bf16 %v71_v34, %v64_v33  ;;  %v5508_v7 = vld [vmem:[%s8823_s1 + $0x384] sm:$0xf]  ;;  %v4888_v14 = vld [vmem:[%s8823_s1 + $0x490] sm:$0xf0] }
  0x57   :  { %1867 = vmatpush.bf16.msra.mxu1 %v4651_v29 }
  0x58   :  { %8942 = vst [vmem:[#allocation31_spill] sm:$0xff] %v6585_v50 }
  0x59   :  { %1447 = vmatmul.bf16.gmra.mxu0 %v6245_v0 }
  0x5a   :  { %1545 = vmatmul.bf16.gmra.mxu2 %v6249_v2 }
  0x5b   :  { %1496 = vmatmul.bf16.gmra.mxu1 %v6247_v1 }
  0x5d   :  { %1594 = vmatmul.bf16.gmra.mxu3 %v6251_v3 }
  0x69   :  { %1452 = vmatmul.bf16.gmra.mxu0 %v6299_v25 }
  0x6a   :  { %1550 = vmatmul.bf16.gmra.mxu2 %v6303_v27 }
  0x6b   :  { %1501 = vmatmul.bf16.gmra.mxu1 %v6301_v26 }
  0x6d   :  { %1599 = vmatmul.bf16.gmra.mxu3 %v6305_v28 }
  0x79   :  { %1457 = vmatmul.bf16.gmra.mxu0 %v6353_v53 }
  0x7a   :  { %1555 = vmatmul.bf16.gmra.mxu2 %v6357_v56 }
  0x7b   :  { %1506 = vmatmul.bf16.gmra.mxu1 %v6355_v54 }
  0x7d   :  { %1604 = vmatmul.bf16.gmra.mxu3 %v6359_v57 }
  0x89   :  { %1462 = vmatmul.bf16.gmra.mxu0 %v6407_v15 }
  0x8a   :  { %1560 = vmatmul.bf16.gmra.mxu2 %v6411_v17 }
  0x8b   :  { %1511 = vmatmul.bf16.gmra.mxu1 %v6409_v16 }
  0x8d   :  { %1609 = vmatmul.bf16.gmra.mxu3 %v6413_v22 }
  0x99   :  { %1467 = vmatmul.bf16.gmra.mxu0 %v6467_v59 }
  0x9a   :  { %1565 = vmatmul.bf16.gmra.mxu2 %v6471_v61 }
  0x9b   :  { %1516 = vmatmul.bf16.gmra.mxu1 %v6469_v60 }
  0x9d   :  { %1614 = vmatmul.bf16.gmra.mxu3 %v6473_v62 }
  0xa6   :  { %v1433_v36 = vpop.f32.mrf.mxu0 }
  0xa7   :  { %v1434_v43 = vadd.f32 %v1433_v36, %v6515_v31  ;;  %v65_v36 = vld [vmem:[%s8822_s0 + $0xa0] sm:$0xff] }
  0xa8   :  { %v1482_v44 = vpop.f32.mrf.mxu1 }
  0xa9   :  { %v1483_v45 = vadd.f32 %v1482_v44, %v1434_v43  ;;  %1628 = vmatmul.bf16.vlgmr.msrb.gmra.mxu0 %v6526_v35  ;;  %v72_v43 = vld [vmem:[%s8822_s0 + $0xd8] sm:$0xff] }
  0xaa   :  { %5092 = vmatmul.msk.bf16.vlgmr.msrb.gmra.mxu2 %vm1399_vm0, %v6530_v38  ;;  %v6587_v58 = vpack.c.bf16 %v72_v43, %v65_v36 }
  0xab   :  { %1677 = vmatmul.bf16.vlgmr.msrb.gmra.mxu1 %v6528_v37 }
  0xac   :  { %8943 = vst [vmem:[#allocation32_spill] sm:$0xff] %v6587_v58 }
  0xad   :  { %1775 = vmatmul.bf16.vlgmr.msrb.gmra.mxu3 %v6059_v47  ;;  %v1531_v5 = vpop.f32.mrf.mxu2 }
  0xae   :  { %v1532_v8 = vadd.f32 %v1531_v5, %v1483_v45  ;;  %v1435_v10 = vpop.f32.mrf.mxu0  ;;  %v6583_v45 = vpack.c.bf16 %v70_v32, %v63_v30 }
  0xaf   :  { %v1436_v11 = vadd.f32 %v1435_v10, %v6515_v31 }
  0xb0   :  { %v1580_v9 = vpop.f32.mrf.mxu3  ;;  %v1484_v12 = vpop.f32.mrf.mxu1 }
  0xb1   :  { %v6557_v13 = vadd.f32 %v1580_v9, %v1532_v8  ;;  %v1485_v24 = vadd.f32 %v1484_v12, %v1436_v11  ;;  %v4760_v8 = vld [vmem:[%s8823_s1 + $0x390] sm:$0xf0]  ;;  %v5444_v9 = vld [vmem:[%s8823_s1 + $0x184] sm:$0xf] }
  0xb2   :  { %v4763_v10 = vor.u32 %v5508_v7, %v4760_v8  ;;  %v4504_v11 = vld [vmem:[%s8823_s1 + $0x190] sm:$0xf0]  ;;  %v5540_v12 = vld [vmem:[%s8823_s1 + $0x484] sm:$0xf] }
  0xb3   :  { %v4891_v29 = vor.u32 %v5540_v12, %v4888_v14  ;;  %v85_v7 = vld [vmem:[%s8822_s0 + $0x140] sm:$0xff]  ;;  %v79_v8 = vld [vmem:[%s8822_s0 + $0x110] sm:$0xff] }
  0xb4   :  { %1917 = vmatpush.bf16.msra.mxu2 %v4763_v10 }
  0xb5   :  { %v1533_v44 = vpop.f32.mrf.mxu2  ;;  %1966 = vmatpush.bf16.msra.mxu3 %v4891_v29 }
  0xb6   :  { %v1534_v46 = vadd.f32 %v1533_v44, %v1485_v24  ;;  %v1438_v49 = vpop.f32.mrf.mxu0  ;;  %v4507_v24 = vor.u32 %v5444_v9, %v4504_v11  ;;  %v5476_v44 = vld [vmem:[%s8823_s1 + $0x284] sm:$0xf]  ;;  %v86_v9 = vld [vmem:[%s8822_s0 + $0x148] sm:$0xff] }
  0xb7   :  { %v1439_v63 = vadd.f32 %v1438_v49, %v6515_v31  ;;  %v6646_v29 = vpack.c.bf16 %v86_v9, %v79_v8 }
  0xb8   :  { %v1582_v48 = vpop.f32.mrf.mxu3  ;;  %v1487_v4 = vpop.f32.mrf.mxu1  ;;  %1819 = vmatpush.bf16.msra.mxu0 %v4507_v24 }
  0xb9   :  { %v6590_v5 = vadd.f32 %v1582_v48, %v1534_v46  ;;  %v1488_v6 = vadd.f32 %v1487_v4, %v1439_v63  ;;  %1633 = vmatmul.bf16.gmra.mxu0 %v6583_v45  ;;  %v4632_v46 = vld [vmem:[%s8823_s1 + $0x290] sm:$0xf0]  ;;  %v77_v63 = vld [vmem:[%s8822_s0 + $0x100] sm:$0xff]  ;;  %v84_v4 = vld [vmem:[%s8822_s0 + $0x138] sm:$0xff]  ;;  %8946 = vst [vmem:[#allocation35_spill] sm:$0xff] %v6646_v29 }
  0xba   :  { %5093 = vmatmul.msk.bf16.gmra.mxu2 %vm1399_vm0, %v6587_v58  ;;  %v4635_v49 = vor.u32 %v5476_v44, %v4632_v46  ;;  %v6642_v11 = vpack.c.bf16 %v84_v4, %v77_v63  ;;  %v4744_v44 = vld [vmem:[%s8823_s1 + $0x370] sm:$0xf0]  ;;  %v5440_v46 = vld [vmem:[%s8823_s1 + $0x164] sm:$0xf] }
  0xbb   :  { %1682 = vmatmul.bf16.gmra.mxu1 %v6585_v50  ;;  %v5536_v63 = vld [vmem:[%s8823_s1 + $0x464] sm:$0xf]  ;;  %v4872_v4 = vld [vmem:[%s8823_s1 + $0x470] sm:$0xf0] }
  0xbc   :  { %1868 = vmatpush.bf16.msra.mxu1 %v4635_v49  ;;  %8944 = vst [vmem:[#allocation33_spill] sm:$0xff] %v6642_v11  ;;  %v4488_v49 = vld [vmem:[%s8823_s1 + $0x170] sm:$0xf0]  ;;  %v4875_v8 = vor.u32 %v5536_v63, %v4872_v4  ;;  %v93_v4 = vld [vmem:[%s8822_s0 + $0x180] sm:$0xff] }
  0xbd   :  { %1780 = vmatmul.bf16.gmra.mxu3 %v6137_v18  ;;  %v1536_v23 = vpop.f32.mrf.mxu2  ;;  %v99_v63 = vld [vmem:[%s8822_s0 + $0x1b0] sm:$0xff] }
  0xbe   :  { %v1537_v30 = vadd.f32 %v1536_v23, %v1488_v6  ;;  %v1440_v33 = vpop.f32.mrf.mxu0  ;;  %v78_v6 = vld [vmem:[%s8822_s0 + $0x108] sm:$0xff]  ;;  %1967 = vmatpush.bf16.msra.mxu3 %v4875_v8 }
  0xbf   :  { %v1441_v34 = vadd.f32 %v1440_v33, %v6515_v31  ;;  %v6644_v24 = vpack.c.bf16 %v85_v7, %v78_v6  ;;  %v4491_v7 = vor.u32 %v5440_v46, %v4488_v49  ;;  %v91_v46 = vld [vmem:[%s8822_s0 + $0x170] sm:$0xff]  ;;  %v92_v49 = vld [vmem:[%s8822_s0 + $0x178] sm:$0xff] }
  0xc0   :  { %v1585_v32 = vpop.f32.mrf.mxu3  ;;  %v1489_v36 = vpop.f32.mrf.mxu1 }
  0xc1   :  { %v6616_v43 = vadd.f32 %v1585_v32, %v1537_v30  ;;  %v1490_v48 = vadd.f32 %v1489_v36, %v1441_v34  ;;  %8945 = vst [vmem:[#allocation34_spill] sm:$0xff] %v6644_v24  ;;  %v5504_v36 = vld [vmem:[%s8823_s1 + $0x364] sm:$0xf]  ;;  %1820 = vmatpush.bf16.msra.mxu0 %v4491_v7 }
  0xc5   :  { %v1538_v10 = vpop.f32.mrf.mxu2 }
  0xc6   :  { %v1539_v12 = vadd.f32 %v1538_v10, %v1490_v48  ;;  %v1443_v23 = vpop.f32.mrf.mxu0  ;;  %v4747_v48 = vor.u32 %v5504_v36, %v4744_v44  ;;  %v4616_v36 = vld [vmem:[%s8823_s1 + $0x270] sm:$0xf0] }
  0xc7   :  { %v1444_v30 = vadd.f32 %v1443_v23, %v6515_v31 }
  0xc8   :  { %v1587_v14 = vpop.f32.mrf.mxu3  ;;  %v1492_v32 = vpop.f32.mrf.mxu1  ;;  %1918 = vmatpush.bf16.msra.mxu2 %v4747_v48  ;;  %v98_v48 = vld [vmem:[%s8822_s0 + $0x1a8] sm:$0xff] }
  0xc9   :  { %v6649_v33 = vadd.f32 %v1587_v14, %v1539_v12  ;;  %v1493_v34 = vadd.f32 %v1492_v32, %v1444_v30  ;;  %1638 = vmatmul.bf16.gmra.mxu0 %v6642_v11  ;;  %v5472_v32 = vld [vmem:[%s8823_s1 + $0x264] sm:$0xf]  ;;  %v6701_v8 = vpack.c.bf16 %v98_v48, %v91_v46 }
  0xca   :  { %5094 = vmatmul.msk.bf16.gmra.mxu2 %vm1399_vm0, %v6646_v29  ;;  %v5436_v46 = vld [vmem:[%s8823_s1 + $0x144] sm:$0xf] }
  0xcb   :  { %1687 = vmatmul.bf16.gmra.mxu1 %v6644_v24 }
  0xcd   :  { %1785 = vmatmul.bf16.gmra.mxu3 %v6191_v39  ;;  %v1541_v6 = vpop.f32.mrf.mxu2 }
  0xce   :  { %v1542_v9 = vadd.f32 %v1541_v6, %v1493_v34  ;;  %v1445_v12 = vpop.f32.mrf.mxu0  ;;  %v4619_v34 = vor.u32 %v5472_v32, %v4616_v36  ;;  %v100_v6 = vld [vmem:[%s8822_s0 + $0x1b8] sm:$0xff] }
  0xcf   :  { %v1446_v14 = vadd.f32 %v1445_v12, %v6515_v31 }
  0xd0   :  { %v1590_v10 = vpop.f32.mrf.mxu3  ;;  %v1494_v23 = vpop.f32.mrf.mxu1  ;;  %1869 = vmatpush.bf16.msra.mxu1 %v4619_v34  ;;  %v4728_v34 = vld [vmem:[%s8823_s1 + $0x350] sm:$0xf0] }
  0xd1   :  { %v6675_v30 = vadd.f32 %v1590_v10, %v1542_v9  ;;  %v1495_v44 = vadd.f32 %v1494_v23, %v1446_v14  ;;  %v6703_v14 = vpack.c.bf16 %v99_v63, %v92_v49  ;;  %v6705_v23 = vpack.c.bf16 %v100_v6, %v93_v4  ;;  %v4472_v49 = vld [vmem:[%s8823_s1 + $0x150] sm:$0xf0]  ;;  %v5532_v63 = vld [vmem:[%s8823_s1 + $0x444] sm:$0xf] }
  0xd2   :  { %v4856_v4 = vld [vmem:[%s8823_s1 + $0x450] sm:$0xf0] }
  0xd3   :  { %8947 = vst [vmem:[#allocation36_spill] sm:$0xff] %v6703_v14 }
  0xd4   :  { %8948 = vst [vmem:[#allocation37_spill] sm:$0xff] %v6705_v23 }
  0xd5   :  { %v1543_v7 = vpop.f32.mrf.mxu2 }
  0xd6   :  { %v1544_v9 = vadd.f32 %v1543_v7, %v1495_v44  ;;  %v1448_v12 = vpop.f32.mrf.mxu0  ;;  %v5500_v44 = vld [vmem:[%s8823_s1 + $0x344] sm:$0xf]  ;;  %v4475_v7 = vor.u32 %v5436_v46, %v4472_v49  ;;  %v4600_v46 = vld [vmem:[%s8823_s1 + $0x250] sm:$0xf0] }
  0xd7   :  { %v1449_v32 = vadd.f32 %v1448_v12, %v6515_v31  ;;  %v4731_v48 = vor.u32 %v5500_v44, %v4728_v34 }
  0xd8   :  { %v1592_v10 = vpop.f32.mrf.mxu3  ;;  %v1497_v36 = vpop.f32.mrf.mxu1  ;;  %1821 = vmatpush.bf16.msra.mxu0 %v4475_v7  ;;  %v114_v7 = vld [vmem:[%s8822_s0 + $0x228] sm:$0xff] }
  0xd9   :  { %v6708_v39 = vadd.f32 %v1592_v10, %v1544_v9  ;;  %v1498_v29 = vadd.f32 %v1497_v36, %v1449_v32  ;;  %1643 = vmatmul.bf16.gmra.mxu0 %v6701_v8  ;;  %v4859_v9 = vor.u32 %v5532_v63, %v4856_v4  ;;  %1919 = vmatpush.bf16.msra.mxu2 %v4731_v48  ;;  %v105_v48 = vld [vmem:[%s8822_s0 + $0x1e0] sm:$0xff]  ;;  %v112_v63 = vld [vmem:[%s8822_s0 + $0x218] sm:$0xff]  ;;  %v106_v4 = vld [vmem:[%s8822_s0 + $0x1e8] sm:$0xff] }
  0xda   :  { %5095 = vmatmul.msk.bf16.gmra.mxu2 %vm1399_vm0, %v6705_v23 }
  0xdb   :  { %1692 = vmatmul.bf16.gmra.mxu1 %v6703_v14  ;;  %1968 = vmatpush.bf16.msra.mxu3 %v4859_v9 }
  0xdd   :  { %1790 = vmatmul.bf16.gmra.mxu3 %v6245_v0  ;;  %v1546_v6 = vpop.f32.mrf.mxu2  ;;  %v5468_v0 = vld [vmem:[%s8823_s1 + $0x244] sm:$0xf] }
  0xde   :  { %v1547_v10 = vadd.f32 %v1546_v6, %v1498_v29  ;;  %v1450_v32 = vpop.f32.mrf.mxu0  ;;  %v4603_v29 = vor.u32 %v5468_v0, %v4600_v46  ;;  %v113_v6 = vld [vmem:[%s8822_s0 + $0x220] sm:$0xff]  ;;  %v107_v0 = vld [vmem:[%s8822_s0 + $0x1f0] sm:$0xff] }
  0xdf   :  { %v1451_v36 = vadd.f32 %v1450_v32, %v6515_v31  ;;  %v6764_v46 = vpack.c.bf16 %v114_v7, %v107_v0 }
  0xe0   :  { %v1595_v12 = vpop.f32.mrf.mxu3  ;;  %v1499_v44 = vpop.f32.mrf.mxu1  ;;  %1870 = vmatpush.bf16.msra.mxu1 %v4603_v29  ;;  %v4712_v29 = vld [vmem:[%s8823_s1 + $0x330] sm:$0xf0] }
  0xe1   :  { %v6734_v34 = vadd.f32 %v1595_v12, %v1547_v10  ;;  %v1500_v49 = vadd.f32 %v1499_v44, %v1451_v36  ;;  %v6760_v10 = vpack.c.bf16 %v112_v63, %v105_v48  ;;  %v6762_v44 = vpack.c.bf16 %v113_v6, %v106_v4  ;;  %8950 = vst [vmem:[#allocation39_spill] sm:$0xff] %v6764_v46  ;;  %v4456_v48 = vld [vmem:[%s8823_s1 + $0x130] sm:$0xf0]  ;;  %v5528_v63 = vld [vmem:[%s8823_s1 + $0x424] sm:$0xf] }
  0xe2   :  { %v4840_v4 = vld [vmem:[%s8823_s1 + $0x430] sm:$0xf0] }
  0xe3   :  { %8949 = vst [vmem:[#allocation38_spill] sm:$0xff] %v6762_v44  ;;  %v4843_v7 = vor.u32 %v5528_v63, %v4840_v4  ;;  %v126_v63 = vld [vmem:[%s8822_s0 + $0x288] sm:$0xff]  ;;  %v120_v4 = vld [vmem:[%s8822_s0 + $0x258] sm:$0xff] }
  0xe5   :  { %v1548_v9 = vpop.f32.mrf.mxu2  ;;  %1969 = vmatpush.bf16.msra.mxu3 %v4843_v7 }
  0xe6   :  { %v1549_v12 = vadd.f32 %v1548_v9, %v1500_v49  ;;  %v1453_v36 = vpop.f32.mrf.mxu0  ;;  %v5496_v49 = vld [vmem:[%s8823_s1 + $0x324] sm:$0xf] }
  0xe7   :  { %v1454_v23 = vadd.f32 %v1453_v36, %v6515_v31 }
  0xe8   :  { %v1597_v32 = vpop.f32.mrf.mxu3  ;;  %v1502_v14 = vpop.f32.mrf.mxu1 }
  0xe9   :  { %v6767_v24 = vadd.f32 %v1597_v32, %v1549_v12  ;;  %v1503_v18 = vadd.f32 %v1502_v14, %v1454_v23  ;;  %1648 = vmatmul.bf16.gmra.mxu0 %v6760_v10  ;;  %v5432_v14 = vld [vmem:[%s8823_s1 + $0x124] sm:$0xf]  ;;  %v4715_v23 = vor.u32 %v5496_v49, %v4712_v29 }
  0xea   :  { %5096 = vmatmul.msk.bf16.gmra.mxu2 %vm1399_vm0, %v6764_v46  ;;  %v4459_v0 = vor.u32 %v5432_v14, %v4456_v48  ;;  %v4584_v14 = vld [vmem:[%s8823_s1 + $0x230] sm:$0xf0] }
  0xeb   :  { %1697 = vmatmul.bf16.gmra.mxu1 %v6762_v44  ;;  %1920 = vmatpush.bf16.msra.mxu2 %v4715_v23  ;;  %v119_v23 = vld [vmem:[%s8822_s0 + $0x250] sm:$0xff] }
  0xec   :  { %1822 = vmatpush.bf16.msra.mxu0 %v4459_v0  ;;  %v128_v0 = vld [vmem:[%s8822_s0 + $0x298] sm:$0xff] }
  0xed   :  { %1795 = vmatmul.bf16.gmra.mxu3 %v6299_v25  ;;  %v1551_v6 = vpop.f32.mrf.mxu2  ;;  %v5464_v25 = vld [vmem:[%s8823_s1 + $0x224] sm:$0xf] }
  0xee   :  { %v1552_v9 = vadd.f32 %v1551_v6, %v1503_v18  ;;  %v1455_v32 = vpop.f32.mrf.mxu0  ;;  %v4587_v18 = vor.u32 %v5464_v25, %v4584_v14  ;;  %v127_v6 = vld [vmem:[%s8822_s0 + $0x290] sm:$0xff]  ;;  %v121_v25 = vld [vmem:[%s8822_s0 + $0x260] sm:$0xff] }
  0xef   :  { %v1456_v36 = vadd.f32 %v1455_v32, %v6515_v31  ;;  %v6823_v14 = vpack.c.bf16 %v128_v0, %v121_v25 }
  0xf0   :  { %v1600_v12 = vpop.f32.mrf.mxu3  ;;  %v1504_v49 = vpop.f32.mrf.mxu1  ;;  %1871 = vmatpush.bf16.msra.mxu1 %v4587_v18  ;;  %v4696_v18 = vld [vmem:[%s8823_s1 + $0x310] sm:$0xf0] }
  0xf1   :  { %v6793_v29 = vadd.f32 %v1600_v12, %v1552_v9  ;;  %v1505_v48 = vadd.f32 %v1504_v49, %v1456_v36  ;;  %v6819_v9 = vpack.c.bf16 %v126_v63, %v119_v23  ;;  %v6821_v49 = vpack.c.bf16 %v127_v6, %v120_v4  ;;  %8952 = vst [vmem:[#allocation41_spill] sm:$0xff] %v6823_v14  ;;  %v4440_v23 = vld [vmem:[%s8823_s1 + $0x110] sm:$0xf0]  ;;  %v5524_v63 = vld [vmem:[%s8823_s1 + $0x404] sm:$0xf] }
  0xf2   :  { %v4824_v4 = vld [vmem:[%s8823_s1 + $0x410] sm:$0xf0] }
  0xf3   :  { %8951 = vst [vmem:[#allocation40_spill] sm:$0xff] %v6821_v49  ;;  %v4827_v0 = vor.u32 %v5524_v63, %v4824_v4  ;;  %v140_v63 = vld [vmem:[%s8822_s0 + $0x2f8] sm:$0xff]  ;;  %v134_v4 = vld [vmem:[%s8822_s0 + $0x2c8] sm:$0xff] }
  0xf5   :  { %v1553_v7 = vpop.f32.mrf.mxu2  ;;  %1970 = vmatpush.bf16.msra.mxu3 %v4827_v0 }
  0xf6   :  { %v1554_v12 = vadd.f32 %v1553_v7, %v1505_v48  ;;  %v1458_v36 = vpop.f32.mrf.mxu0  ;;  %v5492_v48 = vld [vmem:[%s8823_s1 + $0x304] sm:$0xf] }
  0xf7   :  { %v1459_v46 = vadd.f32 %v1458_v36, %v6515_v31 }
  0xf8   :  { %v1602_v32 = vpop.f32.mrf.mxu3  ;;  %v1507_v44 = vpop.f32.mrf.mxu1 }
  0xf9   :  { %v6826_v58 = vadd.f32 %v1602_v32, %v1554_v12  ;;  %v1508_v50 = vadd.f32 %v1507_v44, %v1459_v46  ;;  %1653 = vmatmul.bf16.gmra.mxu0 %v6819_v9  ;;  %v5428_v44 = vld [vmem:[%s8823_s1 + $0x104] sm:$0xf]  ;;  %v4699_v46 = vor.u32 %v5492_v48, %v4696_v18 }
  0xfa   :  { %5097 = vmatmul.msk.bf16.gmra.mxu2 %vm1399_vm0, %v6823_v14  ;;  %v4443_v25 = vor.u32 %v5428_v44, %v4440_v23  ;;  %v4568_v44 = vld [vmem:[%s8823_s1 + $0x210] sm:$0xf0] }
  0xfb   :  { %1702 = vmatmul.bf16.gmra.mxu1 %v6821_v49  ;;  %1921 = vmatpush.bf16.msra.mxu2 %v4699_v46  ;;  %v133_v46 = vld [vmem:[%s8822_s0 + $0x2c0] sm:$0xff] }
  0xfc   :  { %1823 = vmatpush.bf16.msra.mxu0 %v4443_v25  ;;  %v142_v25 = vld [vmem:[%s8822_s0 + $0x308] sm:$0xff] }
  0xfd   :  { %1800 = vmatmul.bf16.gmra.mxu3 %v6353_v53  ;;  %v1556_v6 = vpop.f32.mrf.mxu2  ;;  %v5460_v53 = vld [vmem:[%s8823_s1 + $0x204] sm:$0xf] }
  0xfe   :  { %v1557_v7 = vadd.f32 %v1556_v6, %v1508_v50  ;;  %v1460_v32 = vpop.f32.mrf.mxu0  ;;  %v4571_v50 = vor.u32 %v5460_v53, %v4568_v44  ;;  %v141_v6 = vld [vmem:[%s8822_s0 + $0x300] sm:$0xff]  ;;  %v135_v53 = vld [vmem:[%s8822_s0 + $0x2d0] sm:$0xff] }
  0xff   :  { %v1461_v36 = vadd.f32 %v1460_v32, %v6515_v31  ;;  %v6882_v44 = vpack.c.bf16 %v142_v25, %v135_v53 }
 0x100   :  { %v1605_v12 = vpop.f32.mrf.mxu3  ;;  %v1509_v48 = vpop.f32.mrf.mxu1  ;;  %1872 = vmatpush.bf16.msra.mxu1 %v4571_v50  ;;  %v5427_v50 = vld [vmem:[%s8823_s1 + $0xf4] sm:$0xf0] }
 0x101   :  { %v6852_v18 = vadd.f32 %v1605_v12, %v1557_v7  ;;  %v1510_v23 = vadd.f32 %v1509_v48, %v1461_v36  ;;  %v6878_v7 = vpack.c.bf16 %v140_v63, %v133_v46  ;;  %v6880_v48 = vpack.c.bf16 %v141_v6, %v134_v4  ;;  %8955 = vst [vmem:[#allocation44_spill] sm:$0xff] %v6882_v44  ;;  %v5064_v46 = vld [vmem:[%s8823_s1 + $0x5f0] sm:$0xf0]  ;;  %v4558_v63 = vld [vmem:[%s8823_s1 + $0x1e8] sm:$0xf] }
 0x102   :  { %v5459_v4 = vld [vmem:[%s8823_s1 + $0x1f4] sm:$0xf0] }
 0x103   :  { %8953 = vst [vmem:[#allocation42_spill] sm:$0xff] %v6878_v7  ;;  %v4559_v25 = vor.u32 %v5459_v4, %v4558_v63  ;;  %v155_v63 = vld [vmem:[%s8822_s0 + $0x370] sm:$0xff]  ;;  %v149_v4 = vld [vmem:[%s8822_s0 + $0x340] sm:$0xff] }
 0x104   :  { %8954 = vst [vmem:[#allocation43_spill] sm:$0xff] %v6880_v48 }
 0x105   :  { %v1558_v0 = vpop.f32.mrf.mxu2  ;;  %2159 = vmatpush.bf16.msrb.mxu3 %v4559_v25 }
 0x106   :  { %v1559_v12 = vadd.f32 %v1558_v0, %v1510_v23  ;;  %v1463_v36 = vpop.f32.mrf.mxu0  ;;  %v4430_v23 = vld [vmem:[%s8823_s1 + $0xe8] sm:$0xf] }
 0x107   :  { %v1464_v14 = vadd.f32 %v1463_v36, %v6515_v31 }
 0x108   :  { %v1607_v32 = vpop.f32.mrf.mxu3  ;;  %v1512_v49 = vpop.f32.mrf.mxu1 }
 0x109   :  { %v6885_v47 = vadd.f32 %v1607_v32, %v1559_v12  ;;  %v1513_v38 = vadd.f32 %v1512_v49, %v1464_v14  ;;  %1658 = vmatmul.bf16.gmra.mxu0 %v6878_v7  ;;  %v5584_v49 = vld [vmem:[%s8823_s1 + $0x5e4] sm:$0xf]  ;;  %v4431_v14 = vor.u32 %v5427_v50, %v4430_v23 }
 0x10a   :  { %5098 = vmatmul.msk.bf16.gmra.mxu2 %vm1399_vm0, %v6882_v44  ;;  %v5067_v53 = vor.u32 %v5584_v49, %v5064_v46  ;;  %v147_v44 = vld [vmem:[%s8822_s0 + $0x330] sm:$0xff]  ;;  %v154_v49 = vld [vmem:[%s8822_s0 + $0x368] sm:$0xff] }
 0x10b   :  { %1707 = vmatmul.bf16.gmra.mxu1 %v6880_v48  ;;  %2110 = vmatpush.bf16.msrb.mxu2 %v4431_v14  ;;  %v5588_v14 = vld [vmem:[%s8823_s1 + $0x604] sm:$0xf]  ;;  %v5080_v46 = vld [vmem:[%s8823_s1 + $0x610] sm:$0xf0] }
 0x10c   :  { %2012 = vmatpush.bf16.msrb.mxu0 %v5067_v53  ;;  %v5083_v53 = vor.u32 %v5588_v14, %v5080_v46  ;;  %v4542_v14 = vld [vmem:[%s8823_s1 + $0x1c8] sm:$0xf]  ;;  %v5455_v46 = vld [vmem:[%s8823_s1 + $0x1d4] sm:$0xf0] }
 0x10d   :  { %1805 = vmatmul.bf16.gmra.mxu3 %v6407_v15  ;;  %v1561_v6 = vpop.f32.mrf.mxu2 }
 0x10e   :  { %v1562_v0 = vadd.f32 %v1561_v6, %v1513_v38  ;;  %v1465_v32 = vpop.f32.mrf.mxu0  ;;  %v148_v38 = vld [vmem:[%s8822_s0 + $0x338] sm:$0xff]  ;;  %2068 = vmatpush.bf16.msrb.mxu1 %v5083_v53 }
 0x10f   :  { %v1466_v36 = vadd.f32 %v1465_v32, %v6515_v31  ;;  %v156_v6 = vld [vmem:[%s8822_s0 + $0x378] sm:$0xff] }
 0x110   :  { %v1610_v12 = vpop.f32.mrf.mxu3  ;;  %v1514_v23 = vpop.f32.mrf.mxu1  ;;  %v6941_v48 = vpack.c.bf16 %v156_v6, %v149_v4 }
 0x111   :  { %v6911_v50 = vadd.f32 %v1610_v12, %v1562_v0  ;;  %v1515_v15 = vadd.f32 %v1514_v23, %v1466_v36  ;;  %v6937_v0 = vpack.c.bf16 %v154_v49, %v147_v44  ;;  %v6939_v23 = vpack.c.bf16 %v155_v63, %v148_v38  ;;  %v5423_v44 = vld [vmem:[%s8823_s1 + $0xd4] sm:$0xf0]  ;;  %v5048_v38 = vld [vmem:[%s8823_s1 + $0x5d0] sm:$0xf0] }
 0x112   :  { %8958 = vst [vmem:[#allocation47_spill] sm:$0xff] %v6941_v48 }
 0x113   :  { %8956 = vst [vmem:[#allocation45_spill] sm:$0xff] %v6937_v0 }
 0x114   :  { %8957 = vst [vmem:[#allocation46_spill] sm:$0xff] %v6939_v23 }
 0x115   :  { %v1563_v25 = vpop.f32.mrf.mxu2 }
 0x116   :  { %v1564_v12 = vadd.f32 %v1563_v25, %v1515_v15  ;;  %v1468_v36 = vpop.f32.mrf.mxu0  ;;  %v4414_v15 = vld [vmem:[%s8823_s1 + $0xc8] sm:$0xf]  ;;  %v4543_v25 = vor.u32 %v5455_v46, %v4542_v14 }
 0x117   :  { %v1469_v37 = vadd.f32 %v1468_v36, %v6515_v31  ;;  %v4415_v49 = vor.u32 %v5423_v44, %v4414_v15 }
 0x118   :  { %v1612_v32 = vpop.f32.mrf.mxu3  ;;  %v1517_v62 = vpop.f32.mrf.mxu1  ;;  %2160 = vmatpush.bf16.msrb.mxu3 %v4543_v25 }
 0x119   :  { %v6944_v61 = vadd.f32 %v1612_v32, %v1564_v12  ;;  %v1518_v60 = vadd.f32 %v1517_v62, %v1469_v37  ;;  %1663 = vmatmul.bf16.gmra.mxu0 %v6937_v0  ;;  %v5580_v62 = vld [vmem:[%s8823_s1 + $0x5c4] sm:$0xf]  ;;  %2111 = vmatpush.bf16.msrb.mxu2 %v4415_v49  ;;  %v5451_v49 = vld [vmem:[%s8823_s1 + $0x1b4] sm:$0xf0] }
 0x11a   :  { %5099 = vmatmul.msk.bf16.gmra.mxu2 %vm1399_vm0, %v6941_v48  ;;  %v5051_v53 = vor.u32 %v5580_v62, %v5048_v38 }
 0x11b   :  { %1712 = vmatmul.bf16.gmra.mxu1 %v6939_v23 }
 0x11c   :  { %2013 = vmatpush.bf16.msrb.mxu0 %v5051_v53 }
 0x11d   :  { %1810 = vmatmul.bf16.gmra.mxu3 %v6467_v59  ;;  %v1566_v37 = vpop.f32.mrf.mxu2 }
 0x11e   :  { %v1567_v63 = vadd.f32 %v1566_v37, %v1518_v60  ;;  %v1470_v6 = vpop.f32.mrf.mxu0 }
 0x11f   :  { %v1471_v12 = vadd.f32 %v1470_v6, %v6515_v31  ;;  %v4398_v31 = vld [vmem:[%s8823_s1 + $0xa8] sm:$0xf] }
 0x120   :  { %v1615_v4 = vpop.f32.mrf.mxu3  ;;  %v1519_v32 = vpop.f32.mrf.mxu1 }
 0x121   :  { %v6970_v36 = vadd.f32 %v1615_v4, %v1567_v63  ;;  %v1520_v15 = vadd.f32 %v1519_v32, %v1471_v12 }
 0x125   :  { %v1568_v44 = vpop.f32.mrf.mxu2 }
 0x126   :  { %v1569_v59 = vadd.f32 %v1568_v44, %v1520_v15  ;;  %v1629_v23 = vpop.f32.mrf.mxu0 }
 0x127   :  { %v1630_v0 = vadd.f32 %v1629_v23, %v6557_v13  ;;  %v5419_v13 = vld [vmem:[%s8823_s1 + $0xb4] sm:$0xf0]  ;;  %v4526_v23 = vld [vmem:[%s8823_s1 + $0x1a8] sm:$0xf] }
 0x128   :  { %v1617_v48 = vpop.f32.mrf.mxu3  ;;  %v1678_v60 = vpop.f32.mrf.mxu1  ;;  %v4527_v46 = vor.u32 %v5451_v49, %v4526_v23  ;;  %v5572_v49 = vld [vmem:[%s8823_s1 + $0x584] sm:$0xf] }
 0x129   :  { %v6973_v37 = vadd.f32 %v1617_v48, %v1569_v59  ;;  %v1679_v62 = vadd.f32 %v1678_v60, %v1630_v0  ;;  %1824 = vmatmul.bf16.vlgmr.msra.gmra.mxu0 %v6067_v51  ;;  %v5576_v59 = vld [vmem:[%s8823_s1 + $0x5a4] sm:$0xf]  ;;  %v4399_v48 = vor.u32 %v5419_v13, %v4398_v31  ;;  %v5032_v0 = vld [vmem:[%s8823_s1 + $0x5b0] sm:$0xf0] }
 0x12a   :  { %1922 = vmatmul.bf16.vlgmr.msra.gmra.mxu2 %v6077_v55  ;;  %v5035_v14 = vor.u32 %v5576_v59, %v5032_v0  ;;  %2161 = vmatpush.bf16.msrb.mxu3 %v4527_v46  ;;  %v5016_v46 = vld [vmem:[%s8823_s1 + $0x590] sm:$0xf0] }
 0x12b   :  { %1873 = vmatmul.bf16.vlgmr.msra.gmra.mxu1 %v6069_v52  ;;  %2112 = vmatpush.bf16.msrb.mxu2 %v4399_v48 }
 0x12c   :  { %2014 = vmatpush.bf16.msrb.mxu0 %v5035_v14 }
 0x12d   :  { %1971 = vmatmul.bf16.vlgmr.msra.gmra.mxu3 %v6526_v35  ;;  %v1727_v38 = vpop.f32.mrf.mxu2 }
 0x12e   :  { %v1728_v63 = vadd.f32 %v1727_v38, %v1679_v62  ;;  %v1631_v6 = vpop.f32.mrf.mxu0 }
 0x12f   :  { %v1632_v53 = vadd.f32 %v1631_v6, %v6590_v5  ;;  %v4382_v5 = vld [vmem:[%s8823_s1 + $0x88] sm:$0xf]  ;;  %v5447_v6 = vld [vmem:[%s8823_s1 + $0x194] sm:$0xf0] }
 0x130   :  { %v6997_v4 = vpop.f32.mrf.mxu3  ;;  %v1680_v25 = vpop.f32.mrf.mxu1  ;;  %v2796_v15 = vmul.f32 0.2, %v1728_v63 }
 0x131   :  { %v1681_v12 = vadd.f32 %v1680_v25, %v1632_v53  ;;  %v5019_v25 = vor.u32 %v5572_v49, %v5016_v46 }
 0x132   :  { %v2860_v48 = vmax.f32 %v1728_v63, %v2796_v15  ;;  %v4510_v63 = vld [vmem:[%s8823_s1 + $0x188] sm:$0xf] }
 0x133   :  { %2015 = vmatpush.bf16.msrb.mxu0 %v5019_v25 }
 0x135   :  { %v1729_v32 = vpop.f32.mrf.mxu2 }
 0x136   :  { %v1730_v44 = vadd.f32 %v1729_v32, %v1681_v12  ;;  %v1634_v31 = vpop.f32.mrf.mxu0  ;;  %v4511_v12 = vor.u32 %v5447_v6, %v4510_v63 }
 0x137   :  { %v1635_v13 = vadd.f32 %v1634_v31, %v6616_v43  ;;  %v5415_v43 = vld [vmem:[%s8823_s1 + $0x94] sm:$0xf0] }
 0x138   :  { %v7000_v60 = vpop.f32.mrf.mxu3  ;;  %v1683_v59 = vpop.f32.mrf.mxu1  ;;  %v2800_v62 = vmul.f32 0.2, %v1730_v44  ;;  %v4383_v14 = vor.u32 %v5415_v43, %v4382_v5  ;;  %2162 = vmatpush.bf16.msrb.mxu3 %v4511_v12  ;;  %v5000_v12 = vld [vmem:[%s8823_s1 + $0x570] sm:$0xf0] }
 0x139   :  { %v1684_v0 = vadd.f32 %v1683_v59, %v1635_v13  ;;  %1829 = vmatmul.bf16.gmra.mxu0 %v6139_v19 }
 0x13a   :  { %v2864_v23 = vmax.f32 %v1730_v44, %v2800_v62  ;;  %1927 = vmatmul.bf16.gmra.mxu2 %v6143_v21 }
 0x13b   :  { %1878 = vmatmul.bf16.gmra.mxu1 %v6141_v20  ;;  %2113 = vmatpush.bf16.msrb.mxu2 %v4383_v14 }
 0x13c   :  { %v7016_v38 = vpack.c.bf16 %v2864_v23, %v2860_v48 }
 0x13d   :  { %1976 = vmatmul.bf16.gmra.mxu3 %v6583_v45  ;;  %v1732_v53 = vpop.f32.mrf.mxu2 }
 0x13e   :  { %8959 = vst [vmem:[#allocation48_spill] sm:$0xff] %v7016_v38  ;;  %v1733_v32 = vadd.f32 %v1732_v53, %v1684_v0  ;;  %v1636_v44 = vpop.f32.mrf.mxu0  ;;  %v5568_v53 = vld [vmem:[%s8823_s1 + $0x564] sm:$0xf] }
 0x13f   :  { %v1637_v31 = vadd.f32 %v1636_v44, %v6649_v33  ;;  %v4366_v33 = vld [vmem:[%s8823_s1 + $0x68] sm:$0xf]  ;;  %v5443_v44 = vld [vmem:[%s8823_s1 + $0x174] sm:$0xf0] }
 0x140   :  { %v7027_v15 = vpop.f32.mrf.mxu3  ;;  %v1685_v13 = vpop.f32.mrf.mxu1  ;;  %v2804_v48 = vmul.f32 0.2, %v1733_v32 }
 0x141   :  { %v1686_v59 = vadd.f32 %v1685_v13, %v1637_v31 }
 0x142   :  { %v2868_v14 = vmax.f32 %v1733_v32, %v2804_v48  ;;  %v4494_v32 = vld [vmem:[%s8823_s1 + $0x168] sm:$0xf] }
 0x145   :  { %v1734_v62 = vpop.f32.mrf.mxu2 }
 0x146   :  { %v1735_v23 = vadd.f32 %v1734_v62, %v1686_v59  ;;  %v1639_v43 = vpop.f32.mrf.mxu0  ;;  %v5003_v59 = vor.u32 %v5568_v53, %v5000_v12  ;;  %v4495_v62 = vor.u32 %v5443_v44, %v4494_v32  ;;  %v5564_v44 = vld [vmem:[%s8823_s1 + $0x544] sm:$0xf] }
 0x147   :  { %v1640_v49 = vadd.f32 %v1639_v43, %v6675_v30  ;;  %v5411_v30 = vld [vmem:[%s8823_s1 + $0x74] sm:$0xf0] }
 0x148   :  { %v7030_v5 = vpop.f32.mrf.mxu3  ;;  %v1688_v46 = vpop.f32.mrf.mxu1  ;;  %v2808_v0 = vmul.f32 0.2, %v1735_v23  ;;  %v4367_v25 = vor.u32 %v5411_v30, %v4366_v33  ;;  %2016 = vmatpush.bf16.msrb.mxu0 %v5003_v59  ;;  %2163 = vmatpush.bf16.msrb.mxu3 %v4495_v62  ;;  %v4478_v59 = vld [vmem:[%s8823_s1 + $0x148] sm:$0xf]  ;;  %v5439_v62 = vld [vmem:[%s8823_s1 + $0x154] sm:$0xf0] }
 0x149   :  { %v1689_v63 = vadd.f32 %v1688_v46, %v1640_v49  ;;  %1834 = vmatmul.bf16.gmra.mxu0 %v6193_v40 }
 0x14a   :  { %v2872_v6 = vmax.f32 %v1735_v23, %v2808_v0  ;;  %1932 = vmatmul.bf16.gmra.mxu2 %v6197_v42 }
 0x14b   :  { %1883 = vmatmul.bf16.gmra.mxu1 %v6195_v41  ;;  %2114 = vmatpush.bf16.msrb.mxu2 %v4367_v25 }
 0x14c   :  { %v7055_v31 = vpack.c.bf16 %v2872_v6, %v2868_v14 }
 0x14d   :  { %1981 = vmatmul.bf16.gmra.mxu3 %v6642_v11  ;;  %v1737_v13 = vpop.f32.mrf.mxu2 }
 0x14e   :  { %8960 = vst [vmem:[#allocation49_spill] sm:$0xff] %v7055_v31  ;;  %v1738_v48 = vadd.f32 %v1737_v13, %v1689_v63  ;;  %v1641_v43 = vpop.f32.mrf.mxu0 }
 0x14f   :  { %v1642_v49 = vadd.f32 %v1641_v43, %v6708_v39  ;;  %v4350_v39 = vld [vmem:[%s8823_s1 + $0x48] sm:$0xf] }
 0x150   :  { %v7057_v23 = vpop.f32.mrf.mxu3  ;;  %v1690_v46 = vpop.f32.mrf.mxu1  ;;  %v2812_v30 = vmul.f32 0.2, %v1738_v48 }
 0x151   :  { %v1691_v0 = vadd.f32 %v1690_v46, %v1642_v49  ;;  %v4479_v46 = vor.u32 %v5439_v62, %v4478_v59  ;;  %v5560_v62 = vld [vmem:[%s8823_s1 + $0x524] sm:$0xf] }
 0x152   :  { %v2876_v25 = vmax.f32 %v1738_v48, %v2812_v30 }
 0x153   :  { %2164 = vmatpush.bf16.msrb.mxu3 %v4479_v46  ;;  %v4462_v46 = vld [vmem:[%s8823_s1 + $0x128] sm:$0xf] }
 0x155   :  { %v1739_v33 = vpop.f32.mrf.mxu2 }
 0x156   :  { %v1740_v38 = vadd.f32 %v1739_v33, %v1691_v0  ;;  %v1644_v14 = vpop.f32.mrf.mxu0 }
 0x157   :  { %v1645_v6 = vadd.f32 %v1644_v14, %v6734_v34  ;;  %v5407_v34 = vld [vmem:[%s8823_s1 + $0x54] sm:$0xf0] }
 0x158   :  { %v7060_v11 = vpop.f32.mrf.mxu3  ;;  %v1693_v53 = vpop.f32.mrf.mxu1  ;;  %v2816_v63 = vmul.f32 0.2, %v1740_v38  ;;  %v4351_v13 = vor.u32 %v5407_v34, %v4350_v39 }
 0x159   :  { %v1694_v12 = vadd.f32 %v1693_v53, %v1645_v6  ;;  %1839 = vmatmul.bf16.gmra.mxu0 %v6247_v1 }
 0x15a   :  { %v2880_v32 = vmax.f32 %v1740_v38, %v2816_v63  ;;  %1937 = vmatmul.bf16.gmra.mxu2 %v6251_v3  ;;  %v4984_v38 = vld [vmem:[%s8823_s1 + $0x550] sm:$0xf0] }
 0x15b   :  { %1888 = vmatmul.bf16.gmra.mxu1 %v6249_v2  ;;  %v4987_v49 = vor.u32 %v5564_v44, %v4984_v38  ;;  %2115 = vmatpush.bf16.msrb.mxu2 %v4351_v13 }
 0x15c   :  { %v7085_v48 = vpack.c.bf16 %v2880_v32, %v2876_v25 }
 0x15d   :  { %1986 = vmatmul.bf16.gmra.mxu3 %v6701_v8  ;;  %v1742_v43 = vpop.f32.mrf.mxu2  ;;  %2017 = vmatpush.bf16.msrb.mxu0 %v4987_v49  ;;  %v4968_v49 = vld [vmem:[%s8823_s1 + $0x530] sm:$0xf0] }
 0x15e   :  { %8961 = vst [vmem:[#allocation50_spill] sm:$0xff] %v7085_v48  ;;  %v1743_v0 = vadd.f32 %v1742_v43, %v1694_v12  ;;  %v1646_v30 = vpop.f32.mrf.mxu0 }
 0x15f   :  { %v1647_v14 = vadd.f32 %v1646_v30, %v6767_v24  ;;  %v4334_v24 = vld [vmem:[%s8823_s1 + $0x28] sm:$0xf] }
 0x160   :  { %v7087_v33 = vpop.f32.mrf.mxu3  ;;  %v1695_v6 = vpop.f32.mrf.mxu1  ;;  %v2820_v39 = vmul.f32 0.2, %v1743_v0 }
 0x161   :  { %v1696_v53 = vadd.f32 %v1695_v6, %v1647_v14  ;;  %v4971_v6 = vor.u32 %v5560_v62, %v4968_v49 }
 0x162   :  { %v2884_v13 = vmax.f32 %v1743_v0, %v2820_v39  ;;  %v5435_v0 = vld [vmem:[%s8823_s1 + $0x134] sm:$0xf0] }
 0x163   :  { %2018 = vmatpush.bf16.msrb.mxu0 %v4971_v6  ;;  %v4952_v6 = vld [vmem:[%s8823_s1 + $0x510] sm:$0xf0] }
 0x165   :  { %v1744_v63 = vpop.f32.mrf.mxu2 }
 0x166   :  { %v1745_v34 = vadd.f32 %v1744_v63, %v1696_v53  ;;  %v1649_v25 = vpop.f32.mrf.mxu0  ;;  %v4463_v53 = vor.u32 %v5435_v0, %v4462_v46  ;;  %v5556_v0 = vld [vmem:[%s8823_s1 + $0x504] sm:$0xf] }
 0x167   :  { %v1650_v32 = vadd.f32 %v1649_v25, %v6793_v29  ;;  %v5403_v29 = vld [vmem:[%s8823_s1 + $0x34] sm:$0xf0] }
 0x168   :  { %v7090_v31 = vpop.f32.mrf.mxu3  ;;  %v1698_v44 = vpop.f32.mrf.mxu1  ;;  %v2824_v12 = vmul.f32 0.2, %v1745_v34  ;;  %v4335_v43 = vor.u32 %v5403_v29, %v4334_v24  ;;  %2165 = vmatpush.bf16.msrb.mxu3 %v4463_v53  ;;  %v4446_v53 = vld [vmem:[%s8823_s1 + $0x108] sm:$0xf] }
 0x169   :  { %v1699_v38 = vadd.f32 %v1698_v44, %v1650_v32  ;;  %1844 = vmatmul.bf16.gmra.mxu0 %v6301_v26 }
 0x16a   :  { %v2888_v59 = vmax.f32 %v1745_v34, %v2824_v12  ;;  %1942 = vmatmul.bf16.gmra.mxu2 %v6305_v28 }
 0x16b   :  { %1893 = vmatmul.bf16.gmra.mxu1 %v6303_v27  ;;  %2116 = vmatpush.bf16.msrb.mxu2 %v4335_v43 }
 0x16c   :  { %v7115_v30 = vpack.c.bf16 %v2888_v59, %v2884_v13 }
 0x16d   :  { %1991 = vmatmul.bf16.gmra.mxu3 %v6760_v10  ;;  %v1747_v14 = vpop.f32.mrf.mxu2 }
 0x16e   :  { %8962 = vst [vmem:[#allocation51_spill] sm:$0xff] %v7115_v30  ;;  %v1748_v63 = vadd.f32 %v1747_v14, %v1699_v38  ;;  %v1651_v34 = vpop.f32.mrf.mxu0 }
 0x16f   :  { %v1652_v25 = vadd.f32 %v1651_v34, %v6826_v58  ;;  %v4318_v58 = vld [vmem:[%s8823_s1 + $0x8] sm:$0xf] }
 0x170   :  { %v7117_v39 = vpop.f32.mrf.mxu3  ;;  %v1700_v32 = vpop.f32.mrf.mxu1  ;;  %v2828_v24 = vmul.f32 0.2, %v1748_v63 }
 0x171   :  { %v1701_v44 = vadd.f32 %v1700_v32, %v1652_v25  ;;  %v4955_v32 = vor.u32 %v5556_v0, %v4952_v6 }
 0x172   :  { %v2892_v43 = vmax.f32 %v1748_v63, %v2828_v24  ;;  %v5431_v63 = vld [vmem:[%s8823_s1 + $0x114] sm:$0xf0] }
 0x173   :  { %2019 = vmatpush.bf16.msrb.mxu0 %v4955_v32  ;;  %v5491_v32 = vld [vmem:[%s8823_s1 + $0x2f4] sm:$0xf0] }
 0x175   :  { %v1749_v12 = vpop.f32.mrf.mxu2 }
 0x176   :  { %v1750_v29 = vadd.f32 %v1749_v12, %v1701_v44  ;;  %v1654_v13 = vpop.f32.mrf.mxu0  ;;  %v4447_v44 = vor.u32 %v5431_v63, %v4446_v53  ;;  %v4686_v63 = vld [vmem:[%s8823_s1 + $0x2e8] sm:$0xf] }
 0x177   :  { %v1655_v59 = vadd.f32 %v1654_v13, %v6852_v18  ;;  %v5399_v18 = vld [vmem:[%s8823_s1 + $0x14] sm:$0xf0] }
 0x178   :  { %v7120_v48 = vpop.f32.mrf.mxu3  ;;  %v1703_v62 = vpop.f32.mrf.mxu1  ;;  %v2832_v38 = vmul.f32 0.2, %v1750_v29  ;;  %v4319_v14 = vor.u32 %v5399_v18, %v4318_v58  ;;  %2166 = vmatpush.bf16.msrb.mxu3 %v4447_v44  ;;  %v5070_v44 = vld [vmem:[%s8823_s1 + $0x5e8] sm:$0xf] }
 0x179   :  { %v1704_v49 = vadd.f32 %v1703_v62, %v1655_v59  ;;  %1849 = vmatmul.bf16.gmra.mxu0 %v6355_v54 }
 0x17a   :  { %v2896_v46 = vmax.f32 %v1750_v29, %v2832_v38  ;;  %1947 = vmatmul.bf16.gmra.mxu2 %v6359_v57 }
 0x17b   :  { %1898 = vmatmul.bf16.gmra.mxu1 %v6357_v56  ;;  %2117 = vmatpush.bf16.msrb.mxu2 %v4319_v14 }
 0x17c   :  { %v7145_v34 = vpack.c.bf16 %v2896_v46, %v2892_v43 }
 0x17d   :  { %1996 = vmatmul.bf16.gmra.mxu3 %v6819_v9  ;;  %v1752_v25 = vpop.f32.mrf.mxu2 }
 0x17e   :  { %8963 = vst [vmem:[#allocation52_spill] sm:$0xff] %v7145_v34  ;;  %v1753_v12 = vadd.f32 %v1752_v25, %v1704_v49  ;;  %v1656_v29 = vpop.f32.mrf.mxu0  ;;  %v4798_v34 = vld [vmem:[%s8823_s1 + $0x3c8] sm:$0xf] }
 0x17f   :  { %v1657_v13 = vadd.f32 %v1656_v29, %v6885_v47  ;;  %v4942_v47 = vld [vmem:[%s8823_s1 + $0x4e8] sm:$0xf] }
 0x180   :  { %v7147_v24 = vpop.f32.mrf.mxu3  ;;  %v1705_v59 = vpop.f32.mrf.mxu1  ;;  %v2836_v58 = vmul.f32 0.2, %v1753_v12 }
 0x181   :  { %v1706_v62 = vadd.f32 %v1705_v59, %v1657_v13  ;;  %v4687_v59 = vor.u32 %v5491_v32, %v4686_v63 }
 0x182   :  { %v2900_v14 = vmax.f32 %v1753_v12, %v2836_v58  ;;  %v5587_v12 = vld [vmem:[%s8823_s1 + $0x5f4] sm:$0xf0] }
 0x183   :  { %2208 = vmatpush.bf16.msra.mxu0 %v4687_v59 }
 0x185   :  { %v1754_v38 = vpop.f32.mrf.mxu2 }
 0x186   :  { %v1755_v18 = vadd.f32 %v1754_v38, %v1706_v62  ;;  %v1659_v43 = vpop.f32.mrf.mxu0  ;;  %v5071_v62 = vor.u32 %v5587_v12, %v5070_v44 }
 0x187   :  { %v1660_v46 = vadd.f32 %v1659_v43, %v6911_v50  ;;  %v5555_v50 = vld [vmem:[%s8823_s1 + $0x4f4] sm:$0xf0] }
 0x188   :  { %v7150_v30 = vpop.f32.mrf.mxu3  ;;  %v1708_v0 = vpop.f32.mrf.mxu1  ;;  %v2840_v49 = vmul.f32 0.2, %v1755_v18  ;;  %v4943_v25 = vor.u32 %v5555_v50, %v4942_v47  ;;  %2355 = vmatpush.bf16.msra.mxu3 %v5071_v62 }
 0x189   :  { %v1709_v6 = vadd.f32 %v1708_v0, %v1660_v46  ;;  %1854 = vmatmul.bf16.gmra.mxu0 %v6409_v16  ;;  %v4814_v0 = vld [vmem:[%s8823_s1 + $0x3e8] sm:$0xf] }
 0x18a   :  { %v2904_v53 = vmax.f32 %v1755_v18, %v2840_v49  ;;  %1952 = vmatmul.bf16.gmra.mxu2 %v6413_v22  ;;  %v5523_v49 = vld [vmem:[%s8823_s1 + $0x3f4] sm:$0xf0] }
 0x18b   :  { %1903 = vmatmul.bf16.gmra.mxu1 %v6411_v17  ;;  %2306 = vmatpush.bf16.msra.mxu2 %v4943_v25 }
 0x18c   :  { %v7175_v29 = vpack.c.bf16 %v2904_v53, %v2900_v14  ;;  %v4815_v53 = vor.u32 %v5523_v49, %v4814_v0  ;;  %v4926_v0 = vld [vmem:[%s8823_s1 + $0x4c8] sm:$0xf] }
 0x18d   :  { %2001 = vmatmul.bf16.gmra.mxu3 %v6878_v7  ;;  %v1757_v13 = vpop.f32.mrf.mxu2  ;;  %v4670_v49 = vld [vmem:[%s8823_s1 + $0x2c8] sm:$0xf] }
 0x18e   :  { %8964 = vst [vmem:[#allocation53_spill] sm:$0xff] %v7175_v29  ;;  %v1758_v38 = vadd.f32 %v1757_v13, %v1709_v6  ;;  %v1661_v18 = vpop.f32.mrf.mxu0  ;;  %2257 = vmatpush.bf16.msra.mxu1 %v4815_v53  ;;  %v8965_v13 = vld [vmem:[#allocation25_spill] sm:$0xff] }
 0x18f   :  { %v1662_v43 = vadd.f32 %v1661_v18, %v6944_v61  ;;  %v8966_v18 = vld [vmem:[#allocation26_spill] sm:$0xff] }
 0x190   :  { %v7177_v58 = vpop.f32.mrf.mxu3  ;;  %v1710_v46 = vpop.f32.mrf.mxu1  ;;  %v2844_v47 = vmul.f32 0.2, %v1758_v38  ;;  %v5054_v53 = vld [vmem:[%s8823_s1 + $0x5c8] sm:$0xf] }
 0x191   :  { %v1711_v14 = vadd.f32 %v1710_v46, %v1662_v43  ;;  %v8967_v43 = vld [vmem:[#allocation27_spill] sm:$0xff]  ;;  %v8968_v46 = vld [vmem:[#allocation45_spill] sm:$0xff] }
 0x192   :  { %v2908_v59 = vmax.f32 %v1758_v38, %v2844_v47 }
 0x195   :  { %v1759_v6 = vpop.f32.mrf.mxu2 }
 0x196   :  { %v1760_v50 = vadd.f32 %v1759_v6, %v1711_v14  ;;  %v1664_v61 = vpop.f32.mrf.mxu0  ;;  %v5487_v14 = vld [vmem:[%s8823_s1 + $0x2d4] sm:$0xf0] }
 0x197   :  { %v1665_v25 = vadd.f32 %v1664_v61, %v6970_v36  ;;  %v5551_v36 = vld [vmem:[%s8823_s1 + $0x4d4] sm:$0xf0]  ;;  %v4671_v61 = vor.u32 %v5487_v14, %v4670_v49 }
 0x198   :  { %v7186_v63 = vpop.f32.mrf.mxu3  ;;  %v1713_v32 = vpop.f32.mrf.mxu1  ;;  %v2848_v44 = vmul.f32 0.2, %v1760_v50  ;;  %v4927_v38 = vor.u32 %v5551_v36, %v4926_v0  ;;  %v5583_v6 = vld [vmem:[%s8823_s1 + $0x5d4] sm:$0xf0] }
 0x199   :  { %v1714_v12 = vadd.f32 %v1713_v32, %v1665_v25  ;;  %1859 = vmatmul.bf16.gmra.mxu0 %v8965_v13  ;;  %v5055_v25 = vor.u32 %v5583_v6, %v5054_v53 }
 0x19a   :  { %v2912_v62 = vmax.f32 %v1760_v50, %v2848_v44  ;;  %1957 = vmatmul.bf16.gmra.mxu2 %v8967_v43  ;;  %2209 = vmatpush.bf16.msra.mxu0 %v4671_v61  ;;  %v8970_v43 = vld [vmem:[#allocation29_spill] sm:$0xff] }
 0x19b   :  { %1908 = vmatmul.bf16.gmra.mxu1 %v8966_v18  ;;  %2307 = vmatpush.bf16.msra.mxu2 %v4927_v38 }
 0x19c   :  { %v7211_v47 = vpack.c.bf16 %v2912_v62, %v2908_v59  ;;  %2356 = vmatpush.bf16.msra.mxu3 %v5055_v25  ;;  %v5519_v59 = vld [vmem:[%s8823_s1 + $0x3d4] sm:$0xf0] }
 0x19d   :  { %2006 = vmatmul.bf16.gmra.mxu3 %v8968_v46  ;;  %v1762_v50 = vpop.f32.mrf.mxu2  ;;  %v4799_v49 = vor.u32 %v5519_v59, %v4798_v34  ;;  %v8972_v34 = vld [vmem:[#allocation9_spill] sm:$0xff]  ;;  %v5483_v59 = vld [vmem:[%s8823_s1 + $0x2b4] sm:$0xf0] }
 0x19e   :  { %8969 = vst [vmem:[#allocation54_spill] sm:$0xff] %v7211_v47  ;;  %v1763_v32 = vadd.f32 %v1762_v50, %v1714_v12  ;;  %v1666_v0 = vpop.f32.mrf.mxu0  ;;  %v7225_v12 = vld [vmem:[%s8824_s2] sm:$0xf] }
 0x19f   :  { %v1667_v36 = vadd.f32 %v1666_v0, %v6973_v37  ;;  %v7228_v62 = vperm.slane %v7225_v12, 1  ;;  %2258 = vmatpush.bf16.msra.mxu1 %v4799_v49  ;;  %v5579_v49 = vld [vmem:[%s8823_s1 + $0x5b4] sm:$0xf0] }
 0x1a0   :  { %v7213_v44 = vpop.f32.mrf.mxu3  ;;  %v1715_v29 = vpop.f32.mrf.mxu1  ;;  %v2852_v53 = vmul.f32 0.2, %v1763_v32 }
 0x1a1   :  { %v1716_v37 = vadd.f32 %v1715_v29, %v1667_v36  ;;  %v1777_v38 = vadd.f32 %v6997_v4, %v7228_v62  ;;  %v8971_v29 = vld [vmem:[#allocation30_spill] sm:$0xff]  ;;  %v5547_v36 = vld [vmem:[%s8823_s1 + $0x4b4] sm:$0xf0] }
 0x1a2   :  { %v2916_v18 = vmax.f32 %v1763_v32, %v2852_v53  ;;  %v4910_v4 = vld [vmem:[%s8823_s1 + $0x4a8] sm:$0xf] }
 0x1a3   :  { %v4654_v32 = vld [vmem:[%s8823_s1 + $0x2a8] sm:$0xf] }
 0x1a5   :  { %v1764_v14 = vpop.f32.mrf.mxu2 }
 0x1a6   :  { %v1765_v6 = vadd.f32 %v1764_v14, %v1716_v37  ;;  %v1825_v61 = vpop.f32.mrf.mxu0  ;;  %v5038_v37 = vld [vmem:[%s8823_s1 + $0x5a8] sm:$0xf]  ;;  %v1779_v14 = vadd.f32 %v7000_v60, %v7228_v62  ;;  %v5515_v60 = vld [vmem:[%s8823_s1 + $0x3b4] sm:$0xf0] }
 0x1a7   :  { %v1826_v25 = vadd.f32 %v1825_v61, %v1777_v38  ;;  %v5039_v61 = vor.u32 %v5579_v49, %v5038_v37 }
 0x1a8   :  { %v7232_v50 = vpop.f32.mrf.mxu3  ;;  %v1874_v0 = vpop.f32.mrf.mxu1  ;;  %v2856_v47 = vmul.f32 0.2, %v1765_v6 }
 0x1a9   :  { %v1875_v46 = vadd.f32 %v1874_v0, %v1826_v25  ;;  %2020 = vmatmul.bf16.vlgmr.msrb.gmra.mxu0 %v8970_v43  ;;  %2357 = vmatpush.bf16.msra.mxu3 %v5039_v61 }
 0x1aa   :  { %v2920_v7 = vmax.f32 %v1765_v6, %v2856_v47  ;;  %2118 = vmatmul.bf16.vlgmr.msrb.gmra.mxu2 %v8972_v34  ;;  %v4911_v47 = vor.u32 %v5547_v36, %v4910_v4  ;;  %v4655_v6 = vor.u32 %v5483_v59, %v4654_v32 }
 0x1ab   :  { %5100 = vmatmul.msk.bf16.vlgmr.msrb.gmra.mxu1 %vm1399_vm0, %v8971_v29 }
 0x1ac   :  { %v7257_v38 = vpack.c.bf16 %v2920_v7, %v2916_v18  ;;  %2308 = vmatpush.bf16.msra.mxu2 %v4911_v47  ;;  %2210 = vmatpush.bf16.msra.mxu0 %v4655_v6  ;;  %v4782_v7 = vld [vmem:[%s8823_s1 + $0x3a8] sm:$0xf] }
 0x1ad   :  { %2167 = vmatmul.bf16.vlgmr.msrb.gmra.mxu3 %v6067_v51  ;;  %v1923_v53 = vpop.f32.mrf.mxu2  ;;  %v4783_v32 = vor.u32 %v5515_v60, %v4782_v7  ;;  %v5479_v60 = vld [vmem:[%s8823_s1 + $0x294] sm:$0xf0] }
 0x1ae   :  { %8973 = vst [vmem:[#allocation30_spill] sm:$0xff] %v7257_v38  ;;  %v1924_v25 = vadd.f32 %v1923_v53, %v1875_v46  ;;  %v1827_v4 = vpop.f32.mrf.mxu0  ;;  %v1782_v46 = vadd.f32 %v7027_v15, %v7228_v62  ;;  %v4894_v15 = vld [vmem:[%s8823_s1 + $0x488] sm:$0xf] }
 0x1af   :  { %v1828_v36 = vadd.f32 %v1827_v4, %v1779_v14  ;;  %2259 = vmatpush.bf16.msra.mxu1 %v4783_v32  ;;  %v5543_v4 = vld [vmem:[%s8823_s1 + $0x494] sm:$0xf0] }
 0x1b0   :  { %v1972_v0 = vpop.f32.mrf.mxu3  ;;  %v1876_v51 = vpop.f32.mrf.mxu1  ;;  %v4895_v7 = vor.u32 %v5543_v4, %v4894_v15  ;;  %v5575_v32 = vld [vmem:[%s8823_s1 + $0x594] sm:$0xf0] }
 0x1b1   :  { %v7261_v34 = vadd.f32 %v1972_v0, %v1924_v25  ;;  %v1877_v18 = vadd.f32 %v1876_v51, %v1828_v36  ;;  %v8974_v25 = vld [vmem:[#allocation31_spill] sm:$0xff]  ;;  %v8975_v0 = vld [vmem:[#allocation32_spill] sm:$0xff]  ;;  %v4638_v36 = vld [vmem:[%s8823_s1 + $0x288] sm:$0xf] }
 0x1b2   :  { %v8976_v51 = vld [vmem:[#allocation12_spill] sm:$0xff]  ;;  %2309 = vmatpush.bf16.msra.mxu2 %v4895_v7 }
 0x1b5   :  { %v1925_v47 = vpop.f32.mrf.mxu2 }
 0x1b6   :  { %v1926_v59 = vadd.f32 %v1925_v47, %v1877_v18  ;;  %v1830_v49 = vpop.f32.mrf.mxu0  ;;  %v5022_v18 = vld [vmem:[%s8823_s1 + $0x588] sm:$0xf] }
 0x1b7   :  { %v1831_v14 = vadd.f32 %v1830_v49, %v1782_v46  ;;  %v1784_v46 = vadd.f32 %v7030_v5, %v7228_v62  ;;  %v5511_v5 = vld [vmem:[%s8823_s1 + $0x394] sm:$0xf0] }
 0x1b8   :  { %v1974_v37 = vpop.f32.mrf.mxu3  ;;  %v1879_v53 = vpop.f32.mrf.mxu1 }
 0x1b9   :  { %v7271_v6 = vadd.f32 %v1974_v37, %v1926_v59  ;;  %v1880_v61 = vadd.f32 %v1879_v53, %v1831_v14  ;;  %2025 = vmatmul.bf16.gmra.mxu0 %v8974_v25  ;;  %v4639_v59 = vor.u32 %v5479_v60, %v4638_v36  ;;  %v5023_v37 = vor.u32 %v5575_v32, %v5022_v18 }
 0x1ba   :  { %2123 = vmatmul.bf16.gmra.mxu2 %v8976_v51  ;;  %v8992_v51 = vld [vmem:[#allocation46_spill] sm:$0xff] }
 0x1bb   :  { %5101 = vmatmul.msk.bf16.gmra.mxu1 %vm1399_vm0, %v8975_v0  ;;  %2211 = vmatpush.bf16.msra.mxu0 %v4639_v59  ;;  %v8993_v0 = vld [vmem:[#allocation47_spill] sm:$0xff] }
 0x1bc   :  { %2358 = vmatpush.bf16.msra.mxu3 %v5023_v37 }
 0x1bd   :  { %2172 = vmatmul.bf16.gmra.mxu3 %v6139_v19  ;;  %v1928_v47 = vpop.f32.mrf.mxu2  ;;  %v4766_v19 = vld [vmem:[%s8823_s1 + $0x388] sm:$0xf] }
 0x1be   :  { %v1929_v49 = vadd.f32 %v1928_v47, %v1880_v61  ;;  %v1832_v53 = vpop.f32.mrf.mxu0  ;;  %v4767_v60 = vor.u32 %v5511_v5, %v4766_v19  ;;  %v1787_v61 = vadd.f32 %v7057_v23, %v7228_v62  ;;  %v4878_v19 = vld [vmem:[%s8823_s1 + $0x468] sm:$0xf]  ;;  %v5539_v23 = vld [vmem:[%s8823_s1 + $0x474] sm:$0xf0] }
 0x1bf   :  { %v1833_v15 = vadd.f32 %v1832_v53, %v1784_v46  ;;  %v8978_v53 = vld [vmem:[#allocation35_spill] sm:$0xff]  ;;  %v4879_v5 = vor.u32 %v5539_v23, %v4878_v19 }
 0x1c0   :  { %v1977_v14 = vpop.f32.mrf.mxu3  ;;  %v1881_v4 = vpop.f32.mrf.mxu1  ;;  %2260 = vmatpush.bf16.msra.mxu1 %v4767_v60  ;;  %v5006_v60 = vld [vmem:[%s8823_s1 + $0x568] sm:$0xf] }
 0x1c1   :  { %v7298_v38 = vadd.f32 %v1977_v14, %v1929_v49  ;;  %v1882_v36 = vadd.f32 %v1881_v4, %v1833_v15  ;;  %v8977_v14 = vld [vmem:[#allocation34_spill] sm:$0xff]  ;;  %2310 = vmatpush.bf16.msra.mxu2 %v4879_v5 }
 0x1c2   :  { %v8979_v15 = vld [vmem:[#allocation14_spill] sm:$0xff] }
 0x1c3   :  { %v4622_v4 = vld [vmem:[%s8823_s1 + $0x268] sm:$0xf] }
 0x1c5   :  { %v1930_v7 = vpop.f32.mrf.mxu2 }
 0x1c6   :  { %v1931_v18 = vadd.f32 %v1930_v7, %v1882_v36  ;;  %v1835_v46 = vpop.f32.mrf.mxu0  ;;  %v5475_v36 = vld [vmem:[%s8823_s1 + $0x274] sm:$0xf0]  ;;  %v1789_v7 = vadd.f32 %v7060_v11, %v7228_v62 }
 0x1c7   :  { %v1836_v47 = vadd.f32 %v1835_v46, %v1787_v61  ;;  %v5571_v61 = vld [vmem:[%s8823_s1 + $0x574] sm:$0xf0] }
 0x1c8   :  { %v1979_v32 = vpop.f32.mrf.mxu3  ;;  %v1884_v59 = vpop.f32.mrf.mxu1  ;;  %v5007_v46 = vor.u32 %v5571_v61, %v5006_v60  ;;  %v5507_v11 = vld [vmem:[%s8823_s1 + $0x374] sm:$0xf0] }
 0x1c9   :  { %v7308_v37 = vadd.f32 %v1979_v32, %v1931_v18  ;;  %v1885_v49 = vadd.f32 %v1884_v59, %v1836_v47  ;;  %2030 = vmatmul.bf16.gmra.mxu0 %v8977_v14  ;;  %v4623_v32 = vor.u32 %v5475_v36, %v4622_v4 }
 0x1ca   :  { %2128 = vmatmul.bf16.gmra.mxu2 %v8979_v15  ;;  %2359 = vmatpush.bf16.msra.mxu3 %v5007_v46 }
 0x1cb   :  { %5102 = vmatmul.msk.bf16.gmra.mxu1 %vm1399_vm0, %v8978_v53  ;;  %2212 = vmatpush.bf16.msra.mxu0 %v4623_v32  ;;  %v4750_v53 = vld [vmem:[%s8823_s1 + $0x368] sm:$0xf] }
 0x1cc   :  { %v4751_v36 = vor.u32 %v5507_v11, %v4750_v53  ;;  %v5535_v53 = vld [vmem:[%s8823_s1 + $0x454] sm:$0xf0] }
 0x1cd   :  { %2177 = vmatmul.bf16.gmra.mxu3 %v6193_v40  ;;  %v1933_v18 = vpop.f32.mrf.mxu2 }
 0x1ce   :  { %v1934_v47 = vadd.f32 %v1933_v18, %v1885_v49  ;;  %v1837_v19 = vpop.f32.mrf.mxu0  ;;  %2261 = vmatpush.bf16.msra.mxu1 %v4751_v36  ;;  %v1792_v49 = vadd.f32 %v7087_v33, %v7228_v62  ;;  %v4862_v33 = vld [vmem:[%s8823_s1 + $0x448] sm:$0xf] }
 0x1cf   :  { %v1838_v23 = vadd.f32 %v1837_v19, %v1789_v7  ;;  %v8981_v19 = vld [vmem:[#allocation37_spill] sm:$0xff]  ;;  %v4863_v11 = vor.u32 %v5535_v53, %v4862_v33 }
 0x1d0   :  { %v1982_v59 = vpop.f32.mrf.mxu3  ;;  %v1886_v40 = vpop.f32.mrf.mxu1  ;;  %v4990_v36 = vld [vmem:[%s8823_s1 + $0x548] sm:$0xf] }
 0x1d1   :  { %v7335_v15 = vadd.f32 %v1982_v59, %v1934_v47  ;;  %v1887_v4 = vadd.f32 %v1886_v40, %v1838_v23  ;;  %v8980_v59 = vld [vmem:[#allocation36_spill] sm:$0xff]  ;;  %v4606_v23 = vld [vmem:[%s8823_s1 + $0x248] sm:$0xf]  ;;  %2311 = vmatpush.bf16.msra.mxu2 %v4863_v11 }
 0x1d2   :  { %v8982_v40 = vld [vmem:[#allocation16_spill] sm:$0xff] }
 0x1d5   :  { %v1935_v5 = vpop.f32.mrf.mxu2 }
 0x1d6   :  { %v1936_v60 = vadd.f32 %v1935_v5, %v1887_v4  ;;  %v1840_v7 = vpop.f32.mrf.mxu0  ;;  %v5471_v4 = vld [vmem:[%s8823_s1 + $0x254] sm:$0xf0]  ;;  %v1794_v5 = vadd.f32 %v7090_v31, %v7228_v62 }
 0x1d7   :  { %v1841_v18 = vadd.f32 %v1840_v7, %v1792_v49  ;;  %v5567_v49 = vld [vmem:[%s8823_s1 + $0x554] sm:$0xf0] }
 0x1d8   :  { %v1984_v61 = vpop.f32.mrf.mxu3  ;;  %v1889_v32 = vpop.f32.mrf.mxu1  ;;  %v4991_v7 = vor.u32 %v5567_v49, %v4990_v36  ;;  %v5503_v31 = vld [vmem:[%s8823_s1 + $0x354] sm:$0xf0] }
 0x1d9   :  { %v7345_v46 = vadd.f32 %v1984_v61, %v1936_v60  ;;  %v1890_v47 = vadd.f32 %v1889_v32, %v1841_v18  ;;  %2035 = vmatmul.bf16.gmra.mxu0 %v8980_v59  ;;  %v4607_v61 = vor.u32 %v5471_v4, %v4606_v23 }
 0x1da   :  { %2133 = vmatmul.bf16.gmra.mxu2 %v8982_v40  ;;  %2360 = vmatpush.bf16.msra.mxu3 %v4991_v7 }
 0x1db   :  { %5103 = vmatmul.msk.bf16.gmra.mxu1 %vm1399_vm0, %v8981_v19  ;;  %2213 = vmatpush.bf16.msra.mxu0 %v4607_v61  ;;  %v4734_v19 = vld [vmem:[%s8823_s1 + $0x348] sm:$0xf] }
 0x1dc   :  { %v4735_v4 = vor.u32 %v5503_v31, %v4734_v19  ;;  %v5531_v19 = vld [vmem:[%s8823_s1 + $0x434] sm:$0xf0] }
 0x1dd   :  { %2182 = vmatmul.bf16.gmra.mxu3 %v6247_v1  ;;  %v1938_v60 = vpop.f32.mrf.mxu2 }
 0x1de   :  { %v1939_v18 = vadd.f32 %v1938_v60, %v1890_v47  ;;  %v1842_v33 = vpop.f32.mrf.mxu0  ;;  %2262 = vmatpush.bf16.msra.mxu1 %v4735_v4  ;;  %v1797_v47 = vadd.f32 %v7117_v39, %v7228_v62  ;;  %v4846_v39 = vld [vmem:[%s8823_s1 + $0x428] sm:$0xf] }
 0x1df   :  { %v1843_v53 = vadd.f32 %v1842_v33, %v1794_v5  ;;  %v8984_v33 = vld [vmem:[#allocation39_spill] sm:$0xff]  ;;  %v4847_v31 = vor.u32 %v5531_v19, %v4846_v39  ;;  %v4974_v4 = vld [vmem:[%s8823_s1 + $0x528] sm:$0xf] }
 0x1e0   :  { %v1987_v32 = vpop.f32.mrf.mxu3  ;;  %v1891_v1 = vpop.f32.mrf.mxu1 }
 0x1e1   :  { %v7372_v40 = vadd.f32 %v1987_v32, %v1939_v18  ;;  %v1892_v23 = vadd.f32 %v1891_v1, %v1843_v53  ;;  %v8983_v32 = vld [vmem:[#allocation38_spill] sm:$0xff]  ;;  %2312 = vmatpush.bf16.msra.mxu2 %v4847_v31 }
 0x1e2   :  { %v8985_v1 = vld [vmem:[#allocation18_spill] sm:$0xff] }
 0x1e3   :  { %v4590_v53 = vld [vmem:[%s8823_s1 + $0x228] sm:$0xf] }
 0x1e5   :  { %v1940_v11 = vpop.f32.mrf.mxu2 }
 0x1e6   :  { %v1941_v36 = vadd.f32 %v1940_v11, %v1892_v23  ;;  %v1845_v5 = vpop.f32.mrf.mxu0  ;;  %v5467_v23 = vld [vmem:[%s8823_s1 + $0x234] sm:$0xf0]  ;;  %v1799_v11 = vadd.f32 %v7120_v48, %v7228_v62 }
 0x1e7   :  { %v1846_v60 = vadd.f32 %v1845_v5, %v1797_v47  ;;  %v5563_v47 = vld [vmem:[%s8823_s1 + $0x534] sm:$0xf0] }
 0x1e8   :  { %v1989_v49 = vpop.f32.mrf.mxu3  ;;  %v1894_v61 = vpop.f32.mrf.mxu1  ;;  %v4975_v5 = vor.u32 %v5563_v47, %v4974_v4  ;;  %v5499_v48 = vld [vmem:[%s8823_s1 + $0x334] sm:$0xf0] }
 0x1e9   :  { %v7382_v7 = vadd.f32 %v1989_v49, %v1941_v36  ;;  %v1895_v18 = vadd.f32 %v1894_v61, %v1846_v60  ;;  %2040 = vmatmul.bf16.gmra.mxu0 %v8983_v32  ;;  %v4591_v49 = vor.u32 %v5467_v23, %v4590_v53 }
 0x1ea   :  { %2138 = vmatmul.bf16.gmra.mxu2 %v8985_v1  ;;  %2361 = vmatpush.bf16.msra.mxu3 %v4975_v5 }
 0x1eb   :  { %5104 = vmatmul.msk.bf16.gmra.mxu1 %vm1399_vm0, %v8984_v33  ;;  %2214 = vmatpush.bf16.msra.mxu0 %v4591_v49  ;;  %v4718_v33 = vld [vmem:[%s8823_s1 + $0x328] sm:$0xf] }
 0x1ec   :  { %v4719_v23 = vor.u32 %v5499_v48, %v4718_v33  ;;  %v5527_v33 = vld [vmem:[%s8823_s1 + $0x414] sm:$0xf0] }
 0x1ed   :  { %2187 = vmatmul.bf16.gmra.mxu3 %v6301_v26  ;;  %v1943_v36 = vpop.f32.mrf.mxu2 }
 0x1ee   :  { %v1944_v60 = vadd.f32 %v1943_v36, %v1895_v18  ;;  %v1847_v39 = vpop.f32.mrf.mxu0  ;;  %2263 = vmatpush.bf16.msra.mxu1 %v4719_v23  ;;  %v1802_v18 = vadd.f32 %v7147_v24, %v7228_v62  ;;  %v4830_v24 = vld [vmem:[%s8823_s1 + $0x408] sm:$0xf] }
 0x1ef   :  { %v1848_v19 = vadd.f32 %v1847_v39, %v1799_v11  ;;  %v8987_v39 = vld [vmem:[#allocation41_spill] sm:$0xff]  ;;  %v4831_v48 = vor.u32 %v5527_v33, %v4830_v24 }
 0x1f0   :  { %v1992_v61 = vpop.f32.mrf.mxu3  ;;  %v1896_v26 = vpop.f32.mrf.mxu1  ;;  %v4958_v23 = vld [vmem:[%s8823_s1 + $0x508] sm:$0xf] }
 0x1f1   :  { %v7409_v1 = vadd.f32 %v1992_v61, %v1944_v60  ;;  %v1897_v53 = vadd.f32 %v1896_v26, %v1848_v19  ;;  %v8986_v61 = vld [vmem:[#allocation40_spill] sm:$0xff]  ;;  %v4574_v19 = vld [vmem:[%s8823_s1 + $0x208] sm:$0xf]  ;;  %2313 = vmatpush.bf16.msra.mxu2 %v4831_v48 }
 0x1f2   :  { %v8988_v26 = vld [vmem:[#allocation20_spill] sm:$0xff] }
 0x1f5   :  { %v1945_v31 = vpop.f32.mrf.mxu2 }
 0x1f6   :  { %v1946_v4 = vadd.f32 %v1945_v31, %v1897_v53  ;;  %v1850_v11 = vpop.f32.mrf.mxu0  ;;  %v5463_v53 = vld [vmem:[%s8823_s1 + $0x214] sm:$0xf0]  ;;  %v1804_v31 = vadd.f32 %v7150_v30, %v7228_v62 }
 0x1f7   :  { %v1851_v36 = vadd.f32 %v1850_v11, %v1802_v18  ;;  %v5559_v18 = vld [vmem:[%s8823_s1 + $0x514] sm:$0xf0] }
 0x1f8   :  { %v1994_v47 = vpop.f32.mrf.mxu3  ;;  %v1899_v49 = vpop.f32.mrf.mxu1  ;;  %v4959_v11 = vor.u32 %v5559_v18, %v4958_v23  ;;  %v5495_v30 = vld [vmem:[%s8823_s1 + $0x314] sm:$0xf0] }
 0x1f9   :  { %v7419_v5 = vadd.f32 %v1994_v47, %v1946_v4  ;;  %v1900_v60 = vadd.f32 %v1899_v49, %v1851_v36  ;;  %2045 = vmatmul.bf16.gmra.mxu0 %v8986_v61  ;;  %v4575_v47 = vor.u32 %v5463_v53, %v4574_v19 }
 0x1fa   :  { %2143 = vmatmul.bf16.gmra.mxu2 %v8988_v26  ;;  %2362 = vmatpush.bf16.msra.mxu3 %v4959_v11 }
 0x1fb   :  { %5105 = vmatmul.msk.bf16.gmra.mxu1 %vm1399_vm0, %v8987_v39  ;;  %2215 = vmatpush.bf16.msra.mxu0 %v4575_v47  ;;  %v4702_v39 = vld [vmem:[%s8823_s1 + $0x308] sm:$0xf] }
 0x1fc   :  { %v4703_v53 = vor.u32 %v5495_v30, %v4702_v39  ;;  %v4560_v30 = vld [vmem:[%s8823_s1 + $0x1f8] sm:$0xf0] }
 0x1fd   :  { %2192 = vmatmul.bf16.gmra.mxu3 %v6355_v54  ;;  %v1948_v4 = vpop.f32.mrf.mxu2 }
 0x1fe   :  { %v1949_v36 = vadd.f32 %v1948_v4, %v1900_v60  ;;  %v1852_v24 = vpop.f32.mrf.mxu0  ;;  %2264 = vmatpush.bf16.msra.mxu1 %v4703_v53  ;;  %v1807_v60 = vadd.f32 %v7177_v58, %v7228_v62  ;;  %v1809_v58 = vadd.f32 %v7186_v63, %v7228_v62  ;;  %v5591_v63 = vld [vmem:[%s8823_s1 + $0x614] sm:$0xf0] }
 0x1ff   :  { %v1853_v33 = vadd.f32 %v1852_v24, %v1804_v31  ;;  %v8990_v24 = vld [vmem:[#allocation44_spill] sm:$0xff] }
 0x200   :  { %v1997_v49 = vpop.f32.mrf.mxu3  ;;  %v1901_v54 = vpop.f32.mrf.mxu1 }
 0x201   :  { %v7446_v26 = vadd.f32 %v1997_v49, %v1949_v36  ;;  %v1902_v19 = vadd.f32 %v1901_v54, %v1853_v33  ;;  %v8989_v49 = vld [vmem:[#allocation43_spill] sm:$0xff]  ;;  %v8991_v54 = vld [vmem:[#allocation22_spill] sm:$0xff] }
 0x202   :  { %v5457_v33 = vld [vmem:[%s8823_s1 + $0x1ec] sm:$0xf] }
 0x205   :  { %v1950_v48 = vpop.f32.mrf.mxu2 }
 0x206   :  { %v1951_v23 = vadd.f32 %v1950_v48, %v1902_v19  ;;  %v1855_v31 = vpop.f32.mrf.mxu0  ;;  %v5086_v19 = vld [vmem:[%s8823_s1 + $0x608] sm:$0xf] }
 0x207   :  { %v1856_v4 = vadd.f32 %v1855_v31, %v1807_v60  ;;  %v4688_v31 = vld [vmem:[%s8823_s1 + $0x2f8] sm:$0xf0] }
 0x208   :  { %v1999_v18 = vpop.f32.mrf.mxu3  ;;  %v1904_v47 = vpop.f32.mrf.mxu1 }
 0x209   :  { %v7456_v11 = vadd.f32 %v1999_v18, %v1951_v23  ;;  %v1905_v36 = vadd.f32 %v1904_v47, %v1856_v4  ;;  %2050 = vmatmul.bf16.gmra.mxu0 %v8989_v49  ;;  %v4563_v23 = vor.u32 %v5457_v33, %v4560_v30  ;;  %v5489_v18 = vld [vmem:[%s8823_s1 + $0x2ec] sm:$0xf]  ;;  %v4432_v33 = vld [vmem:[%s8823_s1 + $0xf8] sm:$0xf0] }
 0x20a   :  { %2148 = vmatmul.bf16.gmra.mxu2 %v8991_v54  ;;  %v4691_v54 = vor.u32 %v5489_v18, %v4688_v31 }
 0x20b   :  { %5106 = vmatmul.msk.bf16.gmra.mxu1 %vm1399_vm0, %v8990_v24  ;;  %2502 = vmatpush.bf16.msrb.mxu2 %v4563_v23 }
 0x20c   :  { %2551 = vmatpush.bf16.msrb.mxu3 %v4691_v54  ;;  %v5453_v54 = vld [vmem:[%s8823_s1 + $0x1cc] sm:$0xf] }
 0x20d   :  { %2197 = vmatmul.bf16.gmra.mxu3 %v6409_v16  ;;  %v1953_v39 = vpop.f32.mrf.mxu2  ;;  %v5087_v16 = vor.u32 %v5591_v63, %v5086_v19 }
 0x20e   :  { %v1954_v53 = vadd.f32 %v1953_v39, %v1905_v36  ;;  %v1857_v48 = vpop.f32.mrf.mxu0  ;;  %v5425_v39 = vld [vmem:[%s8823_s1 + $0xec] sm:$0xf] }
 0x20f   :  { %v1858_v4 = vadd.f32 %v1857_v48, %v1809_v58  ;;  %2411 = vmatpush.bf16.msrb.mxu0 %v5087_v16  ;;  %v4435_v24 = vor.u32 %v5425_v39, %v4432_v33  ;;  %v1812_v58 = vadd.f32 %v7213_v44, %v7228_v62  ;;  %v8994_v16 = vld [vmem:[#allocation24_spill] sm:$0xff]  ;;  %v1814_v44 = vadd.f32 %v7232_v50, %v7228_v62 }
 0x210   :  { %v2002_v60 = vpop.f32.mrf.mxu3  ;;  %v1906_v47 = vpop.f32.mrf.mxu1  ;;  %v4672_v62 = vld [vmem:[%s8823_s1 + $0x2d8] sm:$0xf0] }
 0x211   :  { %v7483_v36 = vadd.f32 %v2002_v60, %v1954_v53  ;;  %v1907_v30 = vadd.f32 %v1906_v47, %v1858_v4  ;;  %2453 = vmatpush.bf16.msrb.mxu1 %v4435_v24  ;;  %v4544_v4 = vld [vmem:[%s8823_s1 + $0x1d8] sm:$0xf0]  ;;  %v5485_v47 = vld [vmem:[%s8823_s1 + $0x2cc] sm:$0xf] }
 0x215   :  { %v1955_v19 = vpop.f32.mrf.mxu2 }
 0x216   :  { %v1956_v53 = vadd.f32 %v1955_v19, %v1907_v30  ;;  %v1860_v48 = vpop.f32.mrf.mxu0 }
 0x217   :  { %v1861_v23 = vadd.f32 %v1860_v48, %v1812_v58  ;;  %v4547_v58 = vor.u32 %v5453_v54, %v4544_v4  ;;  %v5421_v48 = vld [vmem:[%s8823_s1 + $0xcc] sm:$0xf] }
 0x218   :  { %v2004_v60 = vpop.f32.mrf.mxu3  ;;  %v1909_v63 = vpop.f32.mrf.mxu1 }
 0x219   :  { %v7493_v18 = vadd.f32 %v2004_v60, %v1956_v53  ;;  %v1910_v31 = vadd.f32 %v1909_v63, %v1861_v23  ;;  %2055 = vmatmul.bf16.gmra.mxu0 %v8992_v51  ;;  %v4675_v53 = vor.u32 %v5485_v47, %v4672_v62  ;;  %2503 = vmatpush.bf16.msrb.mxu2 %v4547_v58  ;;  %v4416_v23 = vld [vmem:[%s8823_s1 + $0xd8] sm:$0xf0]  ;;  %v7529_v58 = vperm.slane %v7225_v12, 2 }
 0x21a   :  { %2153 = vmatmul.bf16.gmra.mxu2 %v8994_v16 }
 0x21b   :  { %5107 = vmatmul.msk.bf16.gmra.mxu1 %vm1399_vm0, %v8993_v0  ;;  %2552 = vmatpush.bf16.msrb.mxu3 %v4675_v53 }
 0x21d   :  { %2202 = vmatmul.bf16.gmra.mxu3 %v8965_v13  ;;  %v1958_v24 = vpop.f32.mrf.mxu2 }
 0x21e   :  { %v1959_v39 = vadd.f32 %v1958_v24, %v1910_v31  ;;  %v1862_v30 = vpop.f32.mrf.mxu0  ;;  %v4419_v31 = vor.u32 %v5421_v48, %v4416_v23 }
 0x21f   :  { %v1863_v50 = vadd.f32 %v1862_v30, %v1814_v44 }
 0x220   :  { %v2007_v33 = vpop.f32.mrf.mxu3  ;;  %v1911_v19 = vpop.f32.mrf.mxu1  ;;  %2454 = vmatpush.bf16.msrb.mxu1 %v4419_v31 }
 0x221   :  { %v7514_v60 = vadd.f32 %v2007_v33, %v1959_v39  ;;  %v1912_v63 = vadd.f32 %v1911_v19, %v1863_v50  ;;  %v4528_v50 = vld [vmem:[%s8823_s1 + $0x1b8] sm:$0xf0]  ;;  %v5481_v19 = vld [vmem:[%s8823_s1 + $0x2ac] sm:$0xf] }
 0x225   :  { %v1960_v24 = vpop.f32.mrf.mxu2 }
 0x226   :  { %v1961_v54 = vadd.f32 %v1960_v24, %v1912_v63  ;;  %v2021_v4 = vpop.f32.mrf.mxu0  ;;  %v4656_v63 = vld [vmem:[%s8823_s1 + $0x2b8] sm:$0xf0] }
 0x227   :  { %v2022_v47 = vadd.f32 %v2021_v4, %v7261_v34  ;;  %v5449_v34 = vld [vmem:[%s8823_s1 + $0x1ac] sm:$0xf] }
 0x228   :  { %v2009_v44 = vpop.f32.mrf.mxu3  ;;  %v2070_v39 = vpop.f32.mrf.mxu1  ;;  %v4531_v23 = vor.u32 %v5449_v34, %v4528_v50  ;;  %v5417_v4 = vld [vmem:[%s8823_s1 + $0xac] sm:$0xf] }
 0x229   :  { %v7523_v33 = vadd.f32 %v2009_v44, %v1961_v54  ;;  %v2071_v30 = vadd.f32 %v2070_v39, %v2022_v47  ;;  %2216 = vmatmul.bf16.vlgmr.msra.gmra.mxu0 %v6069_v52  ;;  %v4659_v54 = vor.u32 %v5481_v19, %v4656_v63  ;;  %v4400_v47 = vld [vmem:[%s8823_s1 + $0xb8] sm:$0xf0] }
 0x22a   :  { %2314 = vmatmul.bf16.vlgmr.msra.gmra.mxu2 %v6526_v35  ;;  %v4403_v34 = vor.u32 %v5417_v4, %v4400_v47  ;;  %v4640_v47 = vld [vmem:[%s8823_s1 + $0x298] sm:$0xf0] }
 0x22b   :  { %2265 = vmatmul.bf16.vlgmr.msra.gmra.mxu1 %v6077_v55  ;;  %2504 = vmatpush.bf16.msrb.mxu2 %v4531_v23  ;;  %v2797_v39 = vmul.f32 0.2, %v2071_v30 }
 0x22c   :  { %2553 = vmatpush.bf16.msrb.mxu3 %v4659_v54  ;;  %2455 = vmatpush.bf16.msrb.mxu1 %v4403_v34 }
 0x22d   :  { %2363 = vmatmul.bf16.vlgmr.msra.gmra.mxu3 %v8970_v43  ;;  %v2119_v62 = vpop.f32.mrf.mxu2 }
 0x22e   :  { %v2120_v53 = vadd.f32 %v2119_v62, %v7529_v58  ;;  %v2023_v12 = vpop.f32.mrf.mxu0 }
 0x22f   :  { %v2024_v31 = vadd.f32 %v2023_v12, %v7271_v6  ;;  %v2861_v6 = vmax.f32 %v2071_v30, %v2797_v39 }
 0x230   :  { %v2168_v48 = vpop.f32.mrf.mxu3  ;;  %v2072_v24 = vpop.f32.mrf.mxu1 }
 0x231   :  { %v7546_v44 = vadd.f32 %v2168_v48, %v2120_v53  ;;  %v2073_v62 = vadd.f32 %v2072_v24, %v2024_v31  ;;  %v5445_v31 = vld [vmem:[%s8823_s1 + $0x18c] sm:$0xf] }
 0x233   :  { %v2801_v50 = vmul.f32 0.2, %v2073_v62 }
 0x235   :  { %v2865_v12 = vmax.f32 %v2073_v62, %v2801_v50  ;;  %v2121_v19 = vpop.f32.mrf.mxu2 }
 0x236   :  { %v2122_v53 = vadd.f32 %v2121_v19, %v7529_v58  ;;  %v2026_v23 = vpop.f32.mrf.mxu0 }
 0x237   :  { %v7555_v63 = vpack.c.bf16 %v2865_v12, %v2861_v6  ;;  %v2027_v43 = vadd.f32 %v2026_v23, %v7298_v38  ;;  %v4512_v38 = vld [vmem:[%s8823_s1 + $0x198] sm:$0xf0]  ;;  %v5413_v6 = vld [vmem:[%s8823_s1 + $0x8c] sm:$0xf] }
 0x238   :  { %v2170_v48 = vpop.f32.mrf.mxu3  ;;  %v2075_v35 = vpop.f32.mrf.mxu1  ;;  %v4515_v4 = vor.u32 %v5445_v31, %v4512_v38  ;;  %v4384_v12 = vld [vmem:[%s8823_s1 + $0x98] sm:$0xf0] }
 0x239   :  { %8995 = vst [vmem:[#allocation31_spill] sm:$0xff] %v7555_v63  ;;  %v7558_v55 = vadd.f32 %v2170_v48, %v2122_v53  ;;  %v2076_v13 = vadd.f32 %v2075_v35, %v2027_v43  ;;  %2221 = vmatmul.bf16.gmra.mxu0 %v6141_v20  ;;  %v5477_v35 = vld [vmem:[%s8823_s1 + $0x28c] sm:$0xf]  ;;  %v4387_v48 = vor.u32 %v5413_v6, %v4384_v12 }
 0x23a   :  { %2319 = vmatmul.bf16.gmra.mxu2 %v6583_v45  ;;  %v4643_v34 = vor.u32 %v5477_v35, %v4640_v47 }
 0x23b   :  { %2270 = vmatmul.bf16.gmra.mxu1 %v6143_v21  ;;  %2505 = vmatpush.bf16.msrb.mxu2 %v4515_v4  ;;  %v2805_v19 = vmul.f32 0.2, %v2076_v13 }
 0x23c   :  { %2554 = vmatpush.bf16.msrb.mxu3 %v4643_v34  ;;  %2456 = vmatpush.bf16.msrb.mxu1 %v4387_v48  ;;  %v5473_v34 = vld [vmem:[%s8823_s1 + $0x26c] sm:$0xf]  ;;  %v4624_v48 = vld [vmem:[%s8823_s1 + $0x278] sm:$0xf0] }
 0x23d   :  { %2368 = vmatmul.bf16.gmra.mxu3 %v8974_v25  ;;  %v2124_v30 = vpop.f32.mrf.mxu2 }
 0x23e   :  { %v2125_v43 = vadd.f32 %v2124_v30, %v7529_v58  ;;  %v2028_v54 = vpop.f32.mrf.mxu0 }
 0x23f   :  { %v2029_v39 = vadd.f32 %v2028_v54, %v7308_v37  ;;  %v2869_v37 = vmax.f32 %v2076_v13, %v2805_v19 }
 0x240   :  { %v2173_v24 = vpop.f32.mrf.mxu3  ;;  %v2077_v62 = vpop.f32.mrf.mxu1 }
 0x241   :  { %v7578_v50 = vadd.f32 %v2173_v24, %v2125_v43  ;;  %v2078_v53 = vadd.f32 %v2077_v62, %v2029_v39  ;;  %v8997_v39 = vld [vmem:[#allocation33_spill] sm:$0xff]  ;;  %v5441_v62 = vld [vmem:[%s8823_s1 + $0x16c] sm:$0xf] }
 0x243   :  { %v2809_v23 = vmul.f32 0.2, %v2078_v53 }
 0x245   :  { %v2873_v30 = vmax.f32 %v2078_v53, %v2809_v23  ;;  %v2126_v31 = vpop.f32.mrf.mxu2 }
 0x246   :  { %v2127_v38 = vadd.f32 %v2126_v31, %v7529_v58  ;;  %v2031_v43 = vpop.f32.mrf.mxu0 }
 0x247   :  { %v2032_v24 = vadd.f32 %v2031_v43, %v7335_v15  ;;  %v7588_v4 = vpack.c.bf16 %v2873_v30, %v2869_v37  ;;  %v4496_v15 = vld [vmem:[%s8823_s1 + $0x178] sm:$0xf0]  ;;  %v4627_v30 = vor.u32 %v5473_v34, %v4624_v48 }
 0x248   :  { %v2175_v35 = vpop.f32.mrf.mxu3  ;;  %v2080_v54 = vpop.f32.mrf.mxu1  ;;  %v4499_v53 = vor.u32 %v5441_v62, %v4496_v15 }
 0x249   :  { %8996 = vst [vmem:[#allocation36_spill] sm:$0xff] %v7588_v4  ;;  %v7590_v47 = vadd.f32 %v2175_v35, %v2127_v38  ;;  %v2081_v63 = vadd.f32 %v2080_v54, %v2032_v24  ;;  %2226 = vmatmul.bf16.gmra.mxu0 %v6195_v41  ;;  %v5409_v38 = vld [vmem:[%s8823_s1 + $0x6c] sm:$0xf]  ;;  %v4368_v35 = vld [vmem:[%s8823_s1 + $0x78] sm:$0xf0]  ;;  %2555 = vmatpush.bf16.msrb.mxu3 %v4627_v30 }
 0x24a   :  { %2324 = vmatmul.bf16.gmra.mxu2 %v8997_v39  ;;  %v4371_v54 = vor.u32 %v5409_v38, %v4368_v35 }
 0x24b   :  { %2275 = vmatmul.bf16.gmra.mxu1 %v6197_v42  ;;  %2506 = vmatpush.bf16.msrb.mxu2 %v4499_v53  ;;  %v2813_v43 = vmul.f32 0.2, %v2081_v63 }
 0x24c   :  { %2457 = vmatpush.bf16.msrb.mxu1 %v4371_v54 }
 0x24d   :  { %2373 = vmatmul.bf16.gmra.mxu3 %v8977_v14  ;;  %v2129_v13 = vpop.f32.mrf.mxu2 }
 0x24e   :  { %v2130_v6 = vadd.f32 %v2129_v13, %v7529_v58  ;;  %v2033_v19 = vpop.f32.mrf.mxu0 }
 0x24f   :  { %v2034_v23 = vadd.f32 %v2033_v19, %v7345_v46  ;;  %v2877_v46 = vmax.f32 %v2081_v63, %v2813_v43 }
 0x250   :  { %v2178_v12 = vpop.f32.mrf.mxu3  ;;  %v2082_v37 = vpop.f32.mrf.mxu1 }
 0x251   :  { %v7610_v31 = vadd.f32 %v2178_v12, %v2130_v6  ;;  %v2083_v24 = vadd.f32 %v2082_v37, %v2034_v23  ;;  %v5437_v23 = vld [vmem:[%s8823_s1 + $0x14c] sm:$0xf] }
 0x252   :  { %v5469_v37 = vld [vmem:[%s8823_s1 + $0x24c] sm:$0xf] }
 0x253   :  { %v2817_v13 = vmul.f32 0.2, %v2083_v24 }
 0x255   :  { %v2881_v62 = vmax.f32 %v2083_v24, %v2817_v13  ;;  %v2131_v15 = vpop.f32.mrf.mxu2  ;;  %v4608_v24 = vld [vmem:[%s8823_s1 + $0x258] sm:$0xf0] }
 0x256   :  { %v2132_v34 = vadd.f32 %v2131_v15, %v7529_v58  ;;  %v2036_v12 = vpop.f32.mrf.mxu0  ;;  %v5405_v15 = vld [vmem:[%s8823_s1 + $0x4c] sm:$0xf] }
 0x257   :  { %v2037_v19 = vadd.f32 %v2036_v12, %v7372_v40  ;;  %v7620_v48 = vpack.c.bf16 %v2881_v62, %v2877_v46  ;;  %v4480_v40 = vld [vmem:[%s8823_s1 + $0x158] sm:$0xf0]  ;;  %v4611_v46 = vor.u32 %v5469_v37, %v4608_v24 }
 0x258   :  { %v2180_v6 = vpop.f32.mrf.mxu3  ;;  %v2085_v53 = vpop.f32.mrf.mxu1  ;;  %v4483_v43 = vor.u32 %v5437_v23, %v4480_v40 }
 0x259   :  { %8998 = vst [vmem:[#allocation38_spill] sm:$0xff] %v7620_v48  ;;  %v7622_v4 = vadd.f32 %v2180_v6, %v2132_v34  ;;  %v2086_v14 = vadd.f32 %v2085_v53, %v2037_v19  ;;  %2231 = vmatmul.bf16.gmra.mxu0 %v6249_v2  ;;  %v4352_v34 = vld [vmem:[%s8823_s1 + $0x58] sm:$0xf0]  ;;  %2556 = vmatpush.bf16.msrb.mxu3 %v4611_v46 }
 0x25a   :  { %2329 = vmatmul.bf16.gmra.mxu2 %v6701_v8  ;;  %v4355_v19 = vor.u32 %v5405_v15, %v4352_v34 }
 0x25b   :  { %2280 = vmatmul.bf16.gmra.mxu1 %v6251_v3  ;;  %2507 = vmatpush.bf16.msrb.mxu2 %v4483_v43  ;;  %v2821_v6 = vmul.f32 0.2, %v2086_v14 }
 0x25c   :  { %2458 = vmatpush.bf16.msrb.mxu1 %v4355_v19 }
 0x25d   :  { %2378 = vmatmul.bf16.gmra.mxu3 %v8980_v59  ;;  %v2134_v63 = vpop.f32.mrf.mxu2 }
 0x25e   :  { %v2135_v30 = vadd.f32 %v2134_v63, %v7529_v58  ;;  %v2038_v35 = vpop.f32.mrf.mxu0 }
 0x25f   :  { %v2039_v54 = vadd.f32 %v2038_v35, %v7382_v7  ;;  %v2885_v7 = vmax.f32 %v2086_v14, %v2821_v6 }
 0x260   :  { %v2183_v38 = vpop.f32.mrf.mxu3  ;;  %v2087_v13 = vpop.f32.mrf.mxu1 }
 0x261   :  { %v7642_v62 = vadd.f32 %v2183_v38, %v2135_v30  ;;  %v2088_v12 = vadd.f32 %v2087_v13, %v2039_v54  ;;  %v5433_v54 = vld [vmem:[%s8823_s1 + $0x12c] sm:$0xf] }
 0x262   :  { %v5465_v13 = vld [vmem:[%s8823_s1 + $0x22c] sm:$0xf] }
 0x263   :  { %v2825_v53 = vmul.f32 0.2, %v2088_v12 }
 0x265   :  { %v2889_v63 = vmax.f32 %v2088_v12, %v2825_v53  ;;  %v2136_v23 = vpop.f32.mrf.mxu2  ;;  %v4592_v12 = vld [vmem:[%s8823_s1 + $0x238] sm:$0xf0] }
 0x266   :  { %v2137_v40 = vadd.f32 %v2136_v23, %v7529_v58  ;;  %v2041_v30 = vpop.f32.mrf.mxu0  ;;  %v5401_v23 = vld [vmem:[%s8823_s1 + $0x2c] sm:$0xf] }
 0x267   :  { %v2042_v38 = vadd.f32 %v2041_v30, %v7409_v1  ;;  %v7652_v43 = vpack.c.bf16 %v2889_v63, %v2885_v7  ;;  %v4464_v1 = vld [vmem:[%s8823_s1 + $0x138] sm:$0xf0]  ;;  %v4595_v7 = vor.u32 %v5465_v13, %v4592_v12 }
 0x268   :  { %v2185_v37 = vpop.f32.mrf.mxu3  ;;  %v2090_v35 = vpop.f32.mrf.mxu1  ;;  %v4467_v6 = vor.u32 %v5433_v54, %v4464_v1 }
 0x269   :  { %8999 = vst [vmem:[#allocation40_spill] sm:$0xff] %v7652_v43  ;;  %v7654_v24 = vadd.f32 %v2185_v37, %v2137_v40  ;;  %v2091_v48 = vadd.f32 %v2090_v35, %v2042_v38  ;;  %2236 = vmatmul.bf16.gmra.mxu0 %v6303_v27  ;;  %v4336_v40 = vld [vmem:[%s8823_s1 + $0x38] sm:$0xf0]  ;;  %2557 = vmatpush.bf16.msrb.mxu3 %v4595_v7 }
 0x26a   :  { %2334 = vmatmul.bf16.gmra.mxu2 %v6760_v10  ;;  %v4339_v38 = vor.u32 %v5401_v23, %v4336_v40 }
 0x26b   :  { %2285 = vmatmul.bf16.gmra.mxu1 %v6305_v28  ;;  %2508 = vmatpush.bf16.msrb.mxu2 %v4467_v6  ;;  %v2829_v37 = vmul.f32 0.2, %v2091_v48 }
 0x26c   :  { %2459 = vmatpush.bf16.msrb.mxu1 %v4339_v38 }
 0x26d   :  { %2383 = vmatmul.bf16.gmra.mxu3 %v8983_v32  ;;  %v2139_v14 = vpop.f32.mrf.mxu2 }
 0x26e   :  { %v2140_v46 = vadd.f32 %v2139_v14, %v7529_v58  ;;  %v2043_v34 = vpop.f32.mrf.mxu0 }
 0x26f   :  { %v2044_v19 = vadd.f32 %v2043_v34, %v7419_v5  ;;  %v2893_v5 = vmax.f32 %v2091_v48, %v2829_v37 }
 0x270   :  { %v2188_v15 = vpop.f32.mrf.mxu3  ;;  %v2092_v53 = vpop.f32.mrf.mxu1 }
 0x271   :  { %v7674_v63 = vadd.f32 %v2188_v15, %v2140_v46  ;;  %v2093_v30 = vadd.f32 %v2092_v53, %v2044_v19  ;;  %v5429_v19 = vld [vmem:[%s8823_s1 + $0x10c] sm:$0xf] }
 0x272   :  { %v5461_v53 = vld [vmem:[%s8823_s1 + $0x20c] sm:$0xf] }
 0x273   :  { %v2833_v35 = vmul.f32 0.2, %v2093_v30 }
 0x275   :  { %v2897_v14 = vmax.f32 %v2093_v30, %v2833_v35  ;;  %v2141_v54 = vpop.f32.mrf.mxu2  ;;  %v4576_v30 = vld [vmem:[%s8823_s1 + $0x218] sm:$0xf0] }
 0x276   :  { %v2142_v1 = vadd.f32 %v2141_v54, %v7529_v58  ;;  %v2046_v46 = vpop.f32.mrf.mxu0  ;;  %v5397_v54 = vld [vmem:[%s8823_s1 + $0xc] sm:$0xf] }
 0x277   :  { %v2047_v15 = vadd.f32 %v2046_v46, %v7446_v26  ;;  %v7684_v6 = vpack.c.bf16 %v2897_v14, %v2893_v5  ;;  %v4448_v26 = vld [vmem:[%s8823_s1 + $0x118] sm:$0xf0]  ;;  %v4579_v5 = vor.u32 %v5461_v53, %v4576_v30 }
 0x278   :  { %v2190_v13 = vpop.f32.mrf.mxu3  ;;  %v2095_v34 = vpop.f32.mrf.mxu1  ;;  %v4451_v37 = vor.u32 %v5429_v19, %v4448_v26 }
 0x279   :  { %9000 = vst [vmem:[#allocation47_spill] sm:$0xff] %v7684_v6  ;;  %v7686_v12 = vadd.f32 %v2190_v13, %v2142_v1  ;;  %v2096_v43 = vadd.f32 %v2095_v34, %v2047_v15  ;;  %2241 = vmatmul.bf16.gmra.mxu0 %v6357_v56  ;;  %v4320_v1 = vld [vmem:[%s8823_s1 + $0x18] sm:$0xf0]  ;;  %2558 = vmatpush.bf16.msrb.mxu3 %v4579_v5  ;;  %v5521_v5 = vld [vmem:[%s8823_s1 + $0x3ec] sm:$0xf] }
 0x27a   :  { %2339 = vmatmul.bf16.gmra.mxu2 %v6819_v9  ;;  %v4323_v15 = vor.u32 %v5397_v54, %v4320_v1  ;;  %v4816_v54 = vld [vmem:[%s8823_s1 + $0x3f8] sm:$0xf0]  ;;  %v5589_v1 = vld [vmem:[%s8823_s1 + $0x60c] sm:$0xf] }
 0x27b   :  { %2290 = vmatmul.bf16.gmra.mxu1 %v6359_v57  ;;  %2509 = vmatpush.bf16.msrb.mxu2 %v4451_v37  ;;  %v2837_v13 = vmul.f32 0.2, %v2096_v43 }
 0x27c   :  { %2460 = vmatpush.bf16.msrb.mxu1 %v4323_v15  ;;  %v5088_v15 = vld [vmem:[%s8823_s1 + $0x618] sm:$0xf0] }
 0x27d   :  { %2388 = vmatmul.bf16.gmra.mxu3 %v8986_v61  ;;  %v2144_v48 = vpop.f32.mrf.mxu2 }
 0x27e   :  { %v2145_v7 = vadd.f32 %v2144_v48, %v7529_v58  ;;  %v2048_v40 = vpop.f32.mrf.mxu0 }
 0x27f   :  { %v2049_v38 = vadd.f32 %v2048_v40, %v7456_v11  ;;  %v2901_v11 = vmax.f32 %v2096_v43, %v2837_v13  ;;  %v5585_v43 = vld [vmem:[%s8823_s1 + $0x5ec] sm:$0xf] }
 0x280   :  { %v2193_v23 = vpop.f32.mrf.mxu3  ;;  %v2097_v35 = vpop.f32.mrf.mxu1 }
 0x281   :  { %v7706_v14 = vadd.f32 %v2193_v23, %v2145_v7  ;;  %v2098_v46 = vadd.f32 %v2097_v35, %v2049_v38  ;;  %v9002_v38 = vld [vmem:[#allocation42_spill] sm:$0xff] }
 0x283   :  { %v2841_v34 = vmul.f32 0.2, %v2098_v46 }
 0x285   :  { %v2905_v48 = vmax.f32 %v2098_v46, %v2841_v34  ;;  %v2146_v19 = vpop.f32.mrf.mxu2  ;;  %v4819_v46 = vor.u32 %v5521_v5, %v4816_v54 }
 0x286   :  { %v2147_v26 = vadd.f32 %v2146_v19, %v7529_v58  ;;  %v2051_v7 = vpop.f32.mrf.mxu0  ;;  %v5091_v19 = vor.u32 %v5589_v1, %v5088_v15 }
 0x287   :  { %v2052_v23 = vadd.f32 %v2051_v7, %v7483_v36  ;;  %v7716_v37 = vpack.c.bf16 %v2905_v48, %v2901_v11  ;;  %v5072_v36 = vld [vmem:[%s8823_s1 + $0x5f8] sm:$0xf0]  ;;  %2600 = vmatpush.bf16.msra.mxu0 %v4819_v46 }
 0x288   :  { %v2195_v53 = vpop.f32.mrf.mxu3  ;;  %v2100_v40 = vpop.f32.mrf.mxu1  ;;  %v5075_v35 = vor.u32 %v5585_v43, %v5072_v36  ;;  %2754 = vmatpush.bf16.msra.mxu3 %v5091_v19 }
 0x289   :  { %9001 = vst [vmem:[#allocation24_spill] sm:$0xff] %v7716_v37  ;;  %v7718_v30 = vadd.f32 %v2195_v53, %v2147_v26  ;;  %v2101_v6 = vadd.f32 %v2100_v40, %v2052_v23  ;;  %2246 = vmatmul.bf16.gmra.mxu0 %v6411_v17  ;;  %v5553_v23 = vld [vmem:[%s8823_s1 + $0x4ec] sm:$0xf]  ;;  %v4944_v40 = vld [vmem:[%s8823_s1 + $0x4f8] sm:$0xf0] }
 0x28a   :  { %2344 = vmatmul.bf16.gmra.mxu2 %v9002_v38  ;;  %v4947_v5 = vor.u32 %v5553_v23, %v4944_v40  ;;  %v5517_v40 = vld [vmem:[%s8823_s1 + $0x3cc] sm:$0xf] }
 0x28b   :  { %2295 = vmatmul.bf16.gmra.mxu1 %v6413_v22  ;;  %2698 = vmatpush.bf16.msra.mxu2 %v5075_v35  ;;  %v2845_v43 = vmul.f32 0.2, %v2101_v6 }
 0x28c   :  { %2649 = vmatpush.bf16.msra.mxu1 %v4947_v5 }
 0x28d   :  { %2393 = vmatmul.bf16.gmra.mxu3 %v8989_v49  ;;  %v2149_v13 = vpop.f32.mrf.mxu2  ;;  %v2909_v54 = vmax.f32 %v2101_v6, %v2845_v43  ;;  %v9004_v49 = vld [vmem:[#allocation26_spill] sm:$0xff]  ;;  %v4800_v43 = vld [vmem:[%s8823_s1 + $0x3d8] sm:$0xf0] }
 0x28e   :  { %v2150_v34 = vadd.f32 %v2149_v13, %v7529_v58  ;;  %v2053_v48 = vpop.f32.mrf.mxu0  ;;  %v5581_v6 = vld [vmem:[%s8823_s1 + $0x5cc] sm:$0xf]  ;;  %v4803_v5 = vor.u32 %v5517_v40, %v4800_v43 }
 0x28f   :  { %v2054_v26 = vadd.f32 %v2053_v48, %v7493_v18 }
 0x290   :  { %v2198_v11 = vpop.f32.mrf.mxu3  ;;  %v2102_v53 = vpop.f32.mrf.mxu1  ;;  %2601 = vmatpush.bf16.msra.mxu0 %v4803_v5 }
 0x291   :  { %v7744_v7 = vadd.f32 %v2198_v11, %v2150_v34  ;;  %v2103_v36 = vadd.f32 %v2102_v53, %v2054_v26  ;;  %v9005_v26 = vld [vmem:[#allocation27_spill] sm:$0xff]  ;;  %v9006_v53 = vld [vmem:[#allocation45_spill] sm:$0xff] }
 0x293   :  { %v2849_v35 = vmul.f32 0.2, %v2103_v36 }
 0x295   :  { %v2913_v18 = vmax.f32 %v2103_v36, %v2849_v35  ;;  %v2151_v1 = vpop.f32.mrf.mxu2 }
 0x296   :  { %v2152_v13 = vadd.f32 %v2151_v1, %v7529_v58  ;;  %v2056_v15 = vpop.f32.mrf.mxu0 }
 0x297   :  { %v2057_v34 = vadd.f32 %v2056_v15, %v7514_v60  ;;  %v7754_v48 = vpack.c.bf16 %v2913_v18, %v2909_v54  ;;  %v5056_v60 = vld [vmem:[%s8823_s1 + $0x5d8] sm:$0xf0]  ;;  %v5549_v15 = vld [vmem:[%s8823_s1 + $0x4cc] sm:$0xf] }
 0x298   :  { %v2200_v46 = vpop.f32.mrf.mxu3  ;;  %v2105_v11 = vpop.f32.mrf.mxu1  ;;  %v5059_v23 = vor.u32 %v5581_v6, %v5056_v60 }
 0x299   :  { %9003 = vst [vmem:[#allocation33_spill] sm:$0xff] %v7754_v48  ;;  %v7756_v19 = vadd.f32 %v2200_v46, %v2152_v13  ;;  %v2106_v37 = vadd.f32 %v2105_v11, %v2057_v34  ;;  %2251 = vmatmul.bf16.gmra.mxu0 %v9004_v49  ;;  %v4928_v34 = vld [vmem:[%s8823_s1 + $0x4d8] sm:$0xf0] }
 0x29a   :  { %2349 = vmatmul.bf16.gmra.mxu2 %v9006_v53  ;;  %v4931_v60 = vor.u32 %v5549_v15, %v4928_v34  ;;  %v4784_v34 = vld [vmem:[%s8823_s1 + $0x3b8] sm:$0xf0] }
 0x29b   :  { %2300 = vmatmul.bf16.gmra.mxu1 %v9005_v26  ;;  %2699 = vmatpush.bf16.msra.mxu2 %v5059_v23  ;;  %v2853_v11 = vmul.f32 0.2, %v2106_v37 }
 0x29c   :  { %2650 = vmatpush.bf16.msra.mxu1 %v4931_v60 }
 0x29d   :  { %2398 = vmatmul.bf16.gmra.mxu3 %v8992_v51  ;;  %v2154_v36 = vpop.f32.mrf.mxu2  ;;  %v2917_v23 = vmax.f32 %v2106_v37, %v2853_v11  ;;  %v9009_v37 = vld [vmem:[#allocation10_spill] sm:$0xff] }
 0x29e   :  { %v2155_v35 = vadd.f32 %v2154_v36, %v7529_v58  ;;  %v2058_v18 = vpop.f32.mrf.mxu0 }
 0x29f   :  { %v2059_v1 = vadd.f32 %v2058_v18, %v7523_v33 }
 0x2a0   :  { %v2203_v54 = vpop.f32.mrf.mxu3  ;;  %v2107_v13 = vpop.f32.mrf.mxu1 }
 0x2a1   :  { %v7776_v46 = vadd.f32 %v2203_v54, %v2155_v35  ;;  %v2108_v6 = vadd.f32 %v2107_v13, %v2059_v1  ;;  %v9008_v1 = vld [vmem:[#allocation9_spill] sm:$0xff]  ;;  %v5513_v13 = vld [vmem:[%s8823_s1 + $0x3ac] sm:$0xf] }
 0x2a3   :  { %v2857_v40 = vmul.f32 0.2, %v2108_v6 }
 0x2a5   :  { %v2921_v43 = vmax.f32 %v2108_v6, %v2857_v40  ;;  %v2156_v33 = vpop.f32.mrf.mxu2  ;;  %v4787_v6 = vor.u32 %v5513_v13, %v4784_v34  ;;  %v9011_v34 = vld [vmem:[#allocation12_spill] sm:$0xff] }
 0x2a6   :  { %v2157_v36 = vadd.f32 %v2156_v33, %v7529_v58  ;;  %v2217_v35 = vpop.f32.mrf.mxu0  ;;  %v5577_v58 = vld [vmem:[%s8823_s1 + $0x5ac] sm:$0xf] }
 0x2a7   :  { %v2218_v54 = vadd.f32 %v2217_v35, %v7546_v44  ;;  %v7786_v48 = vpack.c.bf16 %v2921_v43, %v2917_v23  ;;  %v5040_v44 = vld [vmem:[%s8823_s1 + $0x5b8] sm:$0xf0]  ;;  %2602 = vmatpush.bf16.msra.mxu0 %v4787_v6  ;;  %v5573_v6 = vld [vmem:[%s8823_s1 + $0x58c] sm:$0xf] }
 0x2a8   :  { %v2205_v5 = vpop.f32.mrf.mxu3  ;;  %v2266_v18 = vpop.f32.mrf.mxu1  ;;  %v5043_v15 = vor.u32 %v5577_v58, %v5040_v44 }
 0x2a9   :  { %9007 = vst [vmem:[#allocation42_spill] sm:$0xff] %v7786_v48  ;;  %v7788_v51 = vadd.f32 %v2205_v5, %v2157_v36  ;;  %v2267_v53 = vadd.f32 %v2266_v18, %v2218_v54  ;;  %5108 = vmatmul.msk.bf16.vlgmr.msrb.gmra.mxu0 %vm1399_vm0, %v8971_v29  ;;  %v5545_v36 = vld [vmem:[%s8823_s1 + $0x4ac] sm:$0xf]  ;;  %v4912_v5 = vld [vmem:[%s8823_s1 + $0x4b8] sm:$0xf0] }
 0x2aa   :  { %2510 = vmatmul.bf16.vlgmr.msrb.gmra.mxu2 %v9009_v37  ;;  %v4915_v54 = vor.u32 %v5545_v36, %v4912_v5 }
 0x2ab   :  { %2461 = vmatmul.bf16.vlgmr.msrb.gmra.mxu1 %v9008_v1  ;;  %2700 = vmatpush.bf16.msra.mxu2 %v5043_v15  ;;  %v9010_v15 = vld [vmem:[#allocation32_spill] sm:$0xff] }
 0x2ac   :  { %2651 = vmatpush.bf16.msra.mxu1 %v4915_v54 }
 0x2ad   :  { %2559 = vmatmul.bf16.vlgmr.msrb.gmra.mxu3 %v6069_v52  ;;  %v2315_v11 = vpop.f32.mrf.mxu2 }
 0x2ae   :  { %v2316_v52 = vadd.f32 %v2315_v11, %v2267_v53  ;;  %v2219_v40 = vpop.f32.mrf.mxu0  ;;  %v9012_v11 = vld [vmem:[#allocation13_spill] sm:$0xff] }
 0x2af   :  { %v2220_v23 = vadd.f32 %v2219_v40, %v7558_v55  ;;  %v4768_v40 = vld [vmem:[%s8823_s1 + $0x398] sm:$0xf0] }
 0x2b0   :  { %v2364_v60 = vpop.f32.mrf.mxu3  ;;  %v2268_v43 = vpop.f32.mrf.mxu1 }
 0x2b1   :  { %v7808_v33 = vadd.f32 %v2364_v60, %v2316_v52  ;;  %v2269_v35 = vadd.f32 %v2268_v43, %v2220_v23  ;;  %v5509_v52 = vld [vmem:[%s8823_s1 + $0x38c] sm:$0xf] }
 0x2b2   :  { %v4771_v43 = vor.u32 %v5509_v52, %v4768_v40  ;;  %v9014_v40 = vld [vmem:[#allocation14_spill] sm:$0xff] }
 0x2b4   :  { %2603 = vmatpush.bf16.msra.mxu0 %v4771_v43  ;;  %v5569_v43 = vld [vmem:[%s8823_s1 + $0x56c] sm:$0xf] }
 0x2b5   :  { %v2317_v53 = vpop.f32.mrf.mxu2 }
 0x2b6   :  { %v2318_v18 = vadd.f32 %v2317_v53, %v2269_v35  ;;  %v2222_v37 = vpop.f32.mrf.mxu0 }
 0x2b7   :  { %v2223_v55 = vadd.f32 %v2222_v37, %v7578_v50  ;;  %v5024_v50 = vld [vmem:[%s8823_s1 + $0x598] sm:$0xf0] }
 0x2b8   :  { %v2366_v1 = vpop.f32.mrf.mxu3  ;;  %v2271_v58 = vpop.f32.mrf.mxu1  ;;  %v5027_v60 = vor.u32 %v5573_v6, %v5024_v50 }
 0x2b9   :  { %v7817_v44 = vadd.f32 %v2366_v1, %v2318_v18  ;;  %v2272_v13 = vadd.f32 %v2271_v58, %v2223_v55  ;;  %5109 = vmatmul.msk.bf16.gmra.mxu0 %vm1399_vm0, %v9010_v15  ;;  %v5541_v18 = vld [vmem:[%s8823_s1 + $0x48c] sm:$0xf]  ;;  %v4896_v1 = vld [vmem:[%s8823_s1 + $0x498] sm:$0xf0] }
 0x2ba   :  { %2515 = vmatmul.bf16.gmra.mxu2 %v9012_v11  ;;  %v4899_v55 = vor.u32 %v5541_v18, %v4896_v1 }
 0x2bb   :  { %2466 = vmatmul.bf16.gmra.mxu1 %v9011_v34  ;;  %2701 = vmatpush.bf16.msra.mxu2 %v5027_v60  ;;  %v9013_v60 = vld [vmem:[#allocation35_spill] sm:$0xff] }
 0x2bc   :  { %2652 = vmatpush.bf16.msra.mxu1 %v4899_v55 }
 0x2bd   :  { %2564 = vmatmul.bf16.gmra.mxu3 %v6141_v20  ;;  %v2320_v23 = vpop.f32.mrf.mxu2 }
 0x2be   :  { %v2321_v20 = vadd.f32 %v2320_v23, %v2272_v13  ;;  %v2224_v5 = vpop.f32.mrf.mxu0  ;;  %v9015_v23 = vld [vmem:[#allocation15_spill] sm:$0xff] }
 0x2bf   :  { %v2225_v35 = vadd.f32 %v2224_v5, %v7590_v47  ;;  %v4752_v5 = vld [vmem:[%s8823_s1 + $0x378] sm:$0xf0] }
 0x2c0   :  { %v2369_v36 = vpop.f32.mrf.mxu3  ;;  %v2273_v54 = vpop.f32.mrf.mxu1 }
 0x2c1   :  { %v7837_v53 = vadd.f32 %v2369_v36, %v2321_v20  ;;  %v2274_v37 = vadd.f32 %v2273_v54, %v2225_v35  ;;  %v5505_v20 = vld [vmem:[%s8823_s1 + $0x36c] sm:$0xf] }
 0x2c2   :  { %v4755_v54 = vor.u32 %v5505_v20, %v4752_v5  ;;  %v9017_v5 = vld [vmem:[#allocation16_spill] sm:$0xff] }
 0x2c4   :  { %2604 = vmatpush.bf16.msra.mxu0 %v4755_v54  ;;  %v5565_v54 = vld [vmem:[%s8823_s1 + $0x54c] sm:$0xf] }
 0x2c5   :  { %v2322_v58 = vpop.f32.mrf.mxu2 }
 0x2c6   :  { %v2323_v13 = vadd.f32 %v2322_v58, %v2274_v37  ;;  %v2227_v11 = vpop.f32.mrf.mxu0 }
 0x2c7   :  { %v2228_v47 = vadd.f32 %v2227_v11, %v7610_v31  ;;  %v5008_v31 = vld [vmem:[%s8823_s1 + $0x578] sm:$0xf0] }
 0x2c8   :  { %v2371_v34 = vpop.f32.mrf.mxu3  ;;  %v2276_v6 = vpop.f32.mrf.mxu1  ;;  %v5011_v36 = vor.u32 %v5569_v43, %v5008_v31 }
 0x2c9   :  { %v7846_v50 = vadd.f32 %v2371_v34, %v2323_v13  ;;  %v2277_v52 = vadd.f32 %v2276_v6, %v2228_v47  ;;  %5110 = vmatmul.msk.bf16.gmra.mxu0 %vm1399_vm0, %v9013_v60  ;;  %v5537_v13 = vld [vmem:[%s8823_s1 + $0x46c] sm:$0xf]  ;;  %v4880_v34 = vld [vmem:[%s8823_s1 + $0x478] sm:$0xf0] }
 0x2ca   :  { %2520 = vmatmul.bf16.gmra.mxu2 %v9015_v23  ;;  %v4883_v47 = vor.u32 %v5537_v13, %v4880_v34 }
 0x2cb   :  { %2471 = vmatmul.bf16.gmra.mxu1 %v9014_v40  ;;  %2702 = vmatpush.bf16.msra.mxu2 %v5011_v36  ;;  %v9016_v36 = vld [vmem:[#allocation37_spill] sm:$0xff] }
 0x2cc   :  { %2653 = vmatpush.bf16.msra.mxu1 %v4883_v47 }
 0x2cd   :  { %2569 = vmatmul.bf16.gmra.mxu3 %v6195_v41  ;;  %v2325_v35 = vpop.f32.mrf.mxu2 }
 0x2ce   :  { %v2326_v41 = vadd.f32 %v2325_v35, %v2277_v52  ;;  %v2229_v1 = vpop.f32.mrf.mxu0  ;;  %v9018_v35 = vld [vmem:[#allocation17_spill] sm:$0xff] }
 0x2cf   :  { %v2230_v37 = vadd.f32 %v2229_v1, %v7622_v4  ;;  %v4736_v1 = vld [vmem:[%s8823_s1 + $0x358] sm:$0xf0] }
 0x2d0   :  { %v2374_v18 = vpop.f32.mrf.mxu3  ;;  %v2278_v55 = vpop.f32.mrf.mxu1 }
 0x2d1   :  { %v7866_v58 = vadd.f32 %v2374_v18, %v2326_v41  ;;  %v2279_v11 = vadd.f32 %v2278_v55, %v2230_v37  ;;  %v5501_v41 = vld [vmem:[%s8823_s1 + $0x34c] sm:$0xf] }
 0x2d2   :  { %v4739_v55 = vor.u32 %v5501_v41, %v4736_v1  ;;  %v9020_v1 = vld [vmem:[#allocation18_spill] sm:$0xff] }
 0x2d4   :  { %2605 = vmatpush.bf16.msra.mxu0 %v4739_v55  ;;  %v5561_v55 = vld [vmem:[%s8823_s1 + $0x52c] sm:$0xf] }
 0x2d5   :  { %v2327_v6 = vpop.f32.mrf.mxu2 }
 0x2d6   :  { %v2328_v52 = vadd.f32 %v2327_v6, %v2279_v11  ;;  %v2232_v23 = vpop.f32.mrf.mxu0 }
 0x2d7   :  { %v2233_v4 = vadd.f32 %v2232_v23, %v7642_v62  ;;  %v4992_v62 = vld [vmem:[%s8823_s1 + $0x558] sm:$0xf0] }
 0x2d8   :  { %v2376_v40 = vpop.f32.mrf.mxu3  ;;  %v2281_v43 = vpop.f32.mrf.mxu1  ;;  %v4995_v18 = vor.u32 %v5565_v54, %v4992_v62 }
 0x2d9   :  { %v7875_v31 = vadd.f32 %v2376_v40, %v2328_v52  ;;  %v2282_v20 = vadd.f32 %v2281_v43, %v2233_v4  ;;  %5111 = vmatmul.msk.bf16.gmra.mxu0 %vm1399_vm0, %v9016_v36  ;;  %v5533_v52 = vld [vmem:[%s8823_s1 + $0x44c] sm:$0xf]  ;;  %v4864_v40 = vld [vmem:[%s8823_s1 + $0x458] sm:$0xf0] }
 0x2da   :  { %2525 = vmatmul.bf16.gmra.mxu2 %v9018_v35  ;;  %v4867_v4 = vor.u32 %v5533_v52, %v4864_v40 }
 0x2db   :  { %2476 = vmatmul.bf16.gmra.mxu1 %v9017_v5  ;;  %2703 = vmatpush.bf16.msra.mxu2 %v4995_v18  ;;  %v9019_v18 = vld [vmem:[#allocation39_spill] sm:$0xff] }
 0x2dc   :  { %2654 = vmatpush.bf16.msra.mxu1 %v4867_v4 }
 0x2dd   :  { %2574 = vmatmul.bf16.gmra.mxu3 %v6249_v2  ;;  %v2330_v37 = vpop.f32.mrf.mxu2 }
 0x2de   :  { %v2331_v2 = vadd.f32 %v2330_v37, %v2282_v20  ;;  %v2234_v34 = vpop.f32.mrf.mxu0  ;;  %v9021_v37 = vld [vmem:[#allocation19_spill] sm:$0xff] }
 0x2df   :  { %v2235_v11 = vadd.f32 %v2234_v34, %v7654_v24  ;;  %v4720_v34 = vld [vmem:[%s8823_s1 + $0x338] sm:$0xf0] }
 0x2e0   :  { %v2379_v13 = vpop.f32.mrf.mxu3  ;;  %v2283_v47 = vpop.f32.mrf.mxu1 }
 0x2e1   :  { %v7895_v6 = vadd.f32 %v2379_v13, %v2331_v2  ;;  %v2284_v23 = vadd.f32 %v2283_v47, %v2235_v11  ;;  %v5497_v2 = vld [vmem:[%s8823_s1 + $0x32c] sm:$0xf] }
 0x2e2   :  { %v4723_v47 = vor.u32 %v5497_v2, %v4720_v34  ;;  %v9023_v34 = vld [vmem:[#allocation20_spill] sm:$0xff] }
 0x2e4   :  { %2606 = vmatpush.bf16.msra.mxu0 %v4723_v47  ;;  %v5557_v47 = vld [vmem:[%s8823_s1 + $0x50c] sm:$0xf] }
 0x2e5   :  { %v2332_v43 = vpop.f32.mrf.mxu2 }
 0x2e6   :  { %v2333_v20 = vadd.f32 %v2332_v43, %v2284_v23  ;;  %v2237_v35 = vpop.f32.mrf.mxu0 }
 0x2e7   :  { %v2238_v24 = vadd.f32 %v2237_v35, %v7674_v63  ;;  %v4976_v63 = vld [vmem:[%s8823_s1 + $0x538] sm:$0xf0] }
 0x2e8   :  { %v2381_v5 = vpop.f32.mrf.mxu3  ;;  %v2286_v54 = vpop.f32.mrf.mxu1  ;;  %v4979_v13 = vor.u32 %v5561_v55, %v4976_v63 }
 0x2e9   :  { %v7904_v62 = vadd.f32 %v2381_v5, %v2333_v20  ;;  %v2287_v41 = vadd.f32 %v2286_v54, %v2238_v24  ;;  %5112 = vmatmul.msk.bf16.gmra.mxu0 %vm1399_vm0, %v9019_v18  ;;  %v5529_v20 = vld [vmem:[%s8823_s1 + $0x42c] sm:$0xf]  ;;  %v4848_v5 = vld [vmem:[%s8823_s1 + $0x438] sm:$0xf0] }
 0x2ea   :  { %2530 = vmatmul.bf16.gmra.mxu2 %v9021_v37  ;;  %v4851_v24 = vor.u32 %v5529_v20, %v4848_v5 }
 0x2eb   :  { %2481 = vmatmul.bf16.gmra.mxu1 %v9020_v1  ;;  %2704 = vmatpush.bf16.msra.mxu2 %v4979_v13  ;;  %v9022_v13 = vld [vmem:[#allocation41_spill] sm:$0xff] }
 0x2ec   :  { %2655 = vmatpush.bf16.msra.mxu1 %v4851_v24 }
 0x2ed   :  { %2579 = vmatmul.bf16.gmra.mxu3 %v6303_v27  ;;  %v2335_v11 = vpop.f32.mrf.mxu2 }
 0x2ee   :  { %v2336_v27 = vadd.f32 %v2335_v11, %v2287_v41  ;;  %v2239_v40 = vpop.f32.mrf.mxu0  ;;  %v9024_v11 = vld [vmem:[#allocation21_spill] sm:$0xff] }
 0x2ef   :  { %v2240_v23 = vadd.f32 %v2239_v40, %v7686_v12  ;;  %v4704_v40 = vld [vmem:[%s8823_s1 + $0x318] sm:$0xf0] }
 0x2f0   :  { %v2384_v52 = vpop.f32.mrf.mxu3  ;;  %v2288_v4 = vpop.f32.mrf.mxu1 }
 0x2f1   :  { %v7924_v43 = vadd.f32 %v2384_v52, %v2336_v27  ;;  %v2289_v35 = vadd.f32 %v2288_v4, %v2240_v23  ;;  %v5493_v27 = vld [vmem:[%s8823_s1 + $0x30c] sm:$0xf] }
 0x2f2   :  { %v4707_v4 = vor.u32 %v5493_v27, %v4704_v40  ;;  %v9026_v40 = vld [vmem:[#allocation22_spill] sm:$0xff] }
 0x2f4   :  { %2607 = vmatpush.bf16.msra.mxu0 %v4707_v4 }
 0x2f5   :  { %v2337_v54 = vpop.f32.mrf.mxu2 }
 0x2f6   :  { %v2338_v41 = vadd.f32 %v2337_v54, %v2289_v35  ;;  %v2242_v37 = vpop.f32.mrf.mxu0 }
 0x2f7   :  { %v2243_v12 = vadd.f32 %v2242_v37, %v7706_v14  ;;  %v4960_v14 = vld [vmem:[%s8823_s1 + $0x518] sm:$0xf0] }
 0x2f8   :  { %v2386_v1 = vpop.f32.mrf.mxu3  ;;  %v2291_v55 = vpop.f32.mrf.mxu1  ;;  %v4963_v52 = vor.u32 %v5557_v47, %v4960_v14 }
 0x2f9   :  { %v7933_v63 = vadd.f32 %v2386_v1, %v2338_v41  ;;  %v2292_v2 = vadd.f32 %v2291_v55, %v2243_v12  ;;  %5113 = vmatmul.msk.bf16.gmra.mxu0 %vm1399_vm0, %v9022_v13  ;;  %v5525_v41 = vld [vmem:[%s8823_s1 + $0x40c] sm:$0xf]  ;;  %v4832_v1 = vld [vmem:[%s8823_s1 + $0x418] sm:$0xf0] }
 0x2fa   :  { %2535 = vmatmul.bf16.gmra.mxu2 %v9024_v11  ;;  %v4835_v12 = vor.u32 %v5525_v41, %v4832_v1 }
 0x2fb   :  { %2486 = vmatmul.bf16.gmra.mxu1 %v9023_v34  ;;  %2705 = vmatpush.bf16.msra.mxu2 %v4963_v52  ;;  %v9025_v52 = vld [vmem:[#allocation44_spill] sm:$0xff] }
 0x2fc   :  { %2656 = vmatpush.bf16.msra.mxu1 %v4835_v12 }
 0x2fd   :  { %2584 = vmatmul.bf16.gmra.mxu3 %v6357_v56  ;;  %v2340_v23 = vpop.f32.mrf.mxu2 }
 0x2fe   :  { %v2341_v56 = vadd.f32 %v2340_v23, %v2292_v2  ;;  %v2244_v5 = vpop.f32.mrf.mxu0  ;;  %v9027_v23 = vld [vmem:[#allocation23_spill] sm:$0xff] }
 0x2ff   :  { %v2245_v35 = vadd.f32 %v2244_v5, %v7718_v30 }
 0x300   :  { %v2389_v20 = vpop.f32.mrf.mxu3  ;;  %v2293_v24 = vpop.f32.mrf.mxu1 }
 0x301   :  { %v7953_v54 = vadd.f32 %v2389_v20, %v2341_v56  ;;  %v2294_v37 = vadd.f32 %v2293_v24, %v2245_v35 }
 0x305   :  { %v2342_v55 = vpop.f32.mrf.mxu2 }
 0x306   :  { %v2343_v2 = vadd.f32 %v2342_v55, %v2294_v37  ;;  %v2247_v11 = vpop.f32.mrf.mxu0 }
 0x307   :  { %v2248_v30 = vadd.f32 %v2247_v11, %v7744_v7 }
 0x308   :  { %v2391_v34 = vpop.f32.mrf.mxu3  ;;  %v2296_v47 = vpop.f32.mrf.mxu1 }
 0x309   :  { %v7962_v14 = vadd.f32 %v2391_v34, %v2343_v2  ;;  %v2297_v27 = vadd.f32 %v2296_v47, %v2248_v30  ;;  %5114 = vmatmul.msk.bf16.gmra.mxu0 %vm1399_vm0, %v9025_v52 }
 0x30a   :  { %2540 = vmatmul.bf16.gmra.mxu2 %v9027_v23 }
 0x30b   :  { %2491 = vmatmul.bf16.gmra.mxu1 %v9026_v40 }
 0x30d   :  { %2589 = vmatmul.bf16.gmra.mxu3 %v6411_v17  ;;  %v2345_v4 = vpop.f32.mrf.mxu2 }
 0x30e   :  { %v2346_v56 = vadd.f32 %v2345_v4, %v2297_v27  ;;  %v2249_v5 = vpop.f32.mrf.mxu0 }
 0x30f   :  { %v2250_v35 = vadd.f32 %v2249_v5, %v7756_v19  ;;  %v9028_v19 = vld [vmem:[#allocation25_spill] sm:$0xff] }
 0x310   :  { %v2394_v20 = vpop.f32.mrf.mxu3  ;;  %v2298_v7 = vpop.f32.mrf.mxu1 }
 0x311   :  { %v7970_v24 = vadd.f32 %v2394_v20, %v2346_v56  ;;  %v2299_v41 = vadd.f32 %v2298_v7, %v2250_v35  ;;  %v5310_v56 = vld [vmem:[#allocation3 + $0x170] sm:$0xf]  ;;  %v5639_v20 = vld [vmem:[#allocation3 + $0x174] sm:$0xf0] }
 0x312   :  { %v5311_v35 = vor.u32 %v5639_v20, %v5310_v56  ;;  %v5182_v7 = vld [vmem:[#allocation3 + $0x70] sm:$0xf]  ;;  %v9030_v20 = vld [vmem:[#allocation28_spill] sm:$0xff] }
 0x314   :  { %3444 = vmatpush.bf16.msrb.mxu2 %v5311_v35 }
 0x315   :  { %v2347_v1 = vpop.f32.mrf.mxu2 }
 0x316   :  { %v2348_v37 = vadd.f32 %v2347_v1, %v2299_v41  ;;  %v2252_v55 = vpop.f32.mrf.mxu0  ;;  %v5374_v41 = vld [vmem:[#allocation3 + $0x1f0] sm:$0xf] }
 0x317   :  { %v2253_v2 = vadd.f32 %v2252_v55, %v7776_v46 }
 0x318   :  { %v2396_v12 = vpop.f32.mrf.mxu3  ;;  %v2301_v34 = vpop.f32.mrf.mxu1 }
 0x319   :  { %v7973_v11 = vadd.f32 %v2396_v12, %v2348_v37  ;;  %v2302_v17 = vadd.f32 %v2301_v34, %v2253_v2  ;;  %5115 = vmatmul.msk.bf16.gmra.mxu0 %vm1399_vm0, %v8993_v0  ;;  %v5655_v37 = vld [vmem:[#allocation3 + $0x1f4] sm:$0xf0] }
 0x31a   :  { %2545 = vmatmul.bf16.gmra.mxu2 %v9028_v19  ;;  %v5623_v12 = vld [vmem:[#allocation3 + $0xf4] sm:$0xf0]  ;;  %v5375_v2 = vor.u32 %v5655_v37, %v5374_v41 }
 0x31b   :  { %2496 = vmatmul.bf16.gmra.mxu1 %v8994_v16  ;;  %v5607_v16 = vld [vmem:[#allocation3 + $0x74] sm:$0xf0] }
 0x31c   :  { %v5183_v1 = vor.u32 %v5607_v16, %v5182_v7  ;;  %3493 = vmatpush.bf16.msrb.mxu3 %v5375_v2 }
 0x31d   :  { %2594 = vmatmul.bf16.gmra.mxu3 %v9004_v49  ;;  %v2350_v30 = vpop.f32.mrf.mxu2  ;;  %v5246_v49 = vld [vmem:[#allocation3 + $0xf0] sm:$0xf] }
 0x31e   :  { %v2351_v47 = vadd.f32 %v2350_v30, %v2302_v17  ;;  %v2254_v40 = vpop.f32.mrf.mxu0  ;;  %v5247_v34 = vor.u32 %v5623_v12, %v5246_v49  ;;  %v5725_v30 = vld [vmem:[%s8824_s2] sm:$0xf]  ;;  %3346 = vmatpush.bf16.msrb.mxu0 %v5183_v1 }
 0x31f   :  { %v2255_v23 = vadd.f32 %v2254_v40, %v7788_v51  ;;  %v5302_v12 = vld [vmem:[#allocation3 + $0x160] sm:$0xf] }
 0x320   :  { %v2399_v27 = vpop.f32.mrf.mxu3  ;;  %v2303_v46 = vpop.f32.mrf.mxu1  ;;  %3395 = vmatpush.bf16.msrb.mxu1 %v5247_v34 }
 0x321   :  { %v7981_v4 = vadd.f32 %v2399_v27, %v2351_v47  ;;  %v2304_v5 = vadd.f32 %v2303_v46, %v2255_v23  ;;  %v7986_v47 = vperm.slane %v5725_v30, 3  ;;  %v9029_v46 = vld [vmem:[#allocation11_spill] sm:$0xff]  ;;  %v5605_v30 = vld [vmem:[#allocation3 + $0x64] sm:$0xf0] }
 0x325   :  { %v2352_v55 = vpop.f32.mrf.mxu2 }
 0x326   :  { %v2353_v17 = vadd.f32 %v2352_v55, %v2304_v5  ;;  %v2413_v19 = vpop.f32.mrf.mxu0  ;;  %v9031_v5 = vld [vmem:[#allocation29_spill] sm:$0xff] }
 0x327   :  { %v2414_v27 = vadd.f32 %v2413_v19, %v7808_v33  ;;  %v5637_v55 = vld [vmem:[#allocation3 + $0x164] sm:$0xf0]  ;;  %v5174_v19 = vld [vmem:[#allocation3 + $0x60] sm:$0xf] }
 0x328   :  { %v2401_v51 = vpop.f32.mrf.mxu3  ;;  %v2462_v40 = vpop.f32.mrf.mxu1  ;;  %v5303_v34 = vor.u32 %v5637_v55, %v5302_v12 }
 0x329   :  { %v7989_v23 = vadd.f32 %v2401_v51, %v2353_v17  ;;  %2608 = vmatmul.bf16.vlgmr.msra.gmra.mxu0 %v9029_v46  ;;  %v2463_v56 = vadd.f32 %v2462_v40, %v7986_v47  ;;  %v2798_v41 = vmul.f32 0.2, %v2414_v27  ;;  %v5175_v46 = vor.u32 %v5605_v30, %v5174_v19  ;;  %v5635_v30 = vld [vmem:[#allocation3 + $0x154] sm:$0xf0] }
 0x32a   :  { %2706 = vmatmul.bf16.vlgmr.msra.gmra.mxu2 %v9031_v5  ;;  %v5621_v5 = vld [vmem:[#allocation3 + $0xe4] sm:$0xf0] }
 0x32b   :  { %2657 = vmatmul.bf16.vlgmr.msra.gmra.mxu1 %v9030_v20  ;;  %v2862_v17 = vmax.f32 %v2414_v27, %v2798_v41  ;;  %3445 = vmatpush.bf16.msrb.mxu2 %v5303_v34  ;;  %v5238_v20 = vld [vmem:[#allocation3 + $0xe0] sm:$0xf] }
 0x32c   :  { %3347 = vmatpush.bf16.msrb.mxu0 %v5175_v46 }
 0x32d   :  { %5116 = vmatmul.msk.bf16.vlgmr.msra.gmra.mxu3 %vm1399_vm0, %v8971_v29  ;;  %v2511_v35 = vpop.f32.mrf.mxu2  ;;  %v5366_v29 = vld [vmem:[#allocation3 + $0x1e0] sm:$0xf] }
 0x32e   :  { %v2512_v7 = vadd.f32 %v2511_v35, %v2463_v56  ;;  %v2415_v33 = vpop.f32.mrf.mxu0  ;;  %v5653_v56 = vld [vmem:[#allocation3 + $0x1e4] sm:$0xf0] }
 0x32f   :  { %v2416_v1 = vadd.f32 %v2415_v33, %v7817_v44 }
 0x330   :  { %v2560_v16 = vpop.f32.mrf.mxu3  ;;  %v2464_v37 = vpop.f32.mrf.mxu1 }
 0x331   :  { %v7998_v49 = vadd.f32 %v2560_v16, %v2512_v7  ;;  %v2802_v2 = vmul.f32 0.2, %v2416_v1  ;;  %v2465_v40 = vadd.f32 %v2464_v37, %v7986_v47  ;;  %v5367_v7 = vor.u32 %v5653_v56, %v5366_v29  ;;  %v5603_v56 = vld [vmem:[#allocation3 + $0x54] sm:$0xf0] }
 0x332   :  { %v5239_v16 = vor.u32 %v5621_v5, %v5238_v20 }
 0x333   :  { %v2866_v51 = vmax.f32 %v2416_v1, %v2802_v2  ;;  %3494 = vmatpush.bf16.msrb.mxu3 %v5367_v7  ;;  %v5230_v7 = vld [vmem:[#allocation3 + $0xd0] sm:$0xf] }
 0x334   :  { %3396 = vmatpush.bf16.msrb.mxu1 %v5239_v16  ;;  %v5619_v16 = vld [vmem:[#allocation3 + $0xd4] sm:$0xf0] }
 0x335   :  { %v8001_v44 = vpack.c.bf16 %v2866_v51, %v2862_v17  ;;  %v2513_v35 = vpop.f32.mrf.mxu2 }
 0x336   :  { %v2514_v33 = vadd.f32 %v2513_v35, %v2465_v40  ;;  %v2418_v12 = vpop.f32.mrf.mxu0  ;;  %v5651_v35 = vld [vmem:[#allocation3 + $0x1d4] sm:$0xf0] }
 0x337   :  { %v2419_v27 = vadd.f32 %v2418_v12, %v7837_v53  ;;  %v5231_v12 = vor.u32 %v5619_v16, %v5230_v7 }
 0x338   :  { %v2562_v48 = vpop.f32.mrf.mxu3  ;;  %v2467_v41 = vpop.f32.mrf.mxu1 }
 0x339   :  { %v8004_v1 = vadd.f32 %v2562_v48, %v2514_v33  ;;  %2613 = vmatmul.bf16.gmra.mxu0 %v6143_v21  ;;  %v2468_v37 = vadd.f32 %v2467_v41, %v7986_v47  ;;  %v2806_v17 = vmul.f32 0.2, %v2419_v27  ;;  %v5294_v21 = vld [vmem:[#allocation3 + $0x150] sm:$0xf]  ;;  %3397 = vmatpush.bf16.msrb.mxu1 %v5231_v12  ;;  %v5617_v12 = vld [vmem:[#allocation3 + $0xc4] sm:$0xf0] }
 0x33a   :  { %2711 = vmatmul.bf16.gmra.mxu2 %v8974_v25  ;;  %v5295_v40 = vor.u32 %v5635_v30, %v5294_v21  ;;  %v5166_v25 = vld [vmem:[#allocation3 + $0x50] sm:$0xf] }
 0x33b   :  { %2662 = vmatmul.bf16.gmra.mxu1 %v6583_v45  ;;  %v2870_v45 = vmax.f32 %v2419_v27, %v2806_v17  ;;  %v5167_v5 = vor.u32 %v5603_v56, %v5166_v25  ;;  %v5633_v25 = vld [vmem:[#allocation3 + $0x144] sm:$0xf0] }
 0x33c   :  { %3446 = vmatpush.bf16.msrb.mxu2 %v5295_v40 }
 0x33d   :  { %5117 = vmatmul.msk.bf16.gmra.mxu3 %vm1399_vm0, %v9010_v15  ;;  %v2516_v55 = vpop.f32.mrf.mxu2  ;;  %v5358_v15 = vld [vmem:[#allocation3 + $0x1d0] sm:$0xf]  ;;  %3348 = vmatpush.bf16.msrb.mxu0 %v5167_v5  ;;  %v5158_v5 = vld [vmem:[#allocation3 + $0x40] sm:$0xf] }
 0x33e   :  { %v2517_v2 = vadd.f32 %v2516_v55, %v2468_v37  ;;  %v2420_v53 = vpop.f32.mrf.mxu0  ;;  %v5359_v33 = vor.u32 %v5651_v35, %v5358_v15  ;;  %v5601_v35 = vld [vmem:[#allocation3 + $0x44] sm:$0xf0] }
 0x33f   :  { %v2421_v51 = vadd.f32 %v2420_v53, %v7846_v50  ;;  %v5159_v16 = vor.u32 %v5601_v35, %v5158_v5  ;;  %v5599_v35 = vld [vmem:[#allocation3 + $0x34] sm:$0xf0] }
 0x340   :  { %v2565_v34 = vpop.f32.mrf.mxu3  ;;  %v2469_v48 = vpop.f32.mrf.mxu1  ;;  %3495 = vmatpush.bf16.msrb.mxu3 %v5359_v33  ;;  %v5222_v33 = vld [vmem:[#allocation3 + $0xc0] sm:$0xf] }
 0x341   :  { %v8013_v19 = vadd.f32 %v2565_v34, %v2517_v2  ;;  %v2810_v29 = vmul.f32 0.2, %v2421_v51  ;;  %v2470_v20 = vadd.f32 %v2469_v48, %v7986_v47  ;;  %3349 = vmatpush.bf16.msrb.mxu0 %v5159_v16  ;;  %v5647_v16 = vld [vmem:[#allocation3 + $0x1b4] sm:$0xf0] }
 0x343   :  { %v2874_v46 = vmax.f32 %v2421_v51, %v2810_v29  ;;  %v9032_v51 = vld [vmem:[#allocation34_spill] sm:$0xff] }
 0x345   :  { %v2518_v50 = vpop.f32.mrf.mxu2  ;;  %v8016_v41 = vpack.c.bf16 %v2874_v46, %v2870_v45 }
 0x346   :  { %v2519_v37 = vadd.f32 %v2518_v50, %v2470_v20  ;;  %v2423_v2 = vpop.f32.mrf.mxu0  ;;  %v5649_v50 = vld [vmem:[#allocation3 + $0x1c4] sm:$0xf0] }
 0x347   :  { %v2424_v27 = vadd.f32 %v2423_v2, %v7866_v58 }
 0x348   :  { %v2567_v55 = vpop.f32.mrf.mxu3  ;;  %v2472_v34 = vpop.f32.mrf.mxu1 }
 0x349   :  { %v8019_v53 = vadd.f32 %v2567_v55, %v2519_v37  ;;  %2618 = vmatmul.bf16.gmra.mxu0 %v6197_v42  ;;  %v2473_v17 = vadd.f32 %v2472_v34, %v7986_v47  ;;  %v2814_v29 = vmul.f32 0.2, %v2424_v27  ;;  %v5286_v42 = vld [vmem:[#allocation3 + $0x140] sm:$0xf]  ;;  %v5223_v55 = vor.u32 %v5617_v12, %v5222_v33  ;;  %v5615_v33 = vld [vmem:[#allocation3 + $0xb4] sm:$0xf0] }
 0x34a   :  { %2716 = vmatmul.bf16.gmra.mxu2 %v9032_v51  ;;  %v5287_v15 = vor.u32 %v5633_v25, %v5286_v42 }
 0x34b   :  { %2667 = vmatmul.bf16.gmra.mxu1 %v8997_v39  ;;  %v2878_v39 = vmax.f32 %v2424_v27, %v2814_v29 }
 0x34c   :  { %3447 = vmatpush.bf16.msrb.mxu2 %v5287_v15  ;;  %3398 = vmatpush.bf16.msrb.mxu1 %v5223_v55  ;;  %v5631_v15 = vld [vmem:[#allocation3 + $0x134] sm:$0xf0] }
 0x34d   :  { %5118 = vmatmul.msk.bf16.gmra.mxu3 %vm1399_vm0, %v9013_v60  ;;  %v2521_v48 = vpop.f32.mrf.mxu2  ;;  %v5350_v60 = vld [vmem:[#allocation3 + $0x1c0] sm:$0xf] }
 0x34e   :  { %v2522_v21 = vadd.f32 %v2521_v48, %v2473_v17  ;;  %v2425_v58 = vpop.f32.mrf.mxu0  ;;  %v5351_v37 = vor.u32 %v5649_v50, %v5350_v60  ;;  %v5214_v50 = vld [vmem:[#allocation3 + $0xb0] sm:$0xf] }
 0x34f   :  { %v2426_v40 = vadd.f32 %v2425_v58, %v7875_v31 }
 0x350   :  { %v2570_v30 = vpop.f32.mrf.mxu3  ;;  %v2474_v45 = vpop.f32.mrf.mxu1  ;;  %3496 = vmatpush.bf16.msrb.mxu3 %v5351_v37 }
 0x351   :  { %v8028_v46 = vadd.f32 %v2570_v30, %v2522_v21  ;;  %v2818_v56 = vmul.f32 0.2, %v2426_v40  ;;  %v2475_v7 = vadd.f32 %v2474_v45, %v7986_v47 }
 0x353   :  { %v2882_v20 = vmax.f32 %v2426_v40, %v2818_v56 }
 0x355   :  { %v2523_v31 = vpop.f32.mrf.mxu2  ;;  %v8031_v2 = vpack.c.bf16 %v2882_v20, %v2878_v39 }
 0x356   :  { %v2524_v34 = vadd.f32 %v2523_v31, %v2475_v7  ;;  %v2428_v51 = vpop.f32.mrf.mxu0  ;;  %v5215_v31 = vor.u32 %v5615_v33, %v5214_v50 }
 0x357   :  { %v2429_v27 = vadd.f32 %v2428_v51, %v7895_v6 }
 0x358   :  { %v2572_v17 = vpop.f32.mrf.mxu3  ;;  %v2477_v48 = vpop.f32.mrf.mxu1  ;;  %3399 = vmatpush.bf16.msrb.mxu1 %v5215_v31 }
 0x359   :  { %v8034_v21 = vadd.f32 %v2572_v17, %v2524_v34  ;;  %2623 = vmatmul.bf16.gmra.mxu0 %v6251_v3  ;;  %v2478_v30 = vadd.f32 %v2477_v48, %v7986_v47  ;;  %v2822_v45 = vmul.f32 0.2, %v2429_v27  ;;  %v5278_v3 = vld [vmem:[#allocation3 + $0x130] sm:$0xf] }
 0x35a   :  { %2721 = vmatmul.bf16.gmra.mxu2 %v8980_v59  ;;  %v5279_v20 = vor.u32 %v5631_v15, %v5278_v3  ;;  %v5150_v59 = vld [vmem:[#allocation3 + $0x30] sm:$0xf]  ;;  %v5629_v3 = vld [vmem:[#allocation3 + $0x124] sm:$0xf0] }
 0x35b   :  { %2672 = vmatmul.bf16.gmra.mxu1 %v6701_v8  ;;  %v2886_v8 = vmax.f32 %v2429_v27, %v2822_v45  ;;  %v5151_v7 = vor.u32 %v5599_v35, %v5150_v59  ;;  %v5645_v35 = vld [vmem:[#allocation3 + $0x1a4] sm:$0xf0] }
 0x35c   :  { %3448 = vmatpush.bf16.msrb.mxu2 %v5279_v20 }
 0x35d   :  { %5119 = vmatmul.msk.bf16.gmra.mxu3 %vm1399_vm0, %v9016_v36  ;;  %v2526_v58 = vpop.f32.mrf.mxu2  ;;  %v5342_v36 = vld [vmem:[#allocation3 + $0x1b0] sm:$0xf]  ;;  %3350 = vmatpush.bf16.msrb.mxu0 %v5151_v7 }
 0x35e   :  { %v2527_v29 = vadd.f32 %v2526_v58, %v2478_v30  ;;  %v2430_v6 = vpop.f32.mrf.mxu0  ;;  %v5343_v12 = vor.u32 %v5647_v16, %v5342_v36  ;;  %v5206_v36 = vld [vmem:[#allocation3 + $0xa0] sm:$0xf] }
 0x35f   :  { %v2431_v42 = vadd.f32 %v2430_v6, %v7904_v62 }
 0x360   :  { %v2575_v40 = vpop.f32.mrf.mxu3  ;;  %v2479_v25 = vpop.f32.mrf.mxu1  ;;  %3497 = vmatpush.bf16.msrb.mxu3 %v5343_v12 }
 0x361   :  { %v8043_v56 = vadd.f32 %v2575_v40, %v2527_v29  ;;  %v2826_v39 = vmul.f32 0.2, %v2431_v42  ;;  %v2480_v60 = vadd.f32 %v2479_v25, %v7986_v47 }
 0x363   :  { %v2890_v5 = vmax.f32 %v2431_v42, %v2826_v39 }
 0x365   :  { %v2528_v62 = vpop.f32.mrf.mxu2  ;;  %v8046_v37 = vpack.c.bf16 %v2890_v5, %v2886_v8  ;;  %v5597_v8 = vld [vmem:[#allocation3 + $0x24] sm:$0xf0] }
 0x366   :  { %v2529_v55 = vadd.f32 %v2528_v62, %v2480_v60  ;;  %v2433_v17 = vpop.f32.mrf.mxu0  ;;  %v5613_v60 = vld [vmem:[#allocation3 + $0xa4] sm:$0xf0] }
 0x367   :  { %v2434_v51 = vadd.f32 %v2433_v17, %v7924_v43  ;;  %v5207_v16 = vor.u32 %v5613_v60, %v5206_v36 }
 0x368   :  { %v2577_v34 = vpop.f32.mrf.mxu3  ;;  %v2482_v27 = vpop.f32.mrf.mxu1 }
 0x369   :  { %v8049_v48 = vadd.f32 %v2577_v34, %v2529_v55  ;;  %2628 = vmatmul.bf16.gmra.mxu0 %v6305_v28  ;;  %v2483_v30 = vadd.f32 %v2482_v27, %v7986_v47  ;;  %v2830_v6 = vmul.f32 0.2, %v2434_v51  ;;  %v5270_v28 = vld [vmem:[#allocation3 + $0x120] sm:$0xf]  ;;  %3400 = vmatpush.bf16.msrb.mxu1 %v5207_v16  ;;  %v5609_v16 = vld [vmem:[#allocation3 + $0x84] sm:$0xf0] }
 0x36a   :  { %2726 = vmatmul.bf16.gmra.mxu2 %v8983_v32  ;;  %v5271_v39 = vor.u32 %v5629_v3, %v5270_v28  ;;  %v5142_v32 = vld [vmem:[#allocation3 + $0x20] sm:$0xf]  ;;  %v5198_v28 = vld [vmem:[#allocation3 + $0x90] sm:$0xf]  ;;  %v5611_v3 = vld [vmem:[#allocation3 + $0x94] sm:$0xf0] }
 0x36b   :  { %2677 = vmatmul.bf16.gmra.mxu1 %v6760_v10  ;;  %v2894_v10 = vmax.f32 %v2434_v51, %v2830_v6  ;;  %v5143_v59 = vor.u32 %v5597_v8, %v5142_v32 }
 0x36c   :  { %3449 = vmatpush.bf16.msrb.mxu2 %v5271_v39  ;;  %v5326_v39 = vld [vmem:[#allocation3 + $0x190] sm:$0xf] }
 0x36d   :  { %5120 = vmatmul.msk.bf16.gmra.mxu3 %vm1399_vm0, %v9019_v18  ;;  %v2531_v58 = vpop.f32.mrf.mxu2  ;;  %v5334_v18 = vld [vmem:[#allocation3 + $0x1a0] sm:$0xf]  ;;  %3351 = vmatpush.bf16.msrb.mxu0 %v5143_v59 }
 0x36e   :  { %v2532_v29 = vadd.f32 %v2531_v58, %v2483_v30  ;;  %v2435_v43 = vpop.f32.mrf.mxu0  ;;  %v5335_v7 = vor.u32 %v5645_v35, %v5334_v18  ;;  %v5126_v18 = vld [vmem:[#allocation3] sm:$0xf] }
 0x36f   :  { %v2436_v45 = vadd.f32 %v2435_v43, %v7933_v63  ;;  %v5627_v43 = vld [vmem:[#allocation3 + $0x114] sm:$0xf0]  ;;  %v5190_v59 = vld [vmem:[#allocation3 + $0x80] sm:$0xf] }
 0x370   :  { %v2580_v40 = vpop.f32.mrf.mxu3  ;;  %v2484_v42 = vpop.f32.mrf.mxu1  ;;  %3498 = vmatpush.bf16.msrb.mxu3 %v5335_v7 }
 0x371   :  { %v8058_v25 = vadd.f32 %v2580_v40, %v2532_v29  ;;  %v2834_v15 = vmul.f32 0.2, %v2436_v45  ;;  %v2485_v5 = vadd.f32 %v2484_v42, %v7986_v47  ;;  %v5595_v42 = vld [vmem:[#allocation3 + $0x14] sm:$0xf0] }
 0x373   :  { %v2898_v20 = vmax.f32 %v2436_v45, %v2834_v15 }
 0x375   :  { %v2533_v63 = vpop.f32.mrf.mxu2  ;;  %v8061_v50 = vpack.c.bf16 %v2898_v20, %v2894_v10  ;;  %v5643_v10 = vld [vmem:[#allocation3 + $0x194] sm:$0xf0]  ;;  %v5199_v20 = vor.u32 %v5611_v3, %v5198_v28  ;;  %v5641_v28 = vld [vmem:[#allocation3 + $0x184] sm:$0xf0] }
 0x376   :  { %v8063_v33 = vadd.f32 %v2533_v63, %v2485_v5  ;;  %v2438_v12 = vpop.f32.mrf.mxu0  ;;  %v5327_v32 = vor.u32 %v5643_v10, %v5326_v39  ;;  %v5593_v5 = vld [vmem:[#allocation3 + $0x4] sm:$0xf0] }
 0x377   :  { %v2439_v31 = vadd.f32 %v2438_v12, %v7953_v54  ;;  %3401 = vmatpush.bf16.msrb.mxu1 %v5199_v20  ;;  %v5127_v7 = vor.u32 %v5593_v5, %v5126_v18  ;;  %v5254_v12 = vld [vmem:[#allocation3 + $0x100] sm:$0xf] }
 0x378   :  { %v8065_v62 = vpop.f32.mrf.mxu3  ;;  %v2487_v55 = vpop.f32.mrf.mxu1  ;;  %3499 = vmatpush.bf16.msrb.mxu3 %v5327_v32  ;;  %v9034_v32 = vld [vmem:[#allocation45_spill] sm:$0xff] }
 0x379   :  { %2633 = vmatmul.bf16.gmra.mxu0 %v6359_v57  ;;  %v2488_v34 = vadd.f32 %v2487_v55, %v7986_v47  ;;  %v2838_v58 = vmul.f32 0.2, %v2439_v31  ;;  %v5262_v57 = vld [vmem:[#allocation3 + $0x110] sm:$0xf] }
 0x37a   :  { %2731 = vmatmul.bf16.gmra.mxu2 %v8986_v61  ;;  %v5263_v45 = vor.u32 %v5627_v43, %v5262_v57 }
 0x37b   :  { %2682 = vmatmul.bf16.gmra.mxu1 %v6819_v9  ;;  %v5134_v9 = vld [vmem:[#allocation3 + $0x10] sm:$0xf] }
 0x37c   :  { %v5135_v61 = vor.u32 %v5595_v42, %v5134_v9  ;;  %3450 = vmatpush.bf16.msrb.mxu2 %v5263_v45 }
 0x37d   :  { %5121 = vmatmul.msk.bf16.gmra.mxu3 %vm1399_vm0, %v9022_v13  ;;  %v2536_v17 = vpop.f32.mrf.mxu2  ;;  %v2902_v13 = vmax.f32 %v2439_v31, %v2838_v58  ;;  %v5625_v31 = vld [vmem:[#allocation3 + $0x104] sm:$0xf0] }
 0x37e   :  { %v2537_v51 = vadd.f32 %v2536_v17, %v2488_v34  ;;  %v2440_v30 = vpop.f32.mrf.mxu0  ;;  %3352 = vmatpush.bf16.msrb.mxu0 %v5135_v61  ;;  %v5191_v17 = vor.u32 %v5609_v16, %v5190_v59  ;;  %v5318_v61 = vld [vmem:[#allocation3 + $0x180] sm:$0xf] }
 0x37f   :  { %v2441_v54 = vadd.f32 %v2440_v30, %v7962_v14  ;;  %v9033_v30 = vld [vmem:[#allocation43_spill] sm:$0xff] }
 0x380   :  { %v2585_v27 = vpop.f32.mrf.mxu3  ;;  %v2489_v29 = vpop.f32.mrf.mxu1  ;;  %3402 = vmatpush.bf16.msrb.mxu1 %v5191_v17  ;;  %v5638_v17 = vld [vmem:[#allocation3 + $0x174] sm:$0xf] }
 0x381   :  { %v8075_v40 = vadd.f32 %v2585_v27, %v2537_v51  ;;  %v2842_v6 = vmul.f32 0.2, %v2441_v54  ;;  %v2490_v14 = vadd.f32 %v2489_v29, %v7986_v47  ;;  %v5255_v51 = vor.u32 %v5625_v31, %v5254_v12 }
 0x382   :  { %3353 = vmatpush.bf16.msrb.mxu0 %v5127_v7 }
 0x383   :  { %v2906_v15 = vmax.f32 %v2441_v54, %v2842_v6  ;;  %3451 = vmatpush.bf16.msrb.mxu2 %v5255_v51  ;;  %v5312_v51 = vld [vmem:[#allocation3 + $0x178] sm:$0xf0] }
 0x385   :  { %v2538_v8 = vpop.f32.mrf.mxu2  ;;  %v8078_v35 = vpack.c.bf16 %v2906_v15, %v2902_v13 }
 0x386   :  { %v8080_v36 = vadd.f32 %v2538_v8, %v2490_v14  ;;  %v2443_v63 = vpop.f32.mrf.mxu0  ;;  %v9035_v8 = vld [vmem:[#allocation46_spill] sm:$0xff] }
 0x387   :  { %v2444_v55 = vadd.f32 %v2443_v63, %v7970_v24 }
 0x388   :  { %v8082_v60 = vpop.f32.mrf.mxu3  ;;  %v2492_v34 = vpop.f32.mrf.mxu1 }
 0x389   :  { %2638 = vmatmul.bf16.gmra.mxu0 %v6413_v22  ;;  %v2493_v27 = vadd.f32 %v2492_v34, %v7986_v47  ;;  %v2846_v57 = vmul.f32 0.2, %v2444_v55 }
 0x38a   :  { %2736 = vmatmul.bf16.gmra.mxu2 %v9033_v30 }
 0x38b   :  { %2687 = vmatmul.bf16.gmra.mxu1 %v9002_v38  ;;  %v2910_v9 = vmax.f32 %v2444_v55, %v2846_v57 }
 0x38d   :  { %5122 = vmatmul.msk.bf16.gmra.mxu3 %vm1399_vm0, %v9025_v52  ;;  %v2541_v58 = vpop.f32.mrf.mxu2  ;;  %v5319_v52 = vor.u32 %v5641_v28, %v5318_v61  ;;  %v9036_v61 = vld [vmem:[#allocation48_spill] sm:$0xff] }
 0x38e   :  { %v2542_v54 = vadd.f32 %v2541_v58, %v2493_v27  ;;  %v2445_v29 = vpop.f32.mrf.mxu0  ;;  %v5606_v27 = vld [vmem:[#allocation3 + $0x74] sm:$0xf]  ;;  %v5184_v58 = vld [vmem:[#allocation3 + $0x78] sm:$0xf0] }
 0x38f   :  { %v2446_v43 = vadd.f32 %v2445_v29, %v7973_v11  ;;  %3500 = vmatpush.bf16.msrb.mxu3 %v5319_v52 }
 0x390   :  { %v2590_v24 = vpop.f32.mrf.mxu3  ;;  %v2494_v6 = vpop.f32.mrf.mxu1 }
 0x391   :  { %v8092_v22 = vadd.f32 %v2590_v24, %v2542_v54  ;;  %v2850_v45 = vmul.f32 0.2, %v2446_v43  ;;  %v2495_v38 = vadd.f32 %v2494_v6, %v7986_v47  ;;  %v5654_v54 = vld [vmem:[#allocation3 + $0x1f4] sm:$0xf]  ;;  %v5376_v24 = vld [vmem:[#allocation3 + $0x1f8] sm:$0xf0]  ;;  %v5187_v6 = vor.u32 %v5606_v27, %v5184_v58 }
 0x393   :  { %v2914_v42 = vmax.f32 %v2446_v43, %v2850_v45  ;;  %v5379_v45 = vor.u32 %v5654_v54, %v5376_v24  ;;  %3542 = vmatpush.bf16.msra.mxu0 %v5187_v6 }
 0x395   :  { %v2543_v3 = vpop.f32.mrf.mxu2  ;;  %v8095_v13 = vpack.c.bf16 %v2914_v42, %v2910_v9  ;;  %v5622_v9 = vld [vmem:[#allocation3 + $0xf4] sm:$0xf]  ;;  %v5248_v42 = vld [vmem:[#allocation3 + $0xf8] sm:$0xf0]  ;;  %3689 = vmatpush.bf16.msra.mxu3 %v5379_v45 }
 0x396   :  { %v8097_v15 = vadd.f32 %v2543_v3, %v2495_v38  ;;  %v2448_v10 = vpop.f32.mrf.mxu0  ;;  %v5251_v38 = vor.u32 %v5622_v9, %v5248_v42  ;;  %v9037_v3 = vld [vmem:[#allocation31_spill] sm:$0xff]  ;;  %v9039_v9 = vld [vmem:[#allocation36_spill] sm:$0xff] }
 0x397   :  { %v2449_v11 = vadd.f32 %v2448_v10, %v7981_v4 }
 0x398   :  { %v8099_v39 = vpop.f32.mrf.mxu3  ;;  %v2497_v20 = vpop.f32.mrf.mxu1  ;;  %3591 = vmatpush.bf16.msra.mxu1 %v5251_v38 }
 0x399   :  { %2643 = vmatmul.bf16.gmra.mxu0 %v9005_v26  ;;  %v2498_v14 = vadd.f32 %v2497_v20, %v7986_v47  ;;  %v2854_v7 = vmul.f32 0.2, %v2449_v11 }
 0x39a   :  { %2741 = vmatmul.bf16.gmra.mxu2 %v9035_v8 }
 0x39b   :  { %2692 = vmatmul.bf16.gmra.mxu1 %v9034_v32  ;;  %v2918_v31 = vmax.f32 %v2449_v11, %v2854_v7  ;;  %v5604_v7 = vld [vmem:[#allocation3 + $0x64] sm:$0xf] }
 0x39d   :  { %5123 = vmatmul.msk.bf16.gmra.mxu3 %vm1399_vm0, %v8993_v0  ;;  %v2546_v18 = vpop.f32.mrf.mxu2  ;;  %v5315_v0 = vor.u32 %v5638_v17, %v5312_v51 }
 0x39e   :  { %v2547_v5 = vadd.f32 %v2546_v18, %v2498_v14  ;;  %v2450_v63 = vpop.f32.mrf.mxu0 }
 0x39f   :  { %v2451_v4 = vadd.f32 %v2450_v63, %v7989_v23  ;;  %3640 = vmatpush.bf16.msra.mxu2 %v5315_v0  ;;  %v5304_v63 = vld [vmem:[#allocation3 + $0x168] sm:$0xf0] }
 0x3a0   :  { %v2595_v59 = vpop.f32.mrf.mxu3  ;;  %v2499_v16 = vpop.f32.mrf.mxu1  ;;  %v5240_v0 = vld [vmem:[#allocation3 + $0xe8] sm:$0xf0] }
 0x3a1   :  { %v8109_v12 = vadd.f32 %v2595_v59, %v2547_v5  ;;  %v2858_v26 = vmul.f32 0.2, %v2451_v4  ;;  %v2500_v34 = vadd.f32 %v2499_v16, %v7986_v47  ;;  %v5636_v59 = vld [vmem:[#allocation3 + $0x164] sm:$0xf] }
 0x3a2   :  { %v5307_v16 = vor.u32 %v5636_v59, %v5304_v63  ;;  %v5296_v59 = vld [vmem:[#allocation3 + $0x158] sm:$0xf0]  ;;  %v5602_v63 = vld [vmem:[#allocation3 + $0x54] sm:$0xf] }
 0x3a3   :  { %v2922_v55 = vmax.f32 %v2451_v4, %v2858_v26  ;;  %v5652_v26 = vld [vmem:[#allocation3 + $0x1e4] sm:$0xf] }
 0x3a4   :  { %3641 = vmatpush.bf16.msra.mxu2 %v5307_v16  ;;  %v5650_v16 = vld [vmem:[#allocation3 + $0x1d4] sm:$0xf] }
 0x3a5   :  { %v2548_v30 = vpop.f32.mrf.mxu2  ;;  %v8112_v29 = vpack.c.bf16 %v2922_v55, %v2918_v31  ;;  %v5368_v31 = vld [vmem:[#allocation3 + $0x1e8] sm:$0xf0] }
 0x3a6   :  { %v8114_v57 = vadd.f32 %v2548_v30, %v2500_v34  ;;  %v2609_v43 = vpop.f32.mrf.mxu0  ;;  %v5371_v27 = vor.u32 %v5652_v26, %v5368_v31  ;;  %v5620_v30 = vld [vmem:[#allocation3 + $0xe4] sm:$0xf] }
 0x3a7   :  { %v2610_v28 = vadd.f32 %v2609_v43, %v7998_v49  ;;  %v5176_v49 = vld [vmem:[#allocation3 + $0x68] sm:$0xf0]  ;;  %v9038_v43 = vld [vmem:[#allocation49_spill] sm:$0xff] }
 0x3a8   :  { %v8116_v23 = vpop.f32.mrf.mxu3  ;;  %v2658_v47 = vpop.f32.mrf.mxu1  ;;  %v5179_v51 = vor.u32 %v5604_v7, %v5176_v49  ;;  %3690 = vmatpush.bf16.msra.mxu3 %v5371_v27  ;;  %v5360_v49 = vld [vmem:[#allocation3 + $0x1d8] sm:$0xf0] }
 0x3a9   :  { %3354 = vmatmul.bf16.vlgmr.msrb.gmra.mxu0 %v9036_v61  ;;  %v2659_v10 = vadd.f32 %v2658_v47, %v2610_v28  ;;  %v5232_v27 = vld [vmem:[#allocation3 + $0xd8] sm:$0xf0] }
 0x3aa   :  { %3452 = vmatmul.bf16.vlgmr.msrb.gmra.mxu2 %v8001_v44  ;;  %3543 = vmatpush.bf16.msra.mxu0 %v5179_v51  ;;  %v5618_v51 = vld [vmem:[#allocation3 + $0xd4] sm:$0xf] }
 0x3ab   :  { %3403 = vmatmul.bf16.vlgmr.msrb.gmra.mxu1 %v9037_v3 }
 0x3ad   :  { %v2707_v52 = vpop.f32.mrf.mxu2 }
 0x3ae   :  { %v2611_v20 = vpop.f32.mrf.mxu0  ;;  %v2708_v32 = vadd.f32 %v2707_v52, %v2659_v10 }
 0x3af   :  { %v2612_v8 = vadd.f32 %v2611_v20, %v8004_v1  ;;  %v5243_v1 = vor.u32 %v5620_v30, %v5240_v0  ;;  %v5235_v30 = vor.u32 %v5618_v51, %v5232_v27  ;;  %v5224_v51 = vld [vmem:[#allocation3 + $0xc8] sm:$0xf0] }
 0x3b0   :  { %v2756_v11 = vpop.f32.mrf.mxu3  ;;  %v2660_v14 = vpop.f32.mrf.mxu1 }
 0x3b1   :  { %v2757_v18 = vadd.f32 %v2756_v11, %v2708_v32  ;;  %v2661_v5 = vadd.f32 %v2660_v14, %v2612_v8  ;;  %3592 = vmatpush.bf16.msra.mxu1 %v5243_v1  ;;  %v9040_v1 = vld [vmem:[#allocation50_spill] sm:$0xff] }
 0x3b3   :  { %v2799_v54 = vmul.f32 0.2, %v2757_v18 }
 0x3b5   :  { %v2709_v4 = vpop.f32.mrf.mxu2  ;;  %v2863_v42 = vmax.f32 %v2757_v18, %v2799_v54  ;;  %3593 = vmatpush.bf16.msra.mxu1 %v5235_v30 }
 0x3b6   :  { %v2710_v55 = vadd.f32 %v2709_v4, %v2661_v5  ;;  %v2614_v17 = vpop.f32.mrf.mxu0  ;;  %v5634_v5 = vld [vmem:[#allocation3 + $0x154] sm:$0xf]  ;;  %v5168_v4 = vld [vmem:[#allocation3 + $0x58] sm:$0xf0] }
 0x3b7   :  { %v2615_v45 = vadd.f32 %v2614_v17, %v8013_v19  ;;  %v5299_v18 = vor.u32 %v5634_v5, %v5296_v59  ;;  %v5363_v17 = vor.u32 %v5650_v16, %v5360_v49  ;;  %v5632_v5 = vld [vmem:[#allocation3 + $0x144] sm:$0xf]  ;;  %v5288_v59 = vld [vmem:[#allocation3 + $0x148] sm:$0xf0] }
 0x3b8   :  { %v2758_v34 = vpop.f32.mrf.mxu3  ;;  %v2663_v58 = vpop.f32.mrf.mxu1  ;;  %v5352_v16 = vld [vmem:[#allocation3 + $0x1c8] sm:$0xf0] }
 0x3b9   :  { %v2759_v24 = vadd.f32 %v2758_v34, %v2710_v55  ;;  %3359 = vmatmul.bf16.gmra.mxu0 %v9038_v43  ;;  %v2664_v52 = vadd.f32 %v2663_v58, %v2615_v45  ;;  %v5171_v34 = vor.u32 %v5602_v63, %v5168_v4  ;;  %3642 = vmatpush.bf16.msra.mxu2 %v5299_v18  ;;  %v5600_v63 = vld [vmem:[#allocation3 + $0x44] sm:$0xf]  ;;  %v5160_v18 = vld [vmem:[#allocation3 + $0x48] sm:$0xf0] }
 0x3ba   :  { %3457 = vmatmul.bf16.gmra.mxu2 %v8016_v41  ;;  %3691 = vmatpush.bf16.msra.mxu3 %v5363_v17  ;;  %v5648_v4 = vld [vmem:[#allocation3 + $0x1c4] sm:$0xf] }
 0x3bb   :  { %v2803_v6 = vmul.f32 0.2, %v2759_v24  ;;  %3408 = vmatmul.bf16.gmra.mxu1 %v9039_v9  ;;  %3544 = vmatpush.bf16.msra.mxu0 %v5171_v34  ;;  %v5355_v34 = vor.u32 %v5648_v4, %v5352_v16  ;;  %v5616_v17 = vld [vmem:[#allocation3 + $0xc4] sm:$0xf]  ;;  %v5646_v4 = vld [vmem:[#allocation3 + $0x1b4] sm:$0xf] }
 0x3bc   :  { %v5227_v27 = vor.u32 %v5616_v17, %v5224_v51  ;;  %v5344_v16 = vld [vmem:[#allocation3 + $0x1b8] sm:$0xf0]  ;;  %v5614_v17 = vld [vmem:[#allocation3 + $0xb4] sm:$0xf] }
 0x3bd   :  { %v2867_v47 = vmax.f32 %v2759_v24, %v2803_v6  ;;  %v2712_v38 = vpop.f32.mrf.mxu2  ;;  %v9041_v6 = vld [vmem:[#allocation38_spill] sm:$0xff]  ;;  %v5216_v51 = vld [vmem:[#allocation3 + $0xb8] sm:$0xf0] }
 0x3be   :  { %v2616_v11 = vpop.f32.mrf.mxu0  ;;  %v2713_v14 = vadd.f32 %v2712_v38, %v2664_v52  ;;  %3692 = vmatpush.bf16.msra.mxu3 %v5355_v34  ;;  %3594 = vmatpush.bf16.msra.mxu1 %v5227_v27  ;;  %v5347_v34 = vor.u32 %v5646_v4, %v5344_v16  ;;  %v5144_v16 = vld [vmem:[#allocation3 + $0x28] sm:$0xf0] }
 0x3bf   :  { %v8127_v28 = vpack.c.bf16 %v2867_v47, %v2863_v42  ;;  %v2617_v32 = vadd.f32 %v2616_v11, %v8019_v53 }
 0x3c0   :  { %v2761_v10 = vpop.f32.mrf.mxu3  ;;  %v2665_v20 = vpop.f32.mrf.mxu1 }
 0x3c1   :  { %3501 = vmatmul.bf16.vlgmr.msrb.gmra.mxu3 %v8127_v28  ;;  %v2762_v8 = vadd.f32 %v2761_v10, %v2713_v14  ;;  %v2666_v19 = vadd.f32 %v2665_v20, %v2617_v32 }
 0x3c2   :  { %3693 = vmatpush.bf16.msra.mxu3 %v5347_v34 }
 0x3c3   :  { %v2807_v0 = vmul.f32 0.2, %v2762_v8 }
 0x3c5   :  { %v2714_v7 = vpop.f32.mrf.mxu2  ;;  %v2871_v45 = vmax.f32 %v2762_v8, %v2807_v0  ;;  %v5291_v8 = vor.u32 %v5632_v5, %v5288_v59  ;;  %v9042_v0 = vld [vmem:[#allocation51_spill] sm:$0xff] }
 0x3c6   :  { %v2715_v26 = vadd.f32 %v2714_v7, %v2666_v19  ;;  %v2619_v55 = vpop.f32.mrf.mxu0  ;;  %v5630_v59 = vld [vmem:[#allocation3 + $0x134] sm:$0xf] }
 0x3c7   :  { %v2620_v24 = vadd.f32 %v2619_v55, %v8028_v46  ;;  %v5163_v55 = vor.u32 %v5600_v63, %v5160_v18  ;;  %3643 = vmatpush.bf16.msra.mxu2 %v5291_v8  ;;  %v5280_v63 = vld [vmem:[#allocation3 + $0x138] sm:$0xf0] }
 0x3c8   :  { %v2763_v31 = vpop.f32.mrf.mxu3  ;;  %v2668_v53 = vpop.f32.mrf.mxu1  ;;  %v5152_v18 = vld [vmem:[#allocation3 + $0x38] sm:$0xf0] }
 0x3c9   :  { %v2764_v58 = vadd.f32 %v2763_v31, %v2715_v26  ;;  %3364 = vmatmul.bf16.gmra.mxu0 %v9040_v1  ;;  %v2669_v38 = vadd.f32 %v2668_v53, %v2620_v24  ;;  %v9043_v24 = vld [vmem:[#allocation40_spill] sm:$0xff] }
 0x3ca   :  { %3462 = vmatmul.bf16.gmra.mxu2 %v8031_v2  ;;  %3545 = vmatpush.bf16.msra.mxu0 %v5163_v55 }
 0x3cb   :  { %v2811_v54 = vmul.f32 0.2, %v2764_v58  ;;  %3413 = vmatmul.bf16.gmra.mxu1 %v9041_v6 }
 0x3cd   :  { %v2875_v42 = vmax.f32 %v2764_v58, %v2811_v54  ;;  %v2717_v47 = vpop.f32.mrf.mxu2 }
 0x3ce   :  { %v2621_v10 = vpop.f32.mrf.mxu0  ;;  %v2718_v14 = vadd.f32 %v2717_v47, %v2669_v38 }
 0x3cf   :  { %v8135_v11 = vpack.c.bf16 %v2875_v42, %v2871_v45  ;;  %v2622_v32 = vadd.f32 %v2621_v10, %v8034_v21 }
 0x3d0   :  { %v2766_v52 = vpop.f32.mrf.mxu3  ;;  %v2670_v20 = vpop.f32.mrf.mxu1 }
 0x3d1   :  { %3506 = vmatmul.bf16.gmra.mxu3 %v8135_v11  ;;  %v2767_v19 = vadd.f32 %v2766_v52, %v2718_v14  ;;  %v2671_v46 = vadd.f32 %v2670_v20, %v2622_v32 }
 0x3d3   :  { %v2815_v53 = vmul.f32 0.2, %v2767_v19 }
 0x3d5   :  { %v2719_v7 = vpop.f32.mrf.mxu2  ;;  %v2879_v45 = vmax.f32 %v2767_v19, %v2815_v53  ;;  %v5283_v19 = vor.u32 %v5630_v59, %v5280_v63 }
 0x3d6   :  { %v2720_v49 = vadd.f32 %v2719_v7, %v2671_v46  ;;  %v2624_v31 = vpop.f32.mrf.mxu0  ;;  %v5598_v7 = vld [vmem:[#allocation3 + $0x34] sm:$0xf] }
 0x3d7   :  { %v2625_v54 = vadd.f32 %v2624_v31, %v8043_v56  ;;  %v5155_v55 = vor.u32 %v5598_v7, %v5152_v18  ;;  %3644 = vmatpush.bf16.msra.mxu2 %v5283_v19  ;;  %v5272_v19 = vld [vmem:[#allocation3 + $0x128] sm:$0xf0] }
 0x3d8   :  { %v2768_v26 = vpop.f32.mrf.mxu3  ;;  %v2673_v21 = vpop.f32.mrf.mxu1 }
 0x3d9   :  { %v2769_v30 = vadd.f32 %v2768_v26, %v2720_v49  ;;  %3369 = vmatmul.bf16.gmra.mxu0 %v9042_v0  ;;  %v2674_v38 = vadd.f32 %v2673_v21, %v2625_v54  ;;  %v5219_v21 = vor.u32 %v5614_v17, %v5216_v51  ;;  %v5612_v17 = vld [vmem:[#allocation3 + $0xa4] sm:$0xf]  ;;  %v5208_v51 = vld [vmem:[#allocation3 + $0xa8] sm:$0xf0] }
 0x3da   :  { %3467 = vmatmul.bf16.gmra.mxu2 %v8046_v37  ;;  %3546 = vmatpush.bf16.msra.mxu0 %v5155_v55 }
 0x3db   :  { %v2819_v58 = vmul.f32 0.2, %v2769_v30  ;;  %3418 = vmatmul.bf16.gmra.mxu1 %v9043_v24 }
 0x3dc   :  { %3595 = vmatpush.bf16.msra.mxu1 %v5219_v21  ;;  %v5211_v21 = vor.u32 %v5612_v17, %v5208_v51  ;;  %v5592_v17 = vld [vmem:[#allocation3 + $0x4] sm:$0xf]  ;;  %v5128_v51 = vld [vmem:[#allocation3 + $0x8] sm:$0xf0] }
 0x3dd   :  { %v2883_v42 = vmax.f32 %v2769_v30, %v2819_v58  ;;  %v2722_v47 = vpop.f32.mrf.mxu2  ;;  %v9044_v30 = vld [vmem:[#allocation52_spill] sm:$0xff] }
 0x3de   :  { %v2626_v10 = vpop.f32.mrf.mxu0  ;;  %v2723_v32 = vadd.f32 %v2722_v47, %v2674_v38 }
 0x3df   :  { %v8143_v20 = vpack.c.bf16 %v2883_v42, %v2879_v45  ;;  %v2627_v46 = vadd.f32 %v2626_v10, %v8049_v48  ;;  %v9045_v45 = vld [vmem:[#allocation47_spill] sm:$0xff] }
 0x3e0   :  { %v2771_v52 = vpop.f32.mrf.mxu3  ;;  %v2675_v14 = vpop.f32.mrf.mxu1  ;;  %3596 = vmatpush.bf16.msra.mxu1 %v5211_v21 }
 0x3e1   :  { %3511 = vmatmul.bf16.gmra.mxu3 %v8143_v20  ;;  %v2772_v5 = vadd.f32 %v2771_v52, %v2723_v32  ;;  %v2676_v56 = vadd.f32 %v2675_v14, %v2627_v46  ;;  %v2583_v52 = vadd.f32 %v8065_v62, %v8063_v33  ;;  %v5336_v33 = vld [vmem:[#allocation3 + $0x1a8] sm:$0xf0] }
 0x3e3   :  { %v2823_v27 = vmul.f32 0.2, %v2772_v5 }
 0x3e5   :  { %v2724_v8 = vpop.f32.mrf.mxu2  ;;  %v2887_v42 = vmax.f32 %v2772_v5, %v2823_v27  ;;  %v5596_v5 = vld [vmem:[#allocation3 + $0x24] sm:$0xf] }
 0x3e6   :  { %v2725_v49 = vadd.f32 %v2724_v8, %v2676_v56  ;;  %v2629_v31 = vpop.f32.mrf.mxu0  ;;  %v5628_v8 = vld [vmem:[#allocation3 + $0x124] sm:$0xf]  ;;  %v5147_v55 = vor.u32 %v5596_v5, %v5144_v16  ;;  %v5264_v5 = vld [vmem:[#allocation3 + $0x118] sm:$0xf0]  ;;  %v5610_v16 = vld [vmem:[#allocation3 + $0x94] sm:$0xf] }
 0x3e7   :  { %v2630_v54 = vadd.f32 %v2629_v31, %v8058_v25  ;;  %v5275_v4 = vor.u32 %v5628_v8, %v5272_v19 }
 0x3e8   :  { %v2773_v26 = vpop.f32.mrf.mxu3  ;;  %v2678_v48 = vpop.f32.mrf.mxu1  ;;  %3547 = vmatpush.bf16.msra.mxu0 %v5147_v55 }
 0x3e9   :  { %v2774_v53 = vadd.f32 %v2773_v26, %v2725_v49  ;;  %3374 = vmatmul.bf16.gmra.mxu0 %v9044_v30  ;;  %v2679_v10 = vadd.f32 %v2678_v48, %v2630_v54  ;;  %v5644_v49 = vld [vmem:[#allocation3 + $0x1a4] sm:$0xf]  ;;  %3645 = vmatpush.bf16.msra.mxu2 %v5275_v4 }
 0x3ea   :  { %3472 = vmatmul.bf16.gmra.mxu2 %v8061_v50  ;;  %v5339_v34 = vor.u32 %v5644_v49, %v5336_v33  ;;  %v5200_v33 = vld [vmem:[#allocation3 + $0x98] sm:$0xf0] }
 0x3eb   :  { %v2827_v58 = vmul.f32 0.2, %v2774_v53  ;;  %3423 = vmatmul.bf16.gmra.mxu1 %v9045_v45 }
 0x3ec   :  { %3694 = vmatpush.bf16.msra.mxu3 %v5339_v34 }
 0x3ed   :  { %v2891_v47 = vmax.f32 %v2774_v53, %v2827_v58  ;;  %v2727_v38 = vpop.f32.mrf.mxu2  ;;  %v9046_v58 = vld [vmem:[#allocation53_spill] sm:$0xff] }
 0x3ee   :  { %v2631_v32 = vpop.f32.mrf.mxu0  ;;  %v2728_v59 = vadd.f32 %v2727_v38, %v2679_v10 }
 0x3ef   :  { %v8153_v46 = vpack.c.bf16 %v2891_v47, %v2887_v42  ;;  %v2632_v63 = vadd.f32 %v2631_v32, %v2583_v52  ;;  %v9047_v47 = vld [vmem:[#allocation24_spill] sm:$0xff] }
 0x3f0   :  { %v2776_v14 = vpop.f32.mrf.mxu3  ;;  %v2680_v56 = vpop.f32.mrf.mxu1 }
 0x3f1   :  { %3516 = vmatmul.bf16.gmra.mxu3 %v8153_v46  ;;  %v2777_v25 = vadd.f32 %v2776_v14, %v2728_v59  ;;  %v2681_v7 = vadd.f32 %v2680_v56, %v2632_v63  ;;  %v2588_v14 = vadd.f32 %v8082_v60, %v8080_v36  ;;  %v5642_v60 = vld [vmem:[#allocation3 + $0x194] sm:$0xf] }
 0x3f3   :  { %v2831_v27 = vmul.f32 0.2, %v2777_v25 }
 0x3f5   :  { %v2729_v18 = vpop.f32.mrf.mxu2  ;;  %v2895_v38 = vmax.f32 %v2777_v25, %v2831_v27  ;;  %v5136_v25 = vld [vmem:[#allocation3 + $0x18] sm:$0xf0] }
 0x3f6   :  { %v2730_v62 = vadd.f32 %v2729_v18, %v2681_v7  ;;  %v2634_v31 = vpop.f32.mrf.mxu0  ;;  %v5594_v18 = vld [vmem:[#allocation3 + $0x14] sm:$0xf] }
 0x3f7   :  { %v2635_v42 = vadd.f32 %v2634_v31, %v8075_v40  ;;  %v5626_v40 = vld [vmem:[#allocation3 + $0x114] sm:$0xf]  ;;  %v5139_v49 = vor.u32 %v5594_v18, %v5136_v25  ;;  %v5203_v31 = vor.u32 %v5610_v16, %v5200_v33  ;;  %v2593_v25 = vadd.f32 %v8099_v39, %v8097_v15 }
 0x3f8   :  { %v2778_v26 = vpop.f32.mrf.mxu3  ;;  %v2683_v48 = vpop.f32.mrf.mxu1  ;;  %v5267_v4 = vor.u32 %v5626_v40, %v5264_v5  ;;  %v9049_v40 = vld [vmem:[#allocation33_spill] sm:$0xff] }
 0x3f9   :  { %v2779_v53 = vadd.f32 %v2778_v26, %v2730_v62  ;;  %3379 = vmatmul.bf16.gmra.mxu0 %v9046_v58  ;;  %v2684_v32 = vadd.f32 %v2683_v48, %v2635_v42  ;;  %v5328_v26 = vld [vmem:[#allocation3 + $0x198] sm:$0xf0]  ;;  %v5608_v48 = vld [vmem:[#allocation3 + $0x84] sm:$0xf]  ;;  %3597 = vmatpush.bf16.msra.mxu1 %v5203_v31 }
 0x3fa   :  { %3477 = vmatmul.bf16.gmra.mxu2 %v8078_v35  ;;  %3548 = vmatpush.bf16.msra.mxu0 %v5139_v49  ;;  %v5331_v34 = vor.u32 %v5642_v60, %v5328_v26  ;;  %v5624_v42 = vld [vmem:[#allocation3 + $0x104] sm:$0xf] }
 0x3fb   :  { %v2835_v54 = vmul.f32 0.2, %v2779_v53  ;;  %3428 = vmatmul.bf16.gmra.mxu1 %v9047_v47  ;;  %3646 = vmatpush.bf16.msra.mxu2 %v5267_v4  ;;  %v5640_v31 = vld [vmem:[#allocation3 + $0x184] sm:$0xf] }
 0x3fc   :  { %3695 = vmatpush.bf16.msra.mxu3 %v5331_v34 }
 0x3fd   :  { %v2899_v52 = vmax.f32 %v2779_v53, %v2835_v54  ;;  %v2732_v10 = vpop.f32.mrf.mxu2  ;;  %v5192_v54 = vld [vmem:[#allocation3 + $0x88] sm:$0xf0] }
 0x3fe   :  { %v2636_v59 = vpop.f32.mrf.mxu0  ;;  %v2733_v8 = vadd.f32 %v2732_v10, %v2684_v32  ;;  %v5195_v10 = vor.u32 %v5608_v48, %v5192_v54  ;;  %v9050_v54 = vld [vmem:[#allocation30_spill] sm:$0xff] }
 0x3ff   :  { %v8162_v63 = vpack.c.bf16 %v2899_v52, %v2895_v38  ;;  %v2637_v19 = vadd.f32 %v2636_v59, %v2588_v14  ;;  %v5131_v52 = vor.u32 %v5592_v17, %v5128_v51  ;;  %v5256_v14 = vld [vmem:[#allocation3 + $0x108] sm:$0xf0] }
 0x400   :  { %v2781_v56 = vpop.f32.mrf.mxu3  ;;  %v2685_v7 = vpop.f32.mrf.mxu1  ;;  %v5259_v59 = vor.u32 %v5624_v42, %v5256_v14  ;;  %3598 = vmatpush.bf16.msra.mxu1 %v5195_v10 }
 0x401   :  { %3521 = vmatmul.bf16.gmra.mxu3 %v8162_v63  ;;  %v2782_v62 = vadd.f32 %v2781_v56, %v2733_v8  ;;  %v2686_v36 = vadd.f32 %v2685_v7, %v2637_v19  ;;  %v9048_v7 = vld [vmem:[#allocation54_spill] sm:$0xff]  ;;  %3549 = vmatpush.bf16.msra.mxu0 %v5131_v52 }
 0x402   :  { %3647 = vmatpush.bf16.msra.mxu2 %v5259_v59  ;;  %v9051_v52 = vld [vmem:[#allocation42_spill] sm:$0xff] }
 0x403   :  { %v2839_v32 = vmul.f32 0.2, %v2782_v62 }
 0x405   :  { %v2734_v55 = vpop.f32.mrf.mxu2  ;;  %v2903_v5 = vmax.f32 %v2782_v62, %v2839_v32 }
 0x406   :  { %v2735_v21 = vadd.f32 %v2734_v55, %v2686_v36  ;;  %v2639_v53 = vpop.f32.mrf.mxu0  ;;  %v5320_v55 = vld [vmem:[#allocation3 + $0x188] sm:$0xf0] }
 0x407   :  { %v2640_v19 = vadd.f32 %v2639_v53, %v8092_v22  ;;  %v5323_v34 = vor.u32 %v5640_v31, %v5320_v55 }
 0x408   :  { %v2783_v27 = vpop.f32.mrf.mxu3  ;;  %v2688_v38 = vpop.f32.mrf.mxu1 }
 0x409   :  { %v2784_v56 = vadd.f32 %v2783_v27, %v2735_v21  ;;  %3384 = vmatmul.bf16.gmra.mxu0 %v9048_v7  ;;  %v2689_v16 = vadd.f32 %v2688_v38, %v2640_v19  ;;  %3696 = vmatpush.bf16.msra.mxu3 %v5323_v34 }
 0x40a   :  { %3482 = vmatmul.bf16.gmra.mxu2 %v8095_v13 }
 0x40b   :  { %v2843_v8 = vmul.f32 0.2, %v2784_v56  ;;  %3433 = vmatmul.bf16.gmra.mxu1 %v9049_v40 }
 0x40d   :  { %v2907_v18 = vmax.f32 %v2784_v56, %v2843_v8  ;;  %v2737_v4 = vpop.f32.mrf.mxu2  ;;  %v2598_v56 = vadd.f32 %v8116_v23, %v8114_v57 }
 0x40e   :  { %v2641_v33 = vpop.f32.mrf.mxu0  ;;  %v2738_v22 = vadd.f32 %v2737_v4, %v2689_v16 }
 0x40f   :  { %v8171_v36 = vpack.c.bf16 %v2907_v18, %v2903_v5  ;;  %v2642_v26 = vadd.f32 %v2641_v33, %v2593_v25 }
 0x410   :  { %v2786_v49 = vpop.f32.mrf.mxu3  ;;  %v2690_v60 = vpop.f32.mrf.mxu1 }
 0x411   :  { %3526 = vmatmul.bf16.gmra.mxu3 %v8171_v36  ;;  %v2787_v62 = vadd.f32 %v2786_v49, %v2738_v22  ;;  %v2691_v17 = vadd.f32 %v2690_v60, %v2642_v26 }
 0x413   :  { %v2847_v27 = vmul.f32 0.2, %v2787_v62 }
 0x415   :  { %v2739_v51 = vpop.f32.mrf.mxu2  ;;  %v2911_v10 = vmax.f32 %v2787_v62, %v2847_v27 }
 0x416   :  { %v2740_v48 = vadd.f32 %v2739_v51, %v2691_v17  ;;  %v2644_v15 = vpop.f32.mrf.mxu0 }
 0x417   :  { %v2645_v38 = vadd.f32 %v2644_v15, %v8109_v12  ;;  %v8186_v12 = vld [vmem:[%s8826_s4] sm:$0x3] }
 0x418   :  { %v2788_v21 = vpop.f32.mrf.mxu3  ;;  %v2693_v39 = vpop.f32.mrf.mxu1  ;;  %v8189_v16 = vperm.slane %v8186_v12, 0 }
 0x419   :  { %v2789_v53 = vadd.f32 %v2788_v21, %v2740_v48  ;;  %3389 = vmatmul.bf16.gmra.mxu0 %v9050_v54  ;;  %v2694_v59 = vadd.f32 %v2693_v39, %v2645_v38 }
 0x41a   :  { %3487 = vmatmul.bf16.gmra.mxu2 %v8112_v29 }
 0x41b   :  { %v2851_v42 = vmul.f32 0.2, %v2789_v53  ;;  %3438 = vmatmul.bf16.gmra.mxu1 %v9051_v52 }
 0x41d   :  { %v2915_v14 = vmax.f32 %v2789_v53, %v2851_v42  ;;  %v2742_v32 = vpop.f32.mrf.mxu2 }
 0x41e   :  { %v2646_v19 = vpop.f32.mrf.mxu0  ;;  %v2743_v4 = vadd.f32 %v2742_v32, %v2694_v59 }
 0x41f   :  { %v8180_v5 = vpack.c.bf16 %v2915_v14, %v2911_v10  ;;  %v2647_v25 = vadd.f32 %v2646_v19, %v2598_v56 }
 0x420   :  { %v2791_v8 = vpop.f32.mrf.mxu3  ;;  %v2695_v18 = vpop.f32.mrf.mxu1 }
 0x421   :  { %3531 = vmatmul.bf16.gmra.mxu3 %v8180_v5  ;;  %v2792_v49 = vadd.f32 %v2791_v8, %v2743_v4  ;;  %v2696_v57 = vadd.f32 %v2695_v18, %v2647_v25 }
 0x423   :  { %v2855_v55 = vmul.f32 0.2, %v2792_v49 }
 0x425   :  { %v2744_v23 = vpop.f32.mrf.mxu2  ;;  %v2919_v51 = vmax.f32 %v2792_v49, %v2855_v55 }
 0x426   :  { %v2745_v33 = vadd.f32 %v2744_v23, %v2696_v57  ;;  %v3355_v60 = vpop.f32.mrf.mxu0 }
 0x427   :  { %v3356_v26 = vadd.f32 %v3355_v60, %v8189_v16 }
 0x428   :  { %v2793_v22 = vpop.f32.mrf.mxu3  ;;  %v3404_v31 = vpop.f32.mrf.mxu1 }
 0x429   :  { %v2794_v34 = vadd.f32 %v2793_v22, %v2745_v33  ;;  %v3405_v62 = vadd.f32 %v3404_v31, %v3356_v26  ;;  %3550 = vmatmul.bf16.vlgmr.msra.gmra.mxu0 %v9036_v61 }
 0x42a   :  { %3648 = vmatmul.bf16.vlgmr.msra.gmra.mxu2 %v8001_v44 }
 0x42b   :  { %v2859_v17 = vmul.f32 0.2, %v2794_v34  ;;  %3599 = vmatmul.bf16.vlgmr.msra.gmra.mxu1 %v9037_v3 }
 0x42d   :  { %v2923_v48 = vmax.f32 %v2794_v34, %v2859_v17  ;;  %v3453_v21 = vpop.f32.mrf.mxu2 }
 0x42e   :  { %v3454_v15 = vadd.f32 %v3453_v21, %v3405_v62  ;;  %v3357_v39 = vpop.f32.mrf.mxu0 }
 0x42f   :  { %v8195_v27 = vpack.c.bf16 %v2923_v48, %v2919_v51  ;;  %v3358_v53 = vadd.f32 %v3357_v39, %v8189_v16 }
 0x430   :  { %v3406_v42 = vpop.f32.mrf.mxu1 }
 0x431   :  { %3536 = vmatmul.bf16.gmra.mxu3 %v8195_v27  ;;  %v3407_v38 = vadd.f32 %v3406_v42, %v3358_v53 }
 0x435   :  { %v3455_v10 = vpop.f32.mrf.mxu2 }
 0x436   :  { %v3456_v61 = vadd.f32 %v3455_v10, %v3407_v38  ;;  %v3360_v14 = vpop.f32.mrf.mxu0 }
 0x437   :  { %v3361_v3 = vadd.f32 %v3360_v14, %v8189_v16 }
 0x438   :  { %v3409_v32 = vpop.f32.mrf.mxu1 }
 0x439   :  { %v3410_v44 = vadd.f32 %v3409_v32, %v3361_v3  ;;  %3555 = vmatmul.bf16.gmra.mxu0 %v9038_v43 }
 0x43a   :  { %3653 = vmatmul.bf16.gmra.mxu2 %v8016_v41 }
 0x43b   :  { %3604 = vmatmul.bf16.gmra.mxu1 %v9039_v9 }
 0x43d   :  { %v3458_v56 = vpop.f32.mrf.mxu2 }
 0x43e   :  { %v3459_v59 = vadd.f32 %v3458_v56, %v3410_v44  ;;  %v3362_v8 = vpop.f32.mrf.mxu0 }
 0x43f   :  { %v3363_v19 = vadd.f32 %v3362_v8, %v8189_v16 }
 0x440   :  { %v3411_v18 = vpop.f32.mrf.mxu1 }
 0x441   :  { %3697 = vmatmul.bf16.vlgmr.msra.gmra.mxu3 %v8127_v28  ;;  %v3412_v4 = vadd.f32 %v3411_v18, %v3363_v19 }
 0x444   :  { %v3502_v25 = vpop.f32.mrf.mxu3 }
 0x445   :  { %v8205_v49 = vadd.f32 %v3502_v25, %v3454_v15  ;;  %v3460_v57 = vpop.f32.mrf.mxu2 }
 0x446   :  { %v3461_v23 = vadd.f32 %v3460_v57, %v3412_v4  ;;  %v3365_v33 = vpop.f32.mrf.mxu0 }
 0x447   :  { %v3366_v43 = vadd.f32 %v3365_v33, %v8189_v16 }
 0x448   :  { %v3414_v9 = vpop.f32.mrf.mxu1 }
 0x449   :  { %v3415_v60 = vadd.f32 %v3414_v9, %v3366_v43  ;;  %3560 = vmatmul.bf16.gmra.mxu0 %v9040_v1 }
 0x44a   :  { %3658 = vmatmul.bf16.gmra.mxu2 %v8031_v2 }
 0x44b   :  { %3609 = vmatmul.bf16.gmra.mxu1 %v9041_v6 }
 0x44c   :  { %v3504_v41 = vpop.f32.mrf.mxu3 }
 0x44d   :  { %v8211_v22 = vadd.f32 %v3504_v41, %v3456_v61  ;;  %v3463_v28 = vpop.f32.mrf.mxu2 }
 0x44e   :  { %v3464_v26 = vadd.f32 %v3463_v28, %v3415_v60  ;;  %v3367_v31 = vpop.f32.mrf.mxu0 }
 0x44f   :  { %v3368_v55 = vadd.f32 %v3367_v31, %v8189_v16 }
 0x450   :  { %v3416_v34 = vpop.f32.mrf.mxu1 }
 0x451   :  { %3702 = vmatmul.bf16.gmra.mxu3 %v8135_v11  ;;  %v3417_v62 = vadd.f32 %v3416_v34, %v3368_v55 }
 0x454   :  { %v3507_v17 = vpop.f32.mrf.mxu3 }
 0x455   :  { %v8215_v51 = vadd.f32 %v3507_v17, %v3459_v59  ;;  %v3465_v1 = vpop.f32.mrf.mxu2 }
 0x456   :  { %v3466_v48 = vadd.f32 %v3465_v1, %v3417_v62  ;;  %v3370_v6 = vpop.f32.mrf.mxu0 }
 0x457   :  { %v3371_v2 = vadd.f32 %v3370_v6, %v8189_v16 }
 0x458   :  { %v3419_v21 = vpop.f32.mrf.mxu1 }
 0x459   :  { %v3420_v15 = vadd.f32 %v3419_v21, %v3371_v2  ;;  %3565 = vmatmul.bf16.gmra.mxu0 %v9042_v0 }
 0x45a   :  { %3663 = vmatmul.bf16.gmra.mxu2 %v8046_v37 }
 0x45b   :  { %3614 = vmatmul.bf16.gmra.mxu1 %v9043_v24 }
 0x45c   :  { %v3509_v39 = vpop.f32.mrf.mxu3 }
 0x45d   :  { %v8221_v53 = vadd.f32 %v3509_v39, %v3461_v23  ;;  %v3468_v11 = vpop.f32.mrf.mxu2 }
 0x45e   :  { %v3469_v42 = vadd.f32 %v3468_v11, %v3420_v15  ;;  %v3372_v38 = vpop.f32.mrf.mxu0 }
 0x45f   :  { %v3373_v10 = vadd.f32 %v3372_v38, %v8189_v16 }
 0x460   :  { %v3421_v61 = vpop.f32.mrf.mxu1 }
 0x461   :  { %3707 = vmatmul.bf16.gmra.mxu3 %v8143_v20  ;;  %v3422_v14 = vadd.f32 %v3421_v61, %v3373_v10 }
 0x464   :  { %v3512_v3 = vpop.f32.mrf.mxu3 }
 0x465   :  { %v8225_v32 = vadd.f32 %v3512_v3, %v3464_v26  ;;  %v3470_v0 = vpop.f32.mrf.mxu2 }
 0x466   :  { %v3471_v44 = vadd.f32 %v3470_v0, %v3422_v14  ;;  %v3375_v24 = vpop.f32.mrf.mxu0 }
 0x467   :  { %v3376_v37 = vadd.f32 %v3375_v24, %v8189_v16 }
 0x468   :  { %v3424_v56 = vpop.f32.mrf.mxu1 }
 0x469   :  { %v3425_v59 = vadd.f32 %v3424_v56, %v3376_v37  ;;  %3570 = vmatmul.bf16.gmra.mxu0 %v9044_v30 }
 0x46a   :  { %3668 = vmatmul.bf16.gmra.mxu2 %v8061_v50 }
 0x46b   :  { %3619 = vmatmul.bf16.gmra.mxu1 %v9045_v45 }
 0x46c   :  { %v3514_v8 = vpop.f32.mrf.mxu3 }
 0x46d   :  { %v8231_v19 = vadd.f32 %v3514_v8, %v3466_v48  ;;  %v3473_v20 = vpop.f32.mrf.mxu2 }
 0x46e   :  { %v3474_v18 = vadd.f32 %v3473_v20, %v3425_v59  ;;  %v3377_v4 = vpop.f32.mrf.mxu0 }
 0x46f   :  { %v3378_v25 = vadd.f32 %v3377_v4, %v8189_v16 }
 0x470   :  { %v3426_v57 = vpop.f32.mrf.mxu1 }
 0x471   :  { %3712 = vmatmul.bf16.gmra.mxu3 %v8153_v46  ;;  %v3427_v23 = vadd.f32 %v3426_v57, %v3378_v25 }
 0x474   :  { %v3517_v33 = vpop.f32.mrf.mxu3 }
 0x475   :  { %v8235_v43 = vadd.f32 %v3517_v33, %v3469_v42  ;;  %v3475_v30 = vpop.f32.mrf.mxu2 }
 0x476   :  { %v3476_v9 = vadd.f32 %v3475_v30, %v3427_v23  ;;  %v3380_v45 = vpop.f32.mrf.mxu0 }
 0x477   :  { %v3381_v50 = vadd.f32 %v3380_v45, %v8189_v16 }
 0x478   :  { %v3429_v60 = vpop.f32.mrf.mxu1 }
 0x479   :  { %v3430_v41 = vadd.f32 %v3429_v60, %v3381_v50  ;;  %3575 = vmatmul.bf16.gmra.mxu0 %v9046_v58 }
 0x47a   :  { %3673 = vmatmul.bf16.gmra.mxu2 %v8078_v35 }
 0x47b   :  { %3624 = vmatmul.bf16.gmra.mxu1 %v9047_v47 }
 0x47c   :  { %v3519_v28 = vpop.f32.mrf.mxu3 }
 0x47d   :  { %v8241_v26 = vadd.f32 %v3519_v28, %v3471_v44  ;;  %v3478_v46 = vpop.f32.mrf.mxu2 }
 0x47e   :  { %v3479_v31 = vadd.f32 %v3478_v46, %v3430_v41  ;;  %v3382_v55 = vpop.f32.mrf.mxu0  ;;  %v8273_v46 = vperm.slane %v8186_v12, 1 }
 0x47f   :  { %v3383_v34 = vadd.f32 %v3382_v55, %v8189_v16 }
 0x480   :  { %v3431_v62 = vpop.f32.mrf.mxu1 }
 0x481   :  { %3717 = vmatmul.bf16.gmra.mxu3 %v8162_v63  ;;  %v3432_v17 = vadd.f32 %v3431_v62, %v3383_v34 }
 0x484   :  { %v3522_v1 = vpop.f32.mrf.mxu3 }
 0x485   :  { %v8245_v48 = vadd.f32 %v3522_v1, %v3474_v18  ;;  %v3480_v58 = vpop.f32.mrf.mxu2 }
 0x486   :  { %v3481_v6 = vadd.f32 %v3480_v58, %v3432_v17  ;;  %v3385_v47 = vpop.f32.mrf.mxu0 }
 0x487   :  { %v3386_v35 = vadd.f32 %v3385_v47, %v8189_v16 }
 0x488   :  { %v3434_v2 = vpop.f32.mrf.mxu1 }
 0x489   :  { %v3435_v21 = vadd.f32 %v3434_v2, %v3386_v35  ;;  %3580 = vmatmul.bf16.gmra.mxu0 %v9048_v7  ;;  %v3802_v35 = vld [vmem:[%s8827_s5] sm:$0x3] }
 0x48a   :  { %3678 = vmatmul.bf16.gmra.mxu2 %v8095_v13 }
 0x48b   :  { %3629 = vmatmul.bf16.gmra.mxu1 %v9049_v40 }
 0x48c   :  { %v3524_v15 = vpop.f32.mrf.mxu3 }
 0x48d   :  { %v8251_v39 = vadd.f32 %v3524_v15, %v3476_v9  ;;  %v3483_v63 = vpop.f32.mrf.mxu2 }
 0x48e   :  { %v3484_v11 = vadd.f32 %v3483_v63, %v3435_v21  ;;  %v3387_v42 = vpop.f32.mrf.mxu0 }
 0x48f   :  { %v3388_v38 = vadd.f32 %v3387_v42, %v8189_v16  ;;  %v8284_v42 = vperm.slane %v3802_v35, 0 }
 0x490   :  { %v3436_v10 = vpop.f32.mrf.mxu1 }
 0x491   :  { %3722 = vmatmul.bf16.gmra.mxu3 %v8171_v36  ;;  %v3437_v61 = vadd.f32 %v3436_v10, %v3388_v38  ;;  %v8286_v38 = vperm.slane %v3802_v35, 1 }
 0x494   :  { %v3527_v14 = vpop.f32.mrf.mxu3 }
 0x495   :  { %v8255_v3 = vadd.f32 %v3527_v14, %v3479_v31  ;;  %v3485_v7 = vpop.f32.mrf.mxu2 }
 0x496   :  { %v3486_v0 = vadd.f32 %v3485_v7, %v3437_v61  ;;  %v3390_v40 = vpop.f32.mrf.mxu0  ;;  %v3740_v7 = vmul.f32 0.2, %v8211_v22 }
 0x497   :  { %v3391_v13 = vadd.f32 %v3390_v40, %v8189_v16 }
 0x498   :  { %v3439_v44 = vpop.f32.mrf.mxu1 }
 0x499   :  { %v3440_v24 = vadd.f32 %v3439_v44, %v3391_v13  ;;  %3585 = vmatmul.bf16.gmra.mxu0 %v9050_v54 }
 0x49a   :  { %3683 = vmatmul.bf16.gmra.mxu2 %v8112_v29 }
 0x49b   :  { %3634 = vmatmul.bf16.gmra.mxu1 %v9051_v52 }
 0x49c   :  { %v3529_v37 = vpop.f32.mrf.mxu3 }
 0x49d   :  { %v8261_v56 = vadd.f32 %v3529_v37, %v3481_v6  ;;  %v3488_v36 = vpop.f32.mrf.mxu2 }
 0x49e   :  { %v3489_v59 = vadd.f32 %v3488_v36, %v3440_v24  ;;  %v3392_v8 = vpop.f32.mrf.mxu0 }
 0x49f   :  { %v3393_v20 = vadd.f32 %v3392_v8, %v8189_v16 }
 0x4a0   :  { %v3441_v18 = vpop.f32.mrf.mxu1 }
 0x4a1   :  { %3727 = vmatmul.bf16.gmra.mxu3 %v8180_v5  ;;  %v3442_v4 = vadd.f32 %v3441_v18, %v3393_v20 }
 0x4a4   :  { %v3532_v25 = vpop.f32.mrf.mxu3 }
 0x4a5   :  { %v8265_v57 = vadd.f32 %v3532_v25, %v3484_v11  ;;  %v3490_v54 = vpop.f32.mrf.mxu2  ;;  %v3742_v25 = vmul.f32 0.2, %v8215_v51 }
 0x4a6   :  { %v3491_v23 = vadd.f32 %v3490_v54, %v3442_v4  ;;  %v3551_v52 = vpop.f32.mrf.mxu0 }
 0x4a7   :  { %v3552_v55 = vadd.f32 %v3551_v52, %v8273_v46 }
 0x4a8   :  { %v3600_v33 = vpop.f32.mrf.mxu1 }
 0x4a9   :  { %v3601_v58 = vadd.f32 %v3600_v33, %v3552_v55  ;;  %v3744_v55 = vmul.f32 0.2, %v8221_v53 }
 0x4ac   :  { %v3534_v29 = vpop.f32.mrf.mxu3 }
 0x4ad   :  { %v8267_v30 = vadd.f32 %v3534_v29, %v3486_v0  ;;  %v3649_v9 = vpop.f32.mrf.mxu2 }
 0x4ae   :  { %v3553_v45 = vpop.f32.mrf.mxu0  ;;  %v3650_v6 = vadd.f32 %v3649_v9, %v3601_v58 }
 0x4af   :  { %v3554_v12 = vadd.f32 %v3553_v45, %v8273_v46 }
 0x4b0   :  { %v3602_v50 = vpop.f32.mrf.mxu1 }
 0x4b1   :  { %3732 = vmatmul.bf16.gmra.mxu3 %v8195_v27  ;;  %v3738_v27 = vmul.f32 0.2, %v8205_v49  ;;  %v3603_v10 = vadd.f32 %v3602_v50, %v3554_v12 }
 0x4b3   :  { %v3770_v15 = vmax.f32 %v8205_v49, %v3738_v27 }
 0x4b4   :  { %v3537_v16 = vpop.f32.mrf.mxu3 }
 0x4b5   :  { %v8270_v60 = vadd.f32 %v3537_v16, %v3489_v59  ;;  %v3651_v5 = vpop.f32.mrf.mxu2  ;;  %v3808_v40 = vmul.f32 %v8284_v42, %v3770_v15  ;;  %v3772_v59 = vmax.f32 %v8211_v22, %v3740_v7  ;;  %v3774_v22 = vmax.f32 %v8215_v51, %v3742_v25 }
 0x4b6   :  { %v3556_v41 = vpop.f32.mrf.mxu0  ;;  %v3652_v0 = vadd.f32 %v3651_v5, %v3603_v10  ;;  %v3776_v51 = vmax.f32 %v8221_v53, %v3744_v55 }
 0x4b7   :  { %v3557_v24 = vadd.f32 %v3556_v41, %v8273_v46  ;;  %v3810_v52 = vmul.f32 %v8284_v42, %v3772_v59  ;;  %v3812_v58 = vmul.f32 %v8284_v42, %v3774_v22 }
 0x4b8   :  { %v3605_v28 = vpop.f32.mrf.mxu1  ;;  %v3814_v7 = vmul.f32 %v8284_v42, %v3776_v51 }
 0x4b9   :  { %v3606_v18 = vadd.f32 %v3605_v28, %v3557_v24 }
 0x4bc   :  { %v3539_v31 = vpop.f32.mrf.mxu3 }
 0x4bd   :  { %v8276_v34 = vadd.f32 %v3539_v31, %v3491_v23  ;;  %v3654_v62 = vpop.f32.mrf.mxu2 }
 0x4be   :  { %v3558_v17 = vpop.f32.mrf.mxu0  ;;  %v3655_v54 = vadd.f32 %v3654_v62, %v3606_v18 }
 0x4bf   :  { %v3559_v9 = vadd.f32 %v3558_v17, %v8273_v46 }
 0x4c0   :  { %v3607_v1 = vpop.f32.mrf.mxu1 }
 0x4c1   :  { %v3608_v28 = vadd.f32 %v3607_v1, %v3559_v9 }
 0x4c4   :  { %v3698_v47 = vpop.f32.mrf.mxu3 }
 0x4c5   :  { %v3699_v2 = vadd.f32 %v3698_v47, %v3650_v6  ;;  %v3656_v21 = vpop.f32.mrf.mxu2 }
 0x4c6   :  { %v3561_v11 = vpop.f32.mrf.mxu0  ;;  %v3657_v62 = vadd.f32 %v3656_v21, %v3608_v28  ;;  %v3746_v21 = vmul.f32 0.2, %v8225_v32 }
 0x4c7   :  { %v3739_v63 = vmul.f32 0.2, %v3699_v2  ;;  %v3562_v17 = vadd.f32 %v3561_v11, %v8273_v46 }
 0x4c8   :  { %v3610_v14 = vpop.f32.mrf.mxu1  ;;  %v3778_v24 = vmax.f32 %v8225_v32, %v3746_v21 }
 0x4c9   :  { %v3771_v61 = vmax.f32 %v3699_v2, %v3739_v63  ;;  %v3611_v1 = vadd.f32 %v3610_v14, %v3562_v17 }
 0x4ca   :  { %v3816_v18 = vmul.f32 %v8284_v42, %v3778_v24 }
 0x4cb   :  { %v3809_v13 = vmul.f32 %v8286_v38, %v3771_v61 }
 0x4cc   :  { %v3700_v44 = vpop.f32.mrf.mxu3 }
 0x4cd   :  { %v3701_v49 = vadd.f32 %v3700_v44, %v3652_v0  ;;  %v3840_v37 = vadd.f32 %v3809_v13, %v3808_v40  ;;  %v3659_v36 = vpop.f32.mrf.mxu2 }
 0x4ce   :  { %v3563_v20 = vpop.f32.mrf.mxu0  ;;  %v3660_v61 = vadd.f32 %v3659_v36, %v3611_v1 }
 0x4cf   :  { %v3741_v8 = vmul.f32 0.2, %v3701_v49  ;;  %3841 = vadd.xlane.f32.xlu0 %v3840_v37  ;;  %v3564_v11 = vadd.f32 %v3563_v20, %v8273_v46 }
 0x4d0   :  { %v3612_v23 = vpop.f32.mrf.mxu1 }
 0x4d1   :  { %v3773_v4 = vmax.f32 %v3701_v49, %v3741_v8  ;;  %v3613_v37 = vadd.f32 %v3612_v23, %v3564_v11  ;;  %v3748_v8 = vmul.f32 0.2, %v8231_v19  ;;  %v3754_v11 = vmul.f32 0.2, %v8245_v48 }
 0x4d3   :  { %v3811_v33 = vmul.f32 %v8286_v38, %v3773_v4  ;;  %v3780_v32 = vmax.f32 %v8231_v19, %v3748_v8 }
 0x4d4   :  { %v3703_v29 = vpop.f32.mrf.mxu3 }
 0x4d5   :  { %v3704_v45 = vadd.f32 %v3703_v29, %v3655_v54  ;;  %v3843_v50 = vadd.f32 %v3811_v33, %v3810_v52  ;;  %v3661_v16 = vpop.f32.mrf.mxu2 }
 0x4d6   :  { %v3566_v41 = vpop.f32.mrf.mxu0  ;;  %v3662_v36 = vadd.f32 %v3661_v16, %v3613_v37  ;;  %v3750_v16 = vmul.f32 0.2, %v8235_v43 }
 0x4d7   :  { %v3743_v5 = vmul.f32 0.2, %v3704_v45  ;;  %3844 = vadd.xlane.f32.xlu0 %v3843_v50  ;;  %v3567_v20 = vadd.f32 %v3566_v41, %v8273_v46 }
 0x4d8   :  { %v3615_v47 = vpop.f32.mrf.mxu1  ;;  %v3782_v19 = vmax.f32 %v8235_v43, %v3750_v16 }
 0x4d9   :  { %v3775_v31 = vmax.f32 %v3704_v45, %v3743_v5  ;;  %v3616_v9 = vadd.f32 %v3615_v47, %v3567_v20  ;;  %v3818_v5 = vmul.f32 %v8284_v42, %v3780_v32  ;;  %v3752_v47 = vmul.f32 0.2, %v8241_v26 }
 0x4db   :  { %v3813_v27 = vmul.f32 %v8286_v38, %v3775_v31  ;;  %v3784_v43 = vmax.f32 %v8241_v26, %v3752_v47  ;;  %v3786_v26 = vmax.f32 %v8245_v48, %v3754_v11 }
 0x4dc   :  { %v3705_v6 = vpop.f32.mrf.mxu3 }
 0x4dd   :  { %v3706_v35 = vadd.f32 %v3705_v6, %v3657_v62  ;;  %v3846_v12 = vadd.f32 %v3813_v27, %v3812_v58  ;;  %v3664_v2 = vpop.f32.mrf.mxu2 }
 0x4de   :  { %v3568_v10 = vpop.f32.mrf.mxu0  ;;  %v3665_v22 = vadd.f32 %v3664_v2, %v3616_v9  ;;  %v3820_v2 = vmul.f32 %v8284_v42, %v3782_v19 }
 0x4df   :  { %v3745_v15 = vmul.f32 0.2, %v3706_v35  ;;  %3847 = vadd.xlane.f32.xlu1 %v3846_v12  ;;  %v3569_v41 = vadd.f32 %v3568_v10, %v8273_v46 }
 0x4e0   :  { %v3617_v53 = vpop.f32.mrf.mxu1 }
 0x4e1   :  { %v3777_v63 = vmax.f32 %v3706_v35, %v3745_v15  ;;  %v3618_v6 = vadd.f32 %v3617_v53, %v3569_v41 }
 0x4e3   :  { %v3815_v0 = vmul.f32 %v8286_v38, %v3777_v63 }
 0x4e4   :  { %v3708_v40 = vpop.f32.mrf.mxu3 }
 0x4e5   :  { %v3709_v13 = vadd.f32 %v3708_v40, %v3660_v61  ;;  %v3849_v44 = vadd.f32 %v3815_v0, %v3814_v7  ;;  %v3666_v14 = vpop.f32.mrf.mxu2 }
 0x4e6   :  { %v3571_v25 = vpop.f32.mrf.mxu0  ;;  %v3667_v35 = vadd.f32 %v3666_v14, %v3618_v6 }
 0x4e7   :  { %v3747_v49 = vmul.f32 0.2, %v3709_v13  ;;  %3850 = vadd.xlane.f32.xlu1 %v3849_v44  ;;  %v3572_v63 = vadd.f32 %v3571_v25, %v8273_v46  ;;  %v3822_v44 = vmul.f32 %v8284_v42, %v3784_v43 }
 0x4e8   :  { %v3620_v23 = vpop.f32.mrf.mxu1 }
 0x4e9   :  { %v3779_v59 = vmax.f32 %v3709_v13, %v3747_v49  ;;  %v3621_v0 = vadd.f32 %v3620_v23, %v3572_v63 }
 0x4eb   :  { %v3817_v4 = vmul.f32 %v8286_v38, %v3779_v59 }
 0x4ec   :  { %v3710_v54 = vpop.f32.mrf.mxu3 }
 0x4ed   :  { %v3711_v52 = vadd.f32 %v3710_v54, %v3662_v36  ;;  %v3852_v33 = vadd.f32 %v3817_v4, %v3816_v18  ;;  %v3669_v50 = vpop.f32.mrf.mxu2  ;;  %v3756_v54 = vmul.f32 0.2, %v8251_v39 }
 0x4ee   :  { %v3573_v58 = vpop.f32.mrf.mxu0  ;;  %v3670_v13 = vadd.f32 %v3669_v50, %v3621_v0 }
 0x4ef   :  { %v3749_v29 = vmul.f32 0.2, %v3711_v52  ;;  %3853 = vadd.xlane.f32.xlu2 %v3852_v33  ;;  %v3574_v49 = vadd.f32 %v3573_v58, %v8273_v46 }
 0x4f0   :  { %v3622_v12 = vpop.f32.mrf.mxu1 }
 0x4f1   :  { %v3781_v45 = vmax.f32 %v3711_v52, %v3749_v29  ;;  %v3623_v18 = vadd.f32 %v3622_v12, %v3574_v49  ;;  %v3824_v52 = vmul.f32 %v8284_v42, %v3786_v26 }
 0x4f3   :  { %v3819_v28 = vmul.f32 %v8286_v38, %v3781_v45  ;;  %v3788_v45 = vmax.f32 %v8251_v39, %v3756_v54  ;;  %v3764_v54 = vmul.f32 0.2, %v8267_v30 }
 0x4f4   :  { %v3713_v31 = vpop.f32.mrf.mxu3 }
 0x4f5   :  { %v3714_v55 = vadd.f32 %v3713_v31, %v3665_v22  ;;  %v3855_v62 = vadd.f32 %v3819_v28, %v3818_v5  ;;  %v3671_v15 = vpop.f32.mrf.mxu2  ;;  %v3758_v28 = vmul.f32 0.2, %v8255_v3  ;;  %v3826_v41 = vmul.f32 %v8284_v42, %v3788_v45 }
 0x4f6   :  { %v3576_v7 = vpop.f32.mrf.mxu0  ;;  %v3672_v20 = vadd.f32 %v3671_v15, %v3623_v18 }
 0x4f7   :  { %v3751_v27 = vmul.f32 0.2, %v3714_v55  ;;  %3856 = vadd.xlane.f32.xlu2 %v3855_v62  ;;  %v3577_v29 = vadd.f32 %v3576_v7, %v8273_v46  ;;  %v3790_v39 = vmax.f32 %v8255_v3, %v3758_v28  ;;  %v3766_v28 = vmul.f32 0.2, %v8270_v60 }
 0x4f8   :  { %v3625_v14 = vpop.f32.mrf.mxu1 }
 0x4f9   :  { %v3783_v17 = vmax.f32 %v3714_v55, %v3751_v27  ;;  %v3626_v22 = vadd.f32 %v3625_v14, %v3577_v29 }
 0x4fb   :  { %v3821_v51 = vmul.f32 %v8286_v38, %v3783_v17 }
 0x4fc   :  { %v3715_v1 = vpop.f32.mrf.mxu3 }
 0x4fd   :  { %v3716_v10 = vadd.f32 %v3715_v1, %v3667_v35  ;;  %v3858_v21 = vadd.f32 %v3821_v51, %v3820_v2  ;;  %v3674_v8 = vpop.f32.mrf.mxu2  ;;  %v3760_v51 = vmul.f32 0.2, %v8261_v56  ;;  %v3828_v1 = vmul.f32 %v8284_v42, %v3790_v39 }
 0x4fe   :  { %v3578_v25 = vpop.f32.mrf.mxu0  ;;  %v3675_v31 = vadd.f32 %v3674_v8, %v3626_v22 }
 0x4ff   :  { %v3753_v61 = vmul.f32 0.2, %v3716_v10  ;;  %3859 = vadd.xlane.f32.xlu0 %v3858_v21  ;;  %v3579_v19 = vadd.f32 %v3578_v25, %v8273_v46  ;;  %v3792_v3 = vmax.f32 %v8261_v56, %v3760_v51 }
 0x500   :  { %v3627_v48 = vpop.f32.mrf.mxu1 }
 0x501   :  { %v3785_v40 = vmax.f32 %v3716_v10, %v3753_v61  ;;  %v3628_v47 = vadd.f32 %v3627_v48, %v3579_v19 }
 0x503   :  { %v3823_v24 = vmul.f32 %v8286_v38, %v3785_v40 }
 0x504   :  { %v3718_v53 = vpop.f32.mrf.mxu3 }
 0x505   :  { %v3719_v37 = vadd.f32 %v3718_v53, %v3670_v13  ;;  %v3861_v59 = vadd.f32 %v3823_v24, %v3822_v44  ;;  %v3676_v16 = vpop.f32.mrf.mxu2  ;;  %v3762_v13 = vmul.f32 0.2, %v8265_v57  ;;  %v3830_v53 = vmul.f32 %v8284_v42, %v3792_v3 }
 0x506   :  { %v3581_v62 = vpop.f32.mrf.mxu0  ;;  %v3677_v15 = vadd.f32 %v3676_v16, %v3628_v47 }
 0x507   :  { %v3755_v36 = vmul.f32 0.2, %v3719_v37  ;;  %3862 = vadd.xlane.f32.xlu1 %v3861_v59  ;;  %v3582_v21 = vadd.f32 %v3581_v62, %v8273_v46  ;;  %v3794_v56 = vmax.f32 %v8265_v57, %v3762_v13  ;;  %v3796_v57 = vmax.f32 %v8267_v30, %v3764_v54 }
 0x508   :  { %v3630_v35 = vpop.f32.mrf.mxu1 }
 0x509   :  { %v3787_v4 = vmax.f32 %v3719_v37, %v3755_v36  ;;  %v3631_v40 = vadd.f32 %v3630_v35, %v3582_v21 }
 0x50b   :  { %v3825_v33 = vmul.f32 %v8286_v38, %v3787_v4 }
 0x50c   :  { %v3720_v32 = vpop.f32.mrf.mxu3 }
 0x50d   :  { %v3721_v9 = vadd.f32 %v3720_v32, %v3672_v20  ;;  %v3864_v23 = vadd.f32 %v3825_v33, %v3824_v52  ;;  %v3679_v2 = vpop.f32.mrf.mxu2  ;;  %v3832_v52 = vmul.f32 %v8284_v42, %v3794_v56 }
 0x50e   :  { %v3583_v7 = vpop.f32.mrf.mxu0  ;;  %v3680_v44 = vadd.f32 %v3679_v2, %v3631_v40 }
 0x50f   :  { %v3757_v50 = vmul.f32 0.2, %v3721_v9  ;;  %3865 = vadd.xlane.f32.xlu2 %v3864_v23  ;;  %v3584_v59 = vadd.f32 %v3583_v7, %v8273_v46 }
 0x510   :  { %v3632_v24 = vpop.f32.mrf.mxu1 }
 0x511   :  { %v3789_v5 = vmax.f32 %v3721_v9, %v3757_v50  ;;  %v3633_v4 = vadd.f32 %v3632_v24, %v3584_v59 }
 0x513   :  { %v3827_v55 = vmul.f32 %v8286_v38, %v3789_v5 }
 0x514   :  { %v3723_v58 = vpop.f32.mrf.mxu3 }
 0x515   :  { %v3724_v27 = vadd.f32 %v3723_v58, %v3675_v31  ;;  %v3867_v6 = vadd.f32 %v3827_v55, %v3826_v41  ;;  %v3681_v14 = vpop.f32.mrf.mxu2  ;;  %v3834_v41 = vmul.f32 %v8284_v42, %v3796_v57 }
 0x516   :  { %v3586_v18 = vpop.f32.mrf.mxu0  ;;  %v3682_v20 = vadd.f32 %v3681_v14, %v3633_v4 }
 0x517   :  { %v3759_v17 = vmul.f32 0.2, %v3724_v27  ;;  %3868 = vadd.xlane.f32.xlu0 %v3867_v6  ;;  %v3587_v29 = vadd.f32 %v3586_v18, %v8273_v46  ;;  %v3798_v6 = vmax.f32 %v8270_v60, %v3766_v28 }
 0x518   :  { %v3635_v45 = vpop.f32.mrf.mxu1 }
 0x519   :  { %v3791_v12 = vmax.f32 %v3724_v27, %v3759_v17  ;;  %v3636_v16 = vadd.f32 %v3635_v45, %v3587_v29  ;;  %v3836_v51 = vmul.f32 %v8284_v42, %v3798_v6 }
 0x51b   :  { %v3829_v63 = vmul.f32 %v8286_v38, %v3791_v12  ;;  %v3768_v12 = vmul.f32 0.2, %v8276_v34 }
 0x51c   :  { %v3725_v10 = vpop.f32.mrf.mxu3 }
 0x51d   :  { %v3726_v43 = vadd.f32 %v3725_v10, %v3677_v15  ;;  %v3870_v61 = vadd.f32 %v3829_v63, %v3828_v1  ;;  %v3684_v48 = vpop.f32.mrf.mxu2  ;;  %v3800_v10 = vmax.f32 %v8276_v34, %v3768_v12 }
 0x51e   :  { %v3588_v5 = vpop.f32.mrf.mxu0  ;;  %v3685_v31 = vadd.f32 %v3684_v48, %v3636_v16 }
 0x51f   :  { %v3761_v0 = vmul.f32 0.2, %v3726_v43  ;;  %3871 = vadd.xlane.f32.xlu1 %v3870_v61  ;;  %v3589_v58 = vadd.f32 %v3588_v5, %v8273_v46 }
 0x520   :  { %v3637_v39 = vpop.f32.mrf.mxu1 }
 0x521   :  { %v3793_v11 = vmax.f32 %v3726_v43, %v3761_v0  ;;  %v3638_v47 = vadd.f32 %v3637_v39, %v3589_v58  ;;  %v3838_v43 = vmul.f32 %v8284_v42, %v3800_v10  ;;  %v8367_v0 = vstv %s8828_s6  ;;  %s5781_s6 = smov [#allocation6]  }
 0x522   :  { %s4296_s22 = sshll.u32 %s5781_s6, 4  ;;  %s4297_s22 = int_to_ptr.vmem [resolvable:$true] %s4296_s22 }
 0x523   :  { %v3831_v49 = vmul.f32 %v8286_v38, %v3793_v11 }
 0x524   :  { %v3728_v37 = vpop.f32.mrf.mxu3 }
 0x525   :  { %v3729_v8 = vadd.f32 %v3728_v37, %v3680_v44  ;;  %v3873_v26 = vadd.f32 %v3831_v49, %v3830_v53  ;;  %v3686_v17 = vpop.f32.mrf.mxu2 }
 0x526   :  { %v3687_v2 = vadd.f32 %v3686_v17, %v3638_v47 }
 0x527   :  { %v3763_v36 = vmul.f32 0.2, %v3729_v8  ;;  %3874 = vadd.xlane.f32.xlu2 %v3873_v26 }
 0x529   :  { %v3795_v25 = vmax.f32 %v3729_v8, %v3763_v36 }
 0x52b   :  { %v3833_v33 = vmul.f32 %v8286_v38, %v3795_v25 }
 0x52c   :  { %v3730_v32 = vpop.f32.mrf.mxu3 }
 0x52d   :  { %v3731_v9 = vadd.f32 %v3730_v32, %v3682_v20  ;;  %v3876_v23 = vadd.f32 %v3833_v33, %v3832_v52 }
 0x52f   :  { %v3765_v50 = vmul.f32 0.2, %v3731_v9  ;;  %3877 = vadd.xlane.f32.xlu0 %v3876_v23 }
 0x531   :  { %v3797_v22 = vmax.f32 %v3731_v9, %v3765_v50 }
 0x533   :  { %v3835_v55 = vmul.f32 %v8286_v38, %v3797_v22 }
 0x534   :  { %v3733_v62 = vpop.f32.mrf.mxu3 }
 0x535   :  { %v3734_v19 = vadd.f32 %v3733_v62, %v3685_v31  ;;  %v3879_v27 = vadd.f32 %v3835_v55, %v3834_v41 }
 0x537   :  { %v3767_v30 = vmul.f32 0.2, %v3734_v19  ;;  %3880 = vadd.xlane.f32.xlu1 %v3879_v27 }
 0x539   :  { %v3799_v35 = vmax.f32 %v3734_v19, %v3767_v30  ;;  %v4226_v30 = vlaneseq }
 0x53b   :  { %v3837_v15 = vmul.f32 %v8286_v38, %v3799_v35 }
 0x53c   :  { %v3735_v1 = vpop.f32.mrf.mxu3 }
 0x53d   :  { %v3736_v63 = vadd.f32 %v3735_v1, %v3687_v2  ;;  %v3882_v46 = vadd.f32 %v3837_v15, %v3836_v51  ;;  %v8411_v1 = vand.u32 127, %v4226_v30 }
 0x53f   :  { %v3769_v21 = vmul.f32 0.2, %v3736_v63  ;;  %3883 = vadd.xlane.f32.xlu2 %v3882_v46 }
 0x541   :  { %v3801_v60 = vmax.f32 %v3736_v63, %v3769_v21 }
 0x542   :  { %v3842_v3 = vpop.xlane.xlu0 %3841 }
 0x543   :  { %v3839_v61 = vmul.f32 %v8286_v38, %v3801_v60  ;;  %v3890_v11 = vadd.f32 %v8367_v0, %v3842_v3  ;;  %v8426_v3 = vadd.s32 4294967288, %v8411_v1 }
 0x545   :  { %v3885_v7 = vadd.f32 %v3839_v61, %v3838_v43  ;;  %v5380_v44 = vmul.f32 -1.442695, %v3890_v11 }
 0x547   :  { %3886 = vadd.xlane.f32.xlu0 %v3885_v7  ;;  %5660 = vpow2.f32 %v5380_v44 }
 0x54a   :  { %v3845_v40 = vpop.xlane.xlu0 %3844 }
 0x54b   :  { %v3891_v34 = vadd.f32 %v8367_v0, %v3845_v40 }
 0x54d   :  { %v5381_v24 = vmul.f32 -1.442695, %v3891_v34  ;;  %v5661_v14 = vpop.eup %5660 }
 0x54e   :  { %v8373_v8 = vadd.f32 1.0, %v5661_v14 }
 0x54f   :  { %5662 = vpow2.f32 %v5381_v24  ;;  %v8443_v24 = vadd.s32 4294967280, %v8411_v1 }
 0x550   :  { %v3979_v63 = vand.u32 2147483647, %v8373_v8  ;;  %v3981_v46 = vand.u32 2147483648, %v8373_v8  ;;  %vm3975_vm3 = vweird.f32 %v8373_v8 }
 0x552   :  { %v3848_v13 = vpop.xlane.xlu1 %3847  ;;  %vm8437_vm5 = vcmp.eq.f32.partialorder %v3979_v63, 8.507059e+37 }
 0x553   :  { %v3892_v42 = vadd.f32 %v8367_v0, %v3848_v13 }
 0x555   :  { %v5382_v53 = vmul.f32 -1.442695, %v3892_v42  ;;  %v5663_v59 = vpop.eup %5662 }
 0x556   :  { %v8375_v56 = vadd.f32 1.0, %v5663_v59 }
 0x557   :  { %5664 = vpow2.f32 %v5382_v53  ;;  %v3982_v53 = vor.u32 1.1754944e-38, %v3981_v46 }
 0x558   :  { %5666 = vrcp.f32 %v8373_v8  ;;  %v3996_v60 = vand.u32 2147483648, %v8375_v56  ;;  %vm3990_vm6 = vweird.f32 %v8375_v56  ;;  %v3994_v14 = vand.u32 2147483647, %v8375_v56 }
 0x55a   :  { %v3851_v49 = vpop.xlane.xlu1 %3850  ;;  %vm3995_vm10 = vcmp.eq.f32.partialorder %v3994_v14, 8.507059e+37 }
 0x55b   :  { %v3893_v37 = vadd.f32 %v8367_v0, %v3851_v49  ;;  %v8538_v49 = vadd.s32 4294967248, %v8411_v1 }
 0x55d   :  { %v5383_v26 = vmul.f32 -1.442695, %v3893_v37  ;;  %v5665_v4 = vpop.eup %5664  ;;  %v8453_v37 = vadd.s32 4294967272, %v8411_v1 }
 0x55e   :  { %v8381_v20 = vadd.f32 1.0, %v5665_v4  ;;  %v8383_v32 = vpop.eup %5666 }
 0x55f   :  { %5668 = vpow2.f32 %v5383_v26  ;;  %v3971_v48 = vmul.f32 %v8383_v32, %v8373_v8  ;;  %vm3976_vm1 = vweird.f32 %v8383_v32 }
 0x560   :  { %5670 = vrcp.f32 %v8375_v56  ;;  %vm8433_vm4 = vmor %vm3975_vm3, %vm3976_vm1  ;;  %vm4005_vm11 = vweird.f32 %v8381_v20  ;;  %vm4239_vm1 = vcmask 261312  }
 0x561   :  { %v3972_v41 = vsub.f32 1.0, %v3971_v48 }
 0x562   :  { %v3854_v38 = vpop.xlane.xlu2 %3853 }
 0x563   :  { %v3894_v36 = vadd.f32 %v8367_v0, %v3854_v38  ;;  %v3973_v39 = vmul.f32 %v8383_v32, %v3972_v41 }
 0x565   :  { %v5384_v54 = vmul.f32 -1.442695, %v3894_v36  ;;  %v5669_v29 = vpop.eup %5668  ;;  %v3974_v21 = vadd.f32 %v8383_v32, %v3973_v39  ;;  %v3997_v36 = vor.u32 1.1754944e-38, %v3996_v60 }
 0x566   :  { %v8387_v23 = vpop.eup %5670  ;;  %v8391_v57 = vadd.f32 1.0, %v5669_v29 }
 0x567   :  { %5672 = vpow2.f32 %v5384_v54  ;;  %v3986_v50 = vmul.f32 %v8387_v23, %v8375_v56  ;;  %vm3991_vm2 = vweird.f32 %v8387_v23  ;;  %v3978_v8 = vsel %vm8433_vm4, %v8383_v32, %v3974_v21 }
 0x568   :  { %5674 = vrcp.f32 %v8381_v20  ;;  %vm8447_vm7 = vmor %vm3990_vm6, %vm3991_vm2  ;;  %v4011_v32 = vand.u32 2147483648, %v8381_v20  ;;  %vm4020_vm0 = vweird.f32 %v8391_v57 }
 0x569   :  { %v3987_v62 = vsub.f32 1.0, %v3986_v50 }
 0x56a   :  { %v3857_v18 = vpop.xlane.xlu2 %3856 }
 0x56b   :  { %v3895_v25 = vadd.f32 %v8367_v0, %v3857_v18  ;;  %v3988_v35 = vmul.f32 %v8387_v23, %v3987_v62  ;;  %v4012_v62 = vor.u32 1.1754944e-38, %v4011_v32 }
 0x56d   :  { %v5385_v33 = vmul.f32 -1.442695, %v3895_v25  ;;  %v5673_v22 = vpop.eup %5672  ;;  %v3989_v43 = vadd.f32 %v8387_v23, %v3988_v35 }
 0x56e   :  { %v8396_v31 = vpop.eup %5674  ;;  %v8399_v58 = vadd.f32 1.0, %v5673_v22 }
 0x56f   :  { %5676 = vpow2.f32 %v5385_v33  ;;  %v4001_v27 = vmul.f32 %v8396_v31, %v8381_v20  ;;  %v3993_v26 = vsel %vm8447_vm7, %v8387_v23, %v3989_v43  ;;  %vm4006_vm9 = vweird.f32 %v8396_v31 }
 0x570   :  { %5678 = vrcp.f32 %v8391_v57  ;;  %v4009_v33 = vand.u32 2147483647, %v8381_v20  ;;  %vm8478_vm13 = vmor %vm4005_vm11, %vm4006_vm9  ;;  %v4039_v46 = vand.u32 2147483647, %v8399_v58  ;;  %v4041_v43 = vand.u32 2147483648, %v8399_v58 }
 0x571   :  { %v4002_v51 = vsub.f32 1.0, %v4001_v27 }
 0x572   :  { %v3860_v52 = vpop.xlane.xlu0 %3859  ;;  %vm4010_vm14 = vcmp.eq.f32.partialorder %v4009_v33, 8.507059e+37  ;;  %vm8543_vm6 = vcmp.eq.f32.partialorder %v4039_v46, 8.507059e+37 }
 0x573   :  { %v3896_v9 = vadd.f32 %v8367_v0, %v3860_v52  ;;  %v4003_v40 = vmul.f32 %v8396_v31, %v4002_v51 }
 0x575   :  { %v5386_v16 = vmul.f32 -1.442695, %v3896_v9  ;;  %v5677_v55 = vpop.eup %5676  ;;  %v4004_v56 = vadd.f32 %v8396_v31, %v4003_v40  ;;  %v3983_v9 = vsel %vm8437_vm5, %v3982_v53, %v3978_v8  ;;  %vm4035_vm5 = vweird.f32 %v8399_v58 }
 0x576   :  { %v8405_v17 = vadd.f32 1.0, %v5677_v55  ;;  %v8409_v2 = vpop.eup %5678  ;;  %v4228_v55 = vperm.slane %v3983_v9, %v8411_v1 }
 0x577   :  { %5680 = vpow2.f32 %v5386_v16  ;;  %v4016_v61 = vmul.f32 %v8409_v2, %v8391_v57  ;;  %v8484_v16 = vadd.s32 4294967264, %v8411_v1  ;;  %v4008_v20 = vsel %vm8478_vm13, %v8396_v31, %v4004_v56 }
 0x578   :  { %5682 = vrcp.f32 %v8399_v58  ;;  %v4026_v31 = vand.u32 2147483648, %v8391_v57  ;;  %v4013_v39 = vsel %vm4010_vm14, %v4012_v62, %v4008_v20  ;;  %vm4021_vm15 = vweird.f32 %v8409_v2 }
 0x579   :  { %v4017_v18 = vsub.f32 1.0, %v4016_v61  ;;  %v4234_v60 = vperm.slane %v4013_v39, %v8443_v24  ;;  %vm8522_vm2 = vmor %vm4020_vm0, %vm4021_vm15  ;;  %vm4050_vm9 = vweird.f32 %v8405_v17 }
 0x57a   :  { %v3863_v45 = vpop.xlane.xlu1 %3862  ;;  %v4027_v44 = vor.u32 1.1754944e-38, %v4026_v31 }
 0x57b   :  { %v3897_v5 = vadd.f32 %v8367_v0, %v3863_v45  ;;  %v3998_v45 = vsel %vm3995_vm10, %v3997_v36, %v3993_v26  ;;  %v4018_v50 = vmul.f32 %v8409_v2, %v4017_v18  ;;  %v8555_v18 = vadd.s32 4294967240, %v8411_v1 }
 0x57c   :  { %v4230_v27 = vperm.slane %v3998_v45, %v8426_v3  ;;  %vm4243_vm10 = vcmask 326912  }
 0x57d   :  { %v5387_v6 = vmul.f32 -1.442695, %v3897_v5  ;;  %v5681_v15 = vpop.eup %5680 }
 0x57e   :  { %v8429_v11 = vadd.f32 1.0, %v5681_v15  ;;  %v8431_v13 = vpop.eup %5682  ;;  %v4232_v40 = vsel %vm4231_vm8, %v4230_v27, %v4228_v55 }
 0x57f   :  { %5684 = vpow2.f32 %v5387_v6  ;;  %v4031_v25 = vmul.f32 %v8431_v13, %v8399_v58  ;;  %v4024_v6 = vand.u32 2147483647, %v8391_v57  ;;  %vm4036_vm4 = vweird.f32 %v8431_v13 }
 0x580   :  { %5686 = vrcp.f32 %v8405_v17  ;;  %v4236_v8 = vsel %vm4235_vm12, %v4234_v60, %v4232_v40  ;;  %vm8550_vm7 = vmor %vm4035_vm5, %vm4036_vm4  ;;  %v4069_v62 = vand.u32 2147483647, %v8429_v11  ;;  %vm4247_vm12 = vcmask 392512  }
 0x581   :  { %v4032_v5 = vsub.f32 1.0, %v4031_v25  ;;  %vm8526_vm3 = vcmp.eq.f32.partialorder %v4024_v6, 8.507059e+37  ;;  %v4071_v6 = vand.u32 2147483648, %v8429_v11  ;;  %vm4065_vm15 = vweird.f32 %v8429_v11 }
 0x582   :  { %v3866_v28 = vpop.xlane.xlu2 %3865  ;;  %v8706_v60 = vadd.s32 4294967208, %v8411_v1 }
 0x583   :  { %v3898_v19 = vadd.f32 %v8367_v0, %v3866_v28  ;;  %v4033_v51 = vmul.f32 %v8431_v13, %v4032_v5 }
 0x585   :  { %v5388_v12 = vmul.f32 -1.442695, %v3898_v19  ;;  %v5685_v38 = vpop.eup %5684 }
 0x586   :  { %v8462_v4 = vpop.eup %5686  ;;  %v8471_v29 = vadd.f32 1.0, %v5685_v38  ;;  %v4034_v38 = vadd.f32 %v8431_v13, %v4033_v51 }
 0x587   :  { %5688 = vpow2.f32 %v5388_v12  ;;  %v4046_v28 = vmul.f32 %v8462_v4, %v8405_v17  ;;  %vm4051_vm8 = vweird.f32 %v8462_v4 }
 0x588   :  { %5690 = vrcp.f32 %v8429_v11  ;;  %vm8579_vm11 = vmor %vm4050_vm9, %vm4051_vm8  ;;  %v4084_v40 = vand.u32 2147483647, %v8471_v29  ;;  %vm4255_vm8 = vcmask 523712  }
 0x589   :  { %v4047_v15 = vsub.f32 1.0, %v4046_v28 }
 0x58a   :  { %v3869_v47 = vpop.xlane.xlu0 %3868 }
 0x58b   :  { %v3899_v10 = vadd.f32 %v8367_v0, %v3869_v47  ;;  %v4019_v47 = vadd.f32 %v8409_v2, %v4018_v50  ;;  %v4048_v53 = vmul.f32 %v8462_v4, %v4047_v15 }
 0x58d   :  { %v5389_v42 = vmul.f32 -1.442695, %v3899_v10  ;;  %v5689_v52 = vpop.eup %5688  ;;  %v8509_v10 = vadd.s32 4294967256, %v8411_v1  ;;  %v4049_v33 = vadd.f32 %v8462_v4, %v4048_v53 }
 0x58e   :  { %v8492_v41 = vadd.f32 1.0, %v5689_v52  ;;  %v8496_v19 = vpop.eup %5690  ;;  %v4038_v52 = vsel %vm8550_vm7, %v8431_v13, %v4034_v38  ;;  %v4054_v13 = vand.u32 2147483647, %v8405_v17  ;;  %vm8646_vm7 = vcmp.eq.f32.partialorder %v4084_v40, 8.507059e+37 }
 0x58f   :  { %5692 = vpow2.f32 %v5389_v42  ;;  %v4061_v21 = vmul.f32 %v8496_v19, %v8429_v11  ;;  %v4023_v42 = vsel %vm8522_vm2, %v8409_v2, %v4019_v47  ;;  %v4042_v2 = vor.u32 1.1754944e-38, %v4041_v43 }
 0x590   :  { %5694 = vrcp.f32 %v8471_v29  ;;  %v4028_v36 = vsel %vm8526_vm3, %v4027_v44, %v4023_v42  ;;  %vm4066_vm13 = vweird.f32 %v8496_v19  ;;  %vm4055_vm14 = vcmp.eq.f32.partialorder %v4054_v13, 8.507059e+37 }
 0x591   :  { %v4062_v14 = vsub.f32 1.0, %v4061_v21  ;;  %v4238_v50 = vperm.slane %v4028_v36, %v8453_v37  ;;  %v4043_v28 = vsel %vm8543_vm6, %v4042_v2, %v4038_v52  ;;  %vm8603_vm0 = vmor %vm4065_vm15, %vm4066_vm13  ;;  %vm8607_vm2 = vcmp.eq.f32.partialorder %v4069_v62, 8.507059e+37 }
 0x592   :  { %v3872_v7 = vpop.xlane.xlu1 %3871  ;;  %v4072_v11 = vor.u32 1.1754944e-38, %v4071_v6  ;;  %vm4251_vm3 = vcmask 458112   ;;  %v4101_v2 = vand.u32 2147483648, %v8492_v41  ;;  %v8651_v52 = vadd.s32 4294967224, %v8411_v1 }
 0x593   :  { %v3900_v59 = vadd.f32 %v8367_v0, %v3872_v7  ;;  %v4063_v45 = vmul.f32 %v8496_v19, %v4062_v14  ;;  %vm4095_vm9 = vweird.f32 %v8492_v41 }
 0x595   :  { %v5390_v23 = vmul.f32 -1.442695, %v3900_v59  ;;  %v5693_v30 = vpop.eup %5692  ;;  %v4064_v39 = vadd.f32 %v8496_v19, %v4063_v45 }
 0x596   :  { %v8515_v61 = vadd.f32 1.0, %v5693_v30  ;;  %v8517_v3 = vpop.eup %5694 }
 0x597   :  { %5696 = vpow2.f32 %v5390_v23  ;;  %v4076_v56 = vmul.f32 %v8517_v3, %v8471_v29  ;;  %v4056_v23 = vand.u32 2147483648, %v8405_v17  ;;  %v4053_v17 = vsel %vm8579_vm11, %v8462_v4, %v4049_v33 }
 0x598   :  { %5698 = vrcp.f32 %v8492_v41  ;;  %v4242_v4 = vperm.slane %v4043_v28, %v8484_v16  ;;  %vm4081_vm4 = vweird.f32 %v8517_v3  ;;  %v8654_v33 = vadd.s32 4294967216, %v8411_v1 }
 0x599   :  { %v4077_v27 = vsub.f32 1.0, %v4076_v56  ;;  %v4057_v30 = vor.u32 1.1754944e-38, %v4056_v23  ;;  %vm4259_vm11 = vcmask 589312   ;;  %v4114_v62 = vand.u32 2147483647, %v8515_v61 }
 0x59a   :  { %v3875_v54 = vpop.xlane.xlu2 %3874 }
 0x59b   :  { %v3901_v22 = vadd.f32 %v8367_v0, %v3875_v54  ;;  %v4058_v51 = vsel %vm4055_vm14, %v4057_v30, %v4053_v17  ;;  %v4078_v15 = vmul.f32 %v8517_v3, %v4077_v27  ;;  %v4116_v27 = vand.u32 2147483648, %v8515_v61 }
 0x59c   :  { %v4246_v44 = vperm.slane %v4058_v51, %v8509_v10  ;;  %vm4110_vm14 = vweird.f32 %v8515_v61 }
 0x59d   :  { %v5391_v35 = vmul.f32 -1.442695, %v3901_v22  ;;  %v5697_v24 = vpop.eup %5696  ;;  %v8575_v22 = vadd.s32 4294967232, %v8411_v1  ;;  %v4079_v38 = vadd.f32 %v8517_v3, %v4078_v15 }
 0x59e   :  { %v8540_v59 = vpop.eup %5698  ;;  %v8559_v25 = vadd.f32 1.0, %v5697_v24  ;;  %v4086_v24 = vand.u32 2147483648, %v8471_v29 }
 0x59f   :  { %5700 = vpow2.f32 %v5391_v35  ;;  %v4091_v48 = vmul.f32 %v8540_v59, %v8492_v41  ;;  %v4240_v35 = vsel %vm4239_vm1, %v4238_v50, %v4236_v8  ;;  %vm4080_vm1 = vweird.f32 %v8471_v29 }
 0x5a0   :  { %v4099_v8 = vand.u32 2147483647, %v8492_v41  ;;  %vm4096_vm5 = vweird.f32 %v8540_v59  ;;  %v4244_v58 = vsel %vm4243_vm10, %v4242_v4, %v4240_v35  ;;  %vm8642_vm6 = vmor %vm4080_vm1, %vm4081_vm4  ;;  %v4087_v50 = vor.u32 1.1754944e-38, %v4086_v24 }
 0x5a1   :  { %v4092_v47 = vsub.f32 1.0, %v4091_v48  ;;  %v4083_v29 = vsel %vm8642_vm6, %v8517_v3, %v4079_v38  ;;  %vm8667_vm10 = vmor %vm4095_vm9, %vm4096_vm5  ;;  %v4102_v3 = vor.u32 1.1754944e-38, %v4101_v2  ;;  %v4129_v21 = vand.u32 2147483647, %v8559_v25 }
 0x5a2   :  { %v3878_v12 = vpop.xlane.xlu0 %3877  ;;  %v4088_v55 = vsel %vm8646_vm7, %v4087_v50, %v4083_v29  ;;  %vm4125_vm1 = vweird.f32 %v8559_v25 }
 0x5a3   :  { %v3902_v63 = vadd.f32 %v8367_v0, %v3878_v12  ;;  %v4093_v57 = vmul.f32 %v8540_v59, %v4092_v47  ;;  %v4254_v4 = vperm.slane %v4088_v55, %v8555_v18 }
 0x5a5   :  { %v5392_v7 = vmul.f32 -1.442695, %v3902_v63  ;;  %v5701_v9 = vpop.eup %5700  ;;  %v4094_v26 = vadd.f32 %v8540_v59, %v4093_v57 }
 0x5a6   :  { %v8591_v31 = vadd.f32 1.0, %v5701_v9 }
 0x5a7   :  { %5702 = vpow2.f32 %v5392_v7  ;;  %v4068_v7 = vsel %vm8603_vm0, %v8496_v19, %v4064_v39  ;;  %v4098_v41 = vsel %vm8667_vm10, %v8540_v59, %v4094_v26  ;;  %vm8700_vm0 = vcmp.eq.f32.partialorder %v4114_v62, 8.507059e+37 }
 0x5a8   :  { %5704 = vrcp.f32 %v8515_v61  ;;  %v4073_v14 = vsel %vm8607_vm2, %v4072_v11, %v4068_v7  ;;  %v4131_v11 = vand.u32 2147483648, %v8559_v25  ;;  %v4117_v7 = vor.u32 1.1754944e-38, %v4116_v27 }
 0x5a9   :  { %5706 = vrcp.f32 %v8559_v25  ;;  %v4250_v48 = vperm.slane %v4073_v14, %v8538_v49  ;;  %v4144_v38 = vand.u32 2147483647, %v8591_v31  ;;  %vm4140_vm5 = vweird.f32 %v8591_v31 }
 0x5aa   :  { %v3881_v54 = vpop.xlane.xlu1 %3880 }
 0x5ab   :  { %v3903_v32 = vadd.f32 %v8367_v0, %v3881_v54  ;;  %vm8753_vm7 = vcmp.eq.f32.partialorder %v4144_v38, 8.507059e+37 }
 0x5ad   :  { %v5393_v20 = vmul.f32 -1.442695, %v3903_v32  ;;  %v5703_v5 = vpop.eup %5702  ;;  %v4248_v32 = vsel %vm4247_vm12, %v4246_v44, %v4244_v58  ;;  %vm4100_vm12 = vcmp.eq.f32.partialorder %v4099_v8, 8.507059e+37  ;;  %v4132_v8 = vor.u32 1.1754944e-38, %v4131_v11 }
 0x5ae   :  { %v8585_v37 = vpop.eup %5704  ;;  %v8597_v12 = vadd.f32 1.0, %v5703_v5  ;;  %v4103_v39 = vsel %vm4100_vm12, %v4102_v3, %v4098_v41  ;;  %v4252_v15 = vsel %vm4251_vm3, %v4250_v48, %v4248_v32  ;;  %vm8725_vm3 = vcmp.eq.f32.partialorder %v4129_v21, 8.507059e+37 }
 0x5af   :  { %5708 = vpow2.f32 %v5393_v20  ;;  %v4106_v63 = vmul.f32 %v8585_v37, %v8515_v61  ;;  %v8613_v43 = vpop.eup %5706  ;;  %vm4111_vm13 = vweird.f32 %v8585_v37  ;;  %v4258_v61 = vperm.slane %v4103_v39, %v8575_v22 }
 0x5b0   :  { %5710 = vrcp.f32 %v8591_v31  ;;  %v4121_v10 = vmul.f32 %v8613_v43, %v8559_v25  ;;  %vm8696_vm15 = vmor %vm4110_vm14, %vm4111_vm13  ;;  %vm4126_vm2 = vweird.f32 %v8613_v43  ;;  %v4256_v44 = vsel %vm4255_vm8, %v4254_v4, %v4252_v15 }
 0x5b1   :  { %5712 = vrcp.f32 %v8597_v12  ;;  %v4107_v19 = vsub.f32 1.0, %v4106_v63  ;;  %v8719_v22 = vadd.s32 4294967200, %v8411_v1  ;;  %v4146_v25 = vand.u32 2147483648, %v8591_v31  ;;  %vm8733_vm4 = vmor %vm4125_vm1, %vm4126_vm2 }
 0x5b2   :  { %v3884_v46 = vpop.xlane.xlu2 %3883  ;;  %v4122_v20 = vsub.f32 1.0, %v4121_v10  ;;  %v4260_v2 = vsel %vm4259_vm11, %v4258_v61, %v4256_v44  ;;  %vm4263_vm8 = vcmask 654912   ;;  %v8758_v48 = vadd.s32 4294967192, %v8411_v1 }
 0x5b3   :  { %v3904_v16 = vadd.f32 %v8367_v0, %v3884_v46  ;;  %v4108_v9 = vmul.f32 %v8585_v37, %v4107_v19  ;;  %vm4155_vm9 = vweird.f32 %v8597_v12  ;;  %vm4267_vm13 = vcmask 720512  }
 0x5b4   :  { %v4123_v47 = vmul.f32 %v8613_v43, %v4122_v20  ;;  %v4161_v20 = vand.u32 2147483648, %v8597_v12 }
 0x5b5   :  { %v5709_v34 = vpop.eup %5708  ;;  %v5394_v42 = vmul.f32 -1.442695, %v3904_v16  ;;  %v4109_v6 = vadd.f32 %v8585_v37, %v4108_v9 }
 0x5b6   :  { %v8626_v53 = vadd.f32 1.0, %v5709_v34  ;;  %v8637_v36 = vpop.eup %5710  ;;  %v4124_v40 = vadd.f32 %v8613_v43, %v4123_v47  ;;  %v4162_v39 = vor.u32 1.1754944e-38, %v4161_v20 }
 0x5b7   :  { %5714 = vpow2.f32 %v5394_v42  ;;  %v8662_v45 = vpop.eup %5712  ;;  %v4136_v49 = vmul.f32 %v8637_v36, %v8591_v31  ;;  %v4113_v18 = vsel %vm8696_vm15, %v8585_v37, %v4109_v6  ;;  %vm4141_vm6 = vweird.f32 %v8637_v36 }
 0x5b8   :  { %5716 = vrcp.f32 %v8626_v53  ;;  %v4151_v59 = vmul.f32 %v8662_v45, %v8597_v12  ;;  %v8723_v37 = vsel %vm8700_vm0, %v4117_v7, %v4113_v18  ;;  %v4128_v58 = vsel %vm8733_vm4, %v8613_v43, %v4124_v40  ;;  %vm8767_vm11 = vmor %vm4140_vm5, %vm4141_vm6 }
 0x5b9   :  { %v4137_v51 = vsub.f32 1.0, %v4136_v49  ;;  %v4262_v32 = vperm.slane %v8723_v37, %v8651_v52  ;;  %v4147_v43 = vor.u32 1.1754944e-38, %v4146_v25  ;;  %v4133_v50 = vsel %vm8725_vm3, %v4132_v8, %v4128_v58 }
 0x5ba   :  { %v3887_v23 = vpop.xlane.xlu0 %3886  ;;  %v4152_v16 = vsub.f32 1.0, %v4151_v59  ;;  %vm4156_vm10 = vweird.f32 %v8662_v45  ;;  %v4159_v49 = vand.u32 2147483647, %v8597_v12  ;;  %v4176_v31 = vand.u32 2147483648, %v8626_v53 }
 0x5bb   :  { %v3905_v5 = vadd.f32 %v8367_v0, %v3887_v23  ;;  %v4138_v34 = vmul.f32 %v8637_v36, %v4137_v51  ;;  %vm8781_vm15 = vmor %vm4155_vm9, %vm4156_vm10  ;;  %vm4170_vm0 = vweird.f32 %v8626_v53  ;;  %v4174_v55 = vand.u32 2147483647, %v8626_v53 }
 0x5bc   :  { %v4153_v10 = vmul.f32 %v8662_v45, %v4152_v16  ;;  %vm4160_vm4 = vcmp.eq.f32.partialorder %v4159_v49, 8.507059e+37  ;;  %v4264_v11 = vsel %vm4263_vm8, %v4262_v32, %v4260_v2  ;;  %vm4271_vm9 = vcmask 786112  }
 0x5bd   :  { %v5715_v28 = vpop.eup %5714  ;;  %v5395_v17 = vmul.f32 -1.442695, %v3905_v5  ;;  %v4139_v29 = vadd.f32 %v8637_v36, %v4138_v34  ;;  %vm4175_vm5 = vcmp.eq.f32.partialorder %v4174_v55, 8.507059e+37  ;;  %vm4275_vm10 = vcmask 851712  }
 0x5be   :  { %v8681_v0 = vpop.eup %5716  ;;  %v8687_v30 = vadd.f32 1.0, %v5715_v28  ;;  %v4154_v52 = vadd.f32 %v8662_v45, %v4153_v10  ;;  %vm4283_vm8 = vcmask 982912  }
 0x5bf   :  { %v4166_v35 = vmul.f32 %v8681_v0, %v8626_v53  ;;  %5718 = vpow2.f32 %v5395_v17  ;;  %vm4171_vm12 = vweird.f32 %v8681_v0  ;;  %v4143_v3 = vsel %vm8767_vm11, %v8637_v36, %v4139_v29 }
 0x5c0   :  { %5720 = vrcp.f32 %v8687_v30  ;;  %v4191_v62 = vand.u32 2147483648, %v8687_v30  ;;  %v4266_v36 = vperm.slane %v4133_v50, %v8654_v33  ;;  %vm8790_vm2 = vmor %vm4170_vm0, %vm4171_vm12  ;;  %vm4185_vm1 = vweird.f32 %v8687_v30 }
 0x5c1   :  { %v4167_v57 = vsub.f32 1.0, %v4166_v35  ;;  %v4158_v6 = vsel %vm8781_vm15, %v8662_v45, %v4154_v52  ;;  %v4189_v59 = vand.u32 2147483647, %v8687_v30  ;;  %v4148_v53 = vsel %vm8753_vm7, %v4147_v43, %v4143_v3 }
 0x5c2   :  { %v4177_v35 = vor.u32 1.1754944e-38, %v4176_v31  ;;  %v4281_v45 = vadd.s32 4294967184, %v8411_v1  ;;  %v4163_v15 = vsel %vm4160_vm4, %v4162_v39, %v4158_v6  ;;  %v4270_v21 = vperm.slane %v4148_v53, %v8706_v60 }
 0x5c3   :  { %v4168_v56 = vmul.f32 %v8681_v0, %v4167_v57  ;;  %vm4190_vm6 = vcmp.eq.f32.partialorder %v4189_v59, 8.507059e+37  ;;  %v4274_v16 = vperm.slane %v4163_v15, %v8719_v22  ;;  %v4285_v57 = vadd.s32 4294967176, %v8411_v1 }
 0x5c4   :  { %v4268_v34 = vsel %vm4267_vm13, %v4266_v36, %v4264_v11  ;;  %vm4287_vm0 = vcmask 1048512  }
 0x5c5   :  { %v5719_v24 = vpop.eup %5718  ;;  %v4169_v5 = vadd.f32 %v8681_v0, %v4168_v56  ;;  %v4272_v37 = vsel %vm4271_vm9, %v4270_v21, %v4268_v34 }
 0x5c6   :  { %v8731_v19 = vpop.eup %5720  ;;  %v8738_v26 = vadd.f32 1.0, %v5719_v24  ;;  %v4276_v42 = vsel %vm4275_vm10, %v4274_v16, %v4272_v37 }
 0x5c7   :  { %v4181_v54 = vmul.f32 %v8731_v19, %v8687_v30  ;;  %vm4186_vm14 = vweird.f32 %v8731_v19  ;;  %v4173_v33 = vsel %vm8790_vm2, %v8681_v0, %v4169_v5  ;;  %v4192_v30 = vor.u32 1.1754944e-38, %v4191_v62 }
 0x5c8   :  { %5722 = vrcp.f32 %v8738_v26  ;;  %vm4187_vm3 = vmor %vm4185_vm1, %vm4186_vm14  ;;  %v4178_v63 = vsel %vm4175_vm5, %v4177_v35, %v4173_v33  ;;  %v4206_v46 = vand.u32 2147483648, %v8738_v26  ;;  %v4204_v18 = vand.u32 2147483647, %v8738_v26 }
 0x5c9   :  { %v4182_v23 = vsub.f32 1.0, %v4181_v54  ;;  %vm4200_vm11 = vweird.f32 %v8738_v26  ;;  %v4278_v40 = vperm.slane %v4178_v63, %v8758_v48  ;;  %vm4279_vm14 = vcmask 917312  }
 0x5ca   :  { %v4207_v60 = vor.u32 1.1754944e-38, %v4206_v46  ;;  %vm4205_vm15 = vcmp.eq.f32.partialorder %v4204_v18, 8.507059e+37 }
 0x5cb   :  { %v4183_v41 = vmul.f32 %v8731_v19, %v4182_v23  ;;  %v4280_v1 = vsel %vm4279_vm14, %v4278_v40, %v4276_v42 }
 0x5cd   :  { %v4184_v27 = vadd.f32 %v8731_v19, %v4183_v41 }
 0x5ce   :  { %v5723_v17 = vpop.eup %5722 }
 0x5cf   :  { %v4196_v47 = vmul.f32 %v5723_v17, %v8738_v26  ;;  %v4188_v4 = vsel %vm4187_vm3, %v8731_v19, %v4184_v27  ;;  %vm4201_vm7 = vweird.f32 %v5723_v17 }
 0x5d0   :  { %v4193_v61 = vsel %vm4190_vm6, %v4192_v30, %v4188_v4  ;;  %vm4202_vm12 = vmor %vm4200_vm11, %vm4201_vm7 }
 0x5d1   :  { %v4197_v51 = vsub.f32 1.0, %v4196_v47  ;;  %v4282_v44 = vperm.slane %v4193_v61, %v4281_v45 }
 0x5d3   :  { %v4198_v0 = vmul.f32 %v5723_v17, %v4197_v51  ;;  %v4284_v25 = vsel %vm4283_vm8, %v4282_v44, %v4280_v1 }
 0x5d5   :  { %v4199_v7 = vadd.f32 %v5723_v17, %v4198_v0 }
 0x5d7   :  { %v4203_v24 = vsel %vm4202_vm12, %v5723_v17, %v4199_v7 }
 0x5d8   :  { %v4208_v22 = vsel %vm4205_vm15, %v4207_v60, %v4203_v24 }
 0x5d9   :  { %v4286_v38 = vperm.slane %v4208_v22, %v4285_v57 }
 0x5db   :  { %v4288_v19 = vsel %vm4287_vm0, %v4286_v38, %v4284_v25 }
 0x5dc   :  { %4290 = vst [vmem:[#allocation6] sm:$0x1] %v4288_v19 }
 0x5dd   :  { %4301 = dma.vmem_to_hbm [thread:$0]  %s4297_s22, 16, %s4299_s25, [#allocation5]  }
 0x5de   :  { %5776 = dma.done.wait [#allocation5], 16  }
 0x5df   :  { %5777 = vsyncadd [#allocation5], 4294967280 }
 0x5e0   :  { %4306 = vsyncpa [#allocation4], 1 }
 0x5e1   :  { %4307 = vsyncpa [#allocation5], 1 }

</bundles_post_ra>
